<compile_context>
chip_gen: v7x
topology: tpu7x:2x2x1
jax: 0.10.0
libtpu: 0.0.40
codegen_flags: <defaults>
</compile_context>

<pallas_src>
import functools
import math

import jax
import jax.numpy as jnp
from jax.experimental import pallas as pl
from jax.experimental.pallas import tpu as pltpu

EPSILON = 1e-6
LOG100 = math.log(100.0)
INV = math.log(math.exp(1.0 - EPSILON) - 1.0)
LOG1MEPS = math.log(1.0 - EPSILON)
LANE = 128


def _round_up(v, m):
    return ((v + m - 1) // m) * m


# ---------------- in-kernel math helpers (pure jnp, lower to VPU/EUP) ----------------
def _softplus(x):
    # numerically stable softplus using only exp/log (1 exp + 1 log per element).
    return jnp.maximum(x, 0.0) + jnp.log(1.0 + jnp.exp(-jnp.abs(x)))


def _log(x):  # matches torch: log(x*100) - log(100)
    return jnp.log(x * 100.0) - LOG100


# ---------------------------------- Pallas kernel ----------------------------------
def _dsf_kernel(ds_ref, x_ref, ld_ref, eu_ref, ew_ref, xnew_ref, ldout_ref, *, H, D, O):
    # ds_ref:   (3H+D, N, Bt)  lane-major dsparams (a|b|w|u stacked on the leading axis)
    # x_ref:    (D, Bt)        ld_ref: (1, Bt)
    # eu_ref:   (D, H) SMEM = exp(u_.T - max)    ew_ref: (H, O) SMEM = exp(w_.T - max)
    # xnew_ref: (O, Bt)        ldout_ref: (O, N, Bt)
    a_ds = ds_ref[0:H]                                   # (H, N, Bt)
    b_ds = ds_ref[H:2 * H]                               # (H, N, Bt)
    w_ds = ds_ref[2 * H:3 * H]                           # (H, N, Bt)
    u_ds = ds_ref[3 * H:3 * H + D]                       # (D, N, Bt)
    xv = x_ref[...]                                      # (D, Bt)
    ld = ld_ref[...]                                     # (1, Bt)

    # a / b activations
    a = _softplus(a_ds + INV) + EPSILON                  # (H, N, Bt)
    log_a = _log(a)

    # ---- u-softmax over D, constant table factored out (exact: shifts cancel). ----
    mu = jnp.max(u_ds, axis=0)                           # (N, Bt)
    e_ud = jnp.exp(u_ds - mu[None])                      # (D, N, Bt)   only D*N exps / lane
    ex_ud = e_ud * xv[:, None, :]                        # (D, N, Bt)
    su_rows, ux_rows = [], []
    for h in range(H):
        s = eu_ref[0, h] * e_ud[0]
        t = eu_ref[0, h] * ex_ud[0]
        for d in range(1, D):
            c = eu_ref[d, h]
            s = s + c * e_ud[d]
            t = t + c * ex_ud[d]
        su_rows.append(s)
        ux_rows.append(t)
    su = jnp.stack(su_rows, axis=0)                      # (H, N, Bt)  Σ_d exp(pre_u)
    ux = jnp.stack(ux_rows, axis=0)                      # (H, N, Bt)  Σ_d exp(pre_u)·x

    # ---- pre_sigm / sigmoid: one softplus feeds the sigmoid and both logsigmoids. ----
    pre_sigm = a * ux / su + b_ds                        # (H, N, Bt)  (exact division kept)
    sp_n = _softplus(-pre_sigm)                          # softplus(-x)
    sigm = jnp.exp(-sp_n)                                # sigmoid(x)
    # c = logsigmoid(x) + logsigmoid(-x) + log(a); keeps the reference's two +EPSILON terms.
    cc = log_a - (2.0 * sp_n + pre_sigm) + 2.0 * EPSILON
    cmax = jnp.max(cc, axis=0)                           # (N, Bt)
    jn = jnp.exp(cc - cmax[None])                        # (H, N, Bt)

    # ---- w-softmax over H, constant table factored out (exact). ----
    mw = jnp.max(w_ds, axis=0)                           # (N, Bt)
    e_wd = jnp.exp(w_ds - mw[None])                      # (H, N, Bt)
    ew_sig = e_wd * sigm
    ew_jn = e_wd * jn
    sw_rows, xs_rows, tn_rows = [], [], []
    for o in range(O):
        c0 = ew_ref[0, o]
        s = c0 * e_wd[0]
        t = c0 * ew_sig[0]
        r = c0 * ew_jn[0]
        for h in range(1, H):
            c = ew_ref[h, o]
            s = s + c * e_wd[h]
            t = t + c * ew_sig[h]
            r = r + c * ew_jn[h]
        sw_rows.append(s)
        xs_rows.append(t)
        tn_rows.append(r)
    sw = jnp.stack(sw_rows, axis=0)                      # (O, N, Bt)  softmax denominator
    xs = jnp.stack(xs_rows, axis=0)                      # (O, N, Bt)  Σ_h e_w·σ (unnormalized)
    tn = jnp.stack(tn_rows, axis=0)                      # (O, N, Bt)  Σ_h e_w·exp(c-cmax)

    # ---- forward map. ----
    rsw = 1.0 / sw
    x_pre = xs * rsw
    xpc = x_pre * (1.0 - EPSILON) + EPSILON * 0.5
    log_xpc = _log(xpc)                                  # (O, N, Bt)
    log_1m = _log(1.0 - xpc)
    xnew_ref[...] = log_xpc[:, 0, :] - log_1m[:, 0, :]   # flow row n = 0 only, lane-dense

    # ---- log-det Jacobian.  The reference's lse_d(lse_h(logj + lsu)) collapses to
    #      lse_h(logj) because Σ_d exp(log_softmax_d) == 1 exactly. ----
    lse_h = jnp.log(tn * rsw) + cmax[None]               # (O, N, Bt)
    ldout_ref[...] = lse_h + LOG1MEPS - (log_xpc + log_1m) + ld[None]


# ------------------------------------ wrapper ------------------------------------
def dense_sigmoid_flow(dsparams, x, logdet, u_param, w_param, *,
                       in_dim, hidden_dim, out_dim, batch_tile=512):
    B = x.shape[0]
    H, D, O = hidden_dim, in_dim, out_dim
    if dsparams.ndim == 1:
        dsparams = jnp.broadcast_to(dsparams[None, None, :], (B, 1, dsparams.shape[0]))
    Bp, N, P = dsparams.shape
    assert Bp == B and P == 3 * H + D
    assert logdet.ndim == 1
    # TODO(synk): chaining with a previous layer's (B, N, Dprev, Oprev) logdet is not
    # implemented; only the scalar-per-batch (1-D logdet) entry case is supported.

    f32 = jnp.float32

    # batch on lanes; pick the lane tile so the grid has >= 2 steps when possible
    # (v7x megacore sharding of the "parallel" axis), then pad B up to a multiple of it.
    B128 = _round_up(B, LANE)
    bt = min(int(batch_tile), B128)
    if B128 >= 2 * LANE:
        bt = min(bt, _round_up(B128 // 2, LANE))
    bt = max(LANE, _round_up(bt, LANE))
    B_pad = _round_up(B128, bt)
    pad = B_pad - B

    # single transpose + pad of dsparams (zero padding is math-safe for every formula).
    ds_t = jnp.pad(jnp.transpose(dsparams.astype(f32), (2, 1, 0)),
                   ((0, 0), (0, 0), (0, pad)))                          # (P, N, B_pad)
    x_t = jnp.pad(x.astype(f32).T, ((0, 0), (0, pad)))                  # (D, B_pad)
    ld_t = jnp.pad(logdet.astype(f32)[None, :], ((0, 0), (0, pad)))     # (1, B_pad)

    # batch-independent softmax tables, factored out of the in-kernel exponents.
    # The host-side max shift is exact (it cancels in every softmax / lse ratio).
    u32 = u_param.astype(f32)
    w32 = w_param.astype(f32)
    eu_tab = jnp.exp(u32.T - jnp.max(u32))                              # (D, H)
    ew_tab = jnp.exp(w32.T - jnp.max(w32))                              # (H, O)

    kernel = functools.partial(_dsf_kernel, H=H, D=D, O=O)
    xnew_t, ldout_t = pl.pallas_call(
        kernel,
        out_shape=(jax.ShapeDtypeStruct((O, B_pad), f32),
                   jax.ShapeDtypeStruct((O, N, B_pad), f32)),
        grid_spec=pltpu.PrefetchScalarGridSpec(
            num_scalar_prefetch=0,
            grid=(B_pad // bt,),
            in_specs=[
                pl.BlockSpec((P, N, bt), lambda t: (0, 0, t)),        # dsparams (lane-major)
                pl.BlockSpec((D, bt), lambda t: (0, t)),              # x
                pl.BlockSpec((1, bt), lambda t: (0, t)),              # incoming logdet
                pl.BlockSpec(memory_space=pltpu.MemorySpace.SMEM),    # exp(u_.T - max), (D, H)
                pl.BlockSpec(memory_space=pltpu.MemorySpace.SMEM),    # exp(w_.T - max), (H, O)
            ],
            out_specs=(
                pl.BlockSpec((O, bt), lambda t: (0, t)),              # xnew (row n = 0)
                pl.BlockSpec((O, N, bt), lambda t: (0, 0, t)),        # logdet
            ),
        ),
        compiler_params=pltpu.CompilerParams(
            dimension_semantics=("parallel",)),
    )(ds_t, x_t, ld_t, eu_tab, ew_tab)

    xnew = xnew_t[:, :B].T                                   # (B, O)
    ld_out = jnp.transpose(ldout_t[:, :, :B], (2, 1, 0))     # (B, N, O)
    return xnew, ld_out[..., None]                           # (B, O), (B, N, O, 1)


# ------------------------------ plain-JAX reference ------------------------------
def reference_forward(dsparams, x, logdet, u_param, w_param,
                      *, in_dim, hidden_dim, out_dim):
    if logdet.ndim == 1:
        logdet = logdet[:, None, None, None]
    ndim = hidden_dim
    log_ = lambda t: jnp.log(t * 100.0) - LOG100
    logsig = lambda t: -jax.nn.softplus(-t) + EPSILON

    pre_u = u_param[None, None] + dsparams[:, :, -in_dim:][:, :, None, :]
    pre_w = w_param[None, None] + dsparams[:, :, 2 * ndim:3 * ndim][:, :, None, :]
    a = jax.nn.softplus(dsparams[:, :, 0:ndim] + INV) + EPSILON
    b = dsparams[:, :, ndim:2 * ndim]
    w = jax.nn.softmax(pre_w, axis=-1)
    u = jax.nn.softmax(pre_u, axis=-1)
    pre_sigm = jnp.sum(u * a[:, :, :, None] * x[:, None, None, :], -1) + b
    sigm = jax.nn.sigmoid(pre_sigm)
    x_pre = jnp.sum(w * sigm[:, :, None, :], -1)
    xpc = x_pre * (1 - EPSILON) + EPSILON * 0.5
    xnew = (log_(xpc) - log_(1 - xpc))[:, 0, :]
    logj = (jax.nn.log_softmax(pre_w, axis=3) + logsig(pre_sigm)[:, :, None, :]
            + logsig(-pre_sigm)[:, :, None, :] + log_(a)[:, :, None, :])
    logj = logj[:, :, :, :, None] + jax.nn.log_softmax(pre_u, axis=3)[:, :, None, :, :]
    logj = jax.scipy.special.logsumexp(logj, axis=3)
    logdet_ = logj + LOG1MEPS - (log_(xpc) + log_(1 - xpc))[:, :, :, None]
    logdet = jax.scipy.special.logsumexp(
        logdet_[:, :, :, :, None] + logdet[:, :, None, :, :], axis=3)
    return xnew, logdet


if __name__ == "__main__":
    B, N = 2, 8
    in_dim, hidden_dim, out_dim = 4, 8, 4
    P = 3 * hidden_dim + in_dim

    key = jax.random.PRNGKey(0)
    k1, k2, k3, k4, k5 = jax.random.split(key, 5)
    u_param = jax.random.uniform(k1, (hidden_dim, in_dim), jnp.float32, -0.001, 0.001)
    w_param = jax.random.uniform(k2, (out_dim, hidden_dim), jnp.float32, -0.001, 0.001)
    dsparams = 0.5 * jax.random.normal(k3, (B, N, P), jnp.float32)
    x = jax.random.normal(k4, (B, in_dim), jnp.float32)
    logdet = 0.1 * jax.random.normal(k5, (B,), jnp.float32)

    xnew, ld_out = dense_sigmoid_flow(
        dsparams, x, logdet, u_param, w_param,
        in_dim=in_dim, hidden_dim=hidden_dim, out_dim=out_dim)
    jax.block_until_ready((xnew, ld_out))

    xnew_ref, ld_ref = reference_forward(
        dsparams, x, logdet, u_param, w_param,
        in_dim=in_dim, hidden_dim=hidden_dim, out_dim=out_dim)

    assert xnew.shape == (B, out_dim)
    assert ld_out.shape == (B, N, out_dim, 1)
    assert jnp.allclose(xnew, xnew_ref, rtol=2e-4, atol=2e-4), "xnew mismatch"
    assert jnp.allclose(ld_out, ld_ref, rtol=2e-4, atol=2e-4), "logdet mismatch"
    print("KERNEL_OK")
</pallas_src>

<mosaic_0001>
module attributes {stable_mosaic.version = 11 : i64} {
  func.func @_dsf_kernel(%arg0: i32, %arg1: memref<28x8x128xf32, #tpu.memory_space<vmem>>, %arg2: memref<4x128xf32, #tpu.memory_space<vmem>>, %arg3: memref<1x128xf32, #tpu.memory_space<vmem>>, %arg4: memref<4x8xf32, #tpu.memory_space<smem>>, %arg5: memref<8x4xf32, #tpu.memory_space<smem>>, %arg6: memref<4x128xf32, #tpu.memory_space<vmem>>, %arg7: memref<4x8x128xf32, #tpu.memory_space<vmem>>) attributes {dimension_semantics = [#tpu.dimension_semantics<parallel>], iteration_bounds = array<i64: 1>, scalar_prefetch = 0 : i64, scratch_operands = 0 : i64, tpu.core_type = #tpu.core_type<tc>, window_params = [{transform_indices = @transform_0, window_bounds = array<i64: 28, 8, 128>}, {transform_indices = @transform_1, window_bounds = array<i64: 4, 128>}, {transform_indices = @transform_2, window_bounds = array<i64: 1, 128>}, {transform_indices = @transform_3, window_bounds = array<i64: 4, 8>}, {transform_indices = @transform_4, window_bounds = array<i64: 8, 4>}, {transform_indices = @transform_5, window_bounds = array<i64: 4, 128>}, {transform_indices = @transform_6, window_bounds = array<i64: 4, 8, 128>}]} {
    %c0 = arith.constant 0 : index
    %c0_0 = arith.constant 0 : index
    %c0_1 = arith.constant 0 : index
    %0 = vector.load %arg1[%c0, %c0_0, %c0_1] : memref<28x8x128xf32, #tpu.memory_space<vmem>>, vector<8x8x128xf32>
    %c8 = arith.constant 8 : index
    %c0_2 = arith.constant 0 : index
    %c0_3 = arith.constant 0 : index
    %1 = vector.load %arg1[%c8, %c0_2, %c0_3] : memref<28x8x128xf32, #tpu.memory_space<vmem>>, vector<8x8x128xf32>
    %c16 = arith.constant 16 : index
    %c0_4 = arith.constant 0 : index
    %c0_5 = arith.constant 0 : index
    %2 = vector.load %arg1[%c16, %c0_4, %c0_5] : memref<28x8x128xf32, #tpu.memory_space<vmem>>, vector<8x8x128xf32>
    %c24 = arith.constant 24 : index
    %c0_6 = arith.constant 0 : index
    %c0_7 = arith.constant 0 : index
    %3 = vector.load %arg1[%c24, %c0_6, %c0_7] : memref<28x8x128xf32, #tpu.memory_space<vmem>>, vector<4x8x128xf32>
    %c0_8 = arith.constant 0 : index
    %c0_9 = arith.constant 0 : index
    %4 = vector.load %arg2[%c0_8, %c0_9] : memref<4x128xf32, #tpu.memory_space<vmem>>, vector<4x128xf32>
    %c0_10 = arith.constant 0 : index
    %c0_11 = arith.constant 0 : index
    %5 = vector.load %arg3[%c0_10, %c0_11] : memref<1x128xf32, #tpu.memory_space<vmem>>, vector<1x128xf32>
    %cst = arith.constant 0.541323245 : f32
    %6 = vector.broadcast %cst : f32 to vector<8x8x128xf32>
    %7 = arith.addf %0, %6 : vector<8x8x128xf32>
    %cst_12 = arith.constant 0.000000e+00 : f32
    %8 = vector.broadcast %cst_12 : f32 to vector<8x8x128xf32>
    %9 = arith.maximumf %7, %8 : vector<8x8x128xf32>
    %10 = math.absf %7 : vector<8x8x128xf32>
    %cst_13 = arith.constant 0.000000e+00 : f32
    %11 = vector.broadcast %cst_13 : f32 to vector<8x8x128xf32>
    %12 = arith.subf %11, %10 : vector<8x8x128xf32>
    %13 = math.exp %12 : vector<8x8x128xf32>
    %cst_14 = arith.constant 1.000000e+00 : f32
    %14 = vector.broadcast %cst_14 : f32 to vector<8x8x128xf32>
    %15 = arith.addf %14, %13 : vector<8x8x128xf32>
    %16 = math.log %15 : vector<8x8x128xf32>
    %17 = arith.addf %9, %16 : vector<8x8x128xf32>
    %cst_15 = arith.constant 9.99999997E-7 : f32
    %18 = vector.broadcast %cst_15 : f32 to vector<8x8x128xf32>
    %19 = arith.addf %17, %18 : vector<8x8x128xf32>
    %cst_16 = arith.constant 1.000000e+02 : f32
    %20 = vector.broadcast %cst_16 : f32 to vector<8x8x128xf32>
    %21 = arith.mulf %19, %20 : vector<8x8x128xf32>
    %22 = math.log %21 : vector<8x8x128xf32>
    %cst_17 = arith.constant 4.60517025 : f32
    %23 = vector.broadcast %cst_17 : f32 to vector<8x8x128xf32>
    %24 = arith.subf %22, %23 : vector<8x8x128xf32>
    %cst_18 = arith.constant dense<0xFF800000> : vector<8x128xf32>
    %25 = vector.multi_reduction <maximumf>, %3, %cst_18 [0] : vector<4x8x128xf32> to vector<8x128xf32>
    %26 = vector.shape_cast %25 : vector<8x128xf32> to vector<1x8x128xf32>
    %27 = vector.broadcast %26 : vector<1x8x128xf32> to vector<4x8x128xf32>
    %28 = arith.subf %3, %27 : vector<4x8x128xf32>
    %29 = math.exp %28 : vector<4x8x128xf32>
    %30 = vector.shape_cast %4 : vector<4x128xf32> to vector<4x1x128xf32>
    %31 = vector.broadcast %30 : vector<4x1x128xf32> to vector<4x8x128xf32>
    %32 = arith.mulf %29, %31 : vector<4x8x128xf32>
    %c0_19 = arith.constant 0 : index
    %c0_20 = arith.constant 0 : index
    %33 = memref.load %arg4[%c0_19, %c0_20] : memref<4x8xf32, #tpu.memory_space<smem>>
    %34 = vector.extract_strided_slice %29 {offsets = [0, 0, 0], sizes = [1, 8, 128], strides = [1, 1, 1]} : vector<4x8x128xf32> to vector<1x8x128xf32>
    %35 = vector.shape_cast %34 : vector<1x8x128xf32> to vector<8x128xf32>
    %36 = vector.broadcast %33 : f32 to vector<8x128xf32>
    %37 = arith.mulf %36, %35 : vector<8x128xf32>
    %c0_21 = arith.constant 0 : index
    %c0_22 = arith.constant 0 : index
    %38 = memref.load %arg4[%c0_21, %c0_22] : memref<4x8xf32, #tpu.memory_space<smem>>
    %39 = vector.extract_strided_slice %32 {offsets = [0, 0, 0], sizes = [1, 8, 128], strides = [1, 1, 1]} : vector<4x8x128xf32> to vector<1x8x128xf32>
    %40 = vector.shape_cast %39 : vector<1x8x128xf32> to vector<8x128xf32>
    %41 = vector.broadcast %38 : f32 to vector<8x128xf32>
    %42 = arith.mulf %41, %40 : vector<8x128xf32>
    %c1 = arith.constant 1 : index
    %c0_23 = arith.constant 0 : index
    %43 = memref.load %arg4[%c1, %c0_23] : memref<4x8xf32, #tpu.memory_space<smem>>
    %44 = vector.extract_strided_slice %29 {offsets = [1, 0, 0], sizes = [1, 8, 128], strides = [1, 1, 1]} : vector<4x8x128xf32> to vector<1x8x128xf32>
    %45 = vector.shape_cast %44 : vector<1x8x128xf32> to vector<8x128xf32>
    %46 = vector.broadcast %43 : f32 to vector<8x128xf32>
    %47 = arith.mulf %46, %45 : vector<8x128xf32>
    %48 = arith.addf %37, %47 : vector<8x128xf32>
    %49 = vector.extract_strided_slice %32 {offsets = [1, 0, 0], sizes = [1, 8, 128], strides = [1, 1, 1]} : vector<4x8x128xf32> to vector<1x8x128xf32>
    %50 = vector.shape_cast %49 : vector<1x8x128xf32> to vector<8x128xf32>
    %51 = vector.broadcast %43 : f32 to vector<8x128xf32>
    %52 = arith.mulf %51, %50 : vector<8x128xf32>
    %53 = arith.addf %42, %52 : vector<8x128xf32>
    %c2 = arith.constant 2 : index
    %c0_24 = arith.constant 0 : index
    %54 = memref.load %arg4[%c2, %c0_24] : memref<4x8xf32, #tpu.memory_space<smem>>
    %55 = vector.extract_strided_slice %29 {offsets = [2, 0, 0], sizes = [1, 8, 128], strides = [1, 1, 1]} : vector<4x8x128xf32> to vector<1x8x128xf32>
    %56 = vector.shape_cast %55 : vector<1x8x128xf32> to vector<8x128xf32>
    %57 = vector.broadcast %54 : f32 to vector<8x128xf32>
    %58 = arith.mulf %57, %56 : vector<8x128xf32>
    %59 = arith.addf %48, %58 : vector<8x128xf32>
    %60 = vector.extract_strided_slice %32 {offsets = [2, 0, 0], sizes = [1, 8, 128], strides = [1, 1, 1]} : vector<4x8x128xf32> to vector<1x8x128xf32>
    %61 = vector.shape_cast %60 : vector<1x8x128xf32> to vector<8x128xf32>
    %62 = vector.broadcast %54 : f32 to vector<8x128xf32>
    %63 = arith.mulf %62, %61 : vector<8x128xf32>
    %64 = arith.addf %53, %63 : vector<8x128xf32>
    %c3 = arith.constant 3 : index
    %c0_25 = arith.constant 0 : index
    %65 = memref.load %arg4[%c3, %c0_25] : memref<4x8xf32, #tpu.memory_space<smem>>
    %66 = vector.extract_strided_slice %29 {offsets = [3, 0, 0], sizes = [1, 8, 128], strides = [1, 1, 1]} : vector<4x8x128xf32> to vector<1x8x128xf32>
    %67 = vector.shape_cast %66 : vector<1x8x128xf32> to vector<8x128xf32>
    %68 = vector.broadcast %65 : f32 to vector<8x128xf32>
    %69 = arith.mulf %68, %67 : vector<8x128xf32>
    %70 = arith.addf %59, %69 : vector<8x128xf32>
    %71 = vector.extract_strided_slice %32 {offsets = [3, 0, 0], sizes = [1, 8, 128], strides = [1, 1, 1]} : vector<4x8x128xf32> to vector<1x8x128xf32>
    %72 = vector.shape_cast %71 : vector<1x8x128xf32> to vector<8x128xf32>
    %73 = vector.broadcast %65 : f32 to vector<8x128xf32>
    %74 = arith.mulf %73, %72 : vector<8x128xf32>
    %75 = arith.addf %64, %74 : vector<8x128xf32>
    %c0_26 = arith.constant 0 : index
    %c1_27 = arith.constant 1 : index
    %76 = memref.load %arg4[%c0_26, %c1_27] : memref<4x8xf32, #tpu.memory_space<smem>>
    %77 = vector.extract_strided_slice %29 {offsets = [0, 0, 0], sizes = [1, 8, 128], strides = [1, 1, 1]} : vector<4x8x128xf32> to vector<1x8x128xf32>
    %78 = vector.shape_cast %77 : vector<1x8x128xf32> to vector<8x128xf32>
    %79 = vector.broadcast %76 : f32 to vector<8x128xf32>
    %80 = arith.mulf %79, %78 : vector<8x128xf32>
    %c0_28 = arith.constant 0 : index
    %c1_29 = arith.constant 1 : index
    %81 = memref.load %arg4[%c0_28, %c1_29] : memref<4x8xf32, #tpu.memory_space<smem>>
    %82 = vector.extract_strided_slice %32 {offsets = [0, 0, 0], sizes = [1, 8, 128], strides = [1, 1, 1]} : vector<4x8x128xf32> to vector<1x8x128xf32>
    %83 = vector.shape_cast %82 : vector<1x8x128xf32> to vector<8x128xf32>
    %84 = vector.broadcast %81 : f32 to vector<8x128xf32>
    %85 = arith.mulf %84, %83 : vector<8x128xf32>
    %c1_30 = arith.constant 1 : index
    %c1_31 = arith.constant 1 : index
    %86 = memref.load %arg4[%c1_30, %c1_31] : memref<4x8xf32, #tpu.memory_space<smem>>
    %87 = vector.extract_strided_slice %29 {offsets = [1, 0, 0], sizes = [1, 8, 128], strides = [1, 1, 1]} : vector<4x8x128xf32> to vector<1x8x128xf32>
    %88 = vector.shape_cast %87 : vector<1x8x128xf32> to vector<8x128xf32>
    %89 = vector.broadcast %86 : f32 to vector<8x128xf32>
    %90 = arith.mulf %89, %88 : vector<8x128xf32>
    %91 = arith.addf %80, %90 : vector<8x128xf32>
    %92 = vector.extract_strided_slice %32 {offsets = [1, 0, 0], sizes = [1, 8, 128], strides = [1, 1, 1]} : vector<4x8x128xf32> to vector<1x8x128xf32>
    %93 = vector.shape_cast %92 : vector<1x8x128xf32> to vector<8x128xf32>
    %94 = vector.broadcast %86 : f32 to vector<8x128xf32>
    %95 = arith.mulf %94, %93 : vector<8x128xf32>
    %96 = arith.addf %85, %95 : vector<8x128xf32>
    %c2_32 = arith.constant 2 : index
    %c1_33 = arith.constant 1 : index
    %97 = memref.load %arg4[%c2_32, %c1_33] : memref<4x8xf32, #tpu.memory_space<smem>>
    %98 = vector.extract_strided_slice %29 {offsets = [2, 0, 0], sizes = [1, 8, 128], strides = [1, 1, 1]} : vector<4x8x128xf32> to vector<1x8x128xf32>
    %99 = vector.shape_cast %98 : vector<1x8x128xf32> to vector<8x128xf32>
    %100 = vector.broadcast %97 : f32 to vector<8x128xf32>
    %101 = arith.mulf %100, %99 : vector<8x128xf32>
    %102 = arith.addf %91, %101 : vector<8x128xf32>
    %103 = vector.extract_strided_slice %32 {offsets = [2, 0, 0], sizes = [1, 8, 128], strides = [1, 1, 1]} : vector<4x8x128xf32> to vector<1x8x128xf32>
    %104 = vector.shape_cast %103 : vector<1x8x128xf32> to vector<8x128xf32>
    %105 = vector.broadcast %97 : f32 to vector<8x128xf32>
    %106 = arith.mulf %105, %104 : vector<8x128xf32>
    %107 = arith.addf %96, %106 : vector<8x128xf32>
    %c3_34 = arith.constant 3 : index
    %c1_35 = arith.constant 1 : index
    %108 = memref.load %arg4[%c3_34, %c1_35] : memref<4x8xf32, #tpu.memory_space<smem>>
    %109 = vector.extract_strided_slice %29 {offsets = [3, 0, 0], sizes = [1, 8, 128], strides = [1, 1, 1]} : vector<4x8x128xf32> to vector<1x8x128xf32>
    %110 = vector.shape_cast %109 : vector<1x8x128xf32> to vector<8x128xf32>
    %111 = vector.broadcast %108 : f32 to vector<8x128xf32>
    %112 = arith.mulf %111, %110 : vector<8x128xf32>
    %113 = arith.addf %102, %112 : vector<8x128xf32>
    %114 = vector.extract_strided_slice %32 {offsets = [3, 0, 0], sizes = [1, 8, 128], strides = [1, 1, 1]} : vector<4x8x128xf32> to vector<1x8x128xf32>
    %115 = vector.shape_cast %114 : vector<1x8x128xf32> to vector<8x128xf32>
    %116 = vector.broadcast %108 : f32 to vector<8x128xf32>
    %117 = arith.mulf %116, %115 : vector<8x128xf32>
    %118 = arith.addf %107, %117 : vector<8x128xf32>
    %c0_36 = arith.constant 0 : index
    %c2_37 = arith.constant 2 : index
    %119 = memref.load %arg4[%c0_36, %c2_37] : memref<4x8xf32, #tpu.memory_space<smem>>
    %120 = vector.extract_strided_slice %29 {offsets = [0, 0, 0], sizes = [1, 8, 128], strides = [1, 1, 1]} : vector<4x8x128xf32> to vector<1x8x128xf32>
    %121 = vector.shape_cast %120 : vector<1x8x128xf32> to vector<8x128xf32>
    %122 = vector.broadcast %119 : f32 to vector<8x128xf32>
    %123 = arith.mulf %122, %121 : vector<8x128xf32>
    %c0_38 = arith.constant 0 : index
    %c2_39 = arith.constant 2 : index
    %124 = memref.load %arg4[%c0_38, %c2_39] : memref<4x8xf32, #tpu.memory_space<smem>>
    %125 = vector.extract_strided_slice %32 {offsets = [0, 0, 0], sizes = [1, 8, 128], strides = [1, 1, 1]} : vector<4x8x128xf32> to vector<1x8x128xf32>
    %126 = vector.shape_cast %125 : vector<1x8x128xf32> to vector<8x128xf32>
    %127 = vector.broadcast %124 : f32 to vector<8x128xf32>
    %128 = arith.mulf %127, %126 : vector<8x128xf32>
    %c1_40 = arith.constant 1 : index
    %c2_41 = arith.constant 2 : index
    %129 = memref.load %arg4[%c1_40, %c2_41] : memref<4x8xf32, #tpu.memory_space<smem>>
    %130 = vector.extract_strided_slice %29 {offsets = [1, 0, 0], sizes = [1, 8, 128], strides = [1, 1, 1]} : vector<4x8x128xf32> to vector<1x8x128xf32>
    %131 = vector.shape_cast %130 : vector<1x8x128xf32> to vector<8x128xf32>
    %132 = vector.broadcast %129 : f32 to vector<8x128xf32>
    %133 = arith.mulf %132, %131 : vector<8x128xf32>
    %134 = arith.addf %123, %133 : vector<8x128xf32>
    %135 = vector.extract_strided_slice %32 {offsets = [1, 0, 0], sizes = [1, 8, 128], strides = [1, 1, 1]} : vector<4x8x128xf32> to vector<1x8x128xf32>
    %136 = vector.shape_cast %135 : vector<1x8x128xf32> to vector<8x128xf32>
    %137 = vector.broadcast %129 : f32 to vector<8x128xf32>
    %138 = arith.mulf %137, %136 : vector<8x128xf32>
    %139 = arith.addf %128, %138 : vector<8x128xf32>
    %c2_42 = arith.constant 2 : index
    %c2_43 = arith.constant 2 : index
    %140 = memref.load %arg4[%c2_42, %c2_43] : memref<4x8xf32, #tpu.memory_space<smem>>
    %141 = vector.extract_strided_slice %29 {offsets = [2, 0, 0], sizes = [1, 8, 128], strides = [1, 1, 1]} : vector<4x8x128xf32> to vector<1x8x128xf32>
    %142 = vector.shape_cast %141 : vector<1x8x128xf32> to vector<8x128xf32>
    %143 = vector.broadcast %140 : f32 to vector<8x128xf32>
    %144 = arith.mulf %143, %142 : vector<8x128xf32>
    %145 = arith.addf %134, %144 : vector<8x128xf32>
    %146 = vector.extract_strided_slice %32 {offsets = [2, 0, 0], sizes = [1, 8, 128], strides = [1, 1, 1]} : vector<4x8x128xf32> to vector<1x8x128xf32>
    %147 = vector.shape_cast %146 : vector<1x8x128xf32> to vector<8x128xf32>
    %148 = vector.broadcast %140 : f32 to vector<8x128xf32>
    %149 = arith.mulf %148, %147 : vector<8x128xf32>
    %150 = arith.addf %139, %149 : vector<8x128xf32>
    %c3_44 = arith.constant 3 : index
    %c2_45 = arith.constant 2 : index
    %151 = memref.load %arg4[%c3_44, %c2_45] : memref<4x8xf32, #tpu.memory_space<smem>>
    %152 = vector.extract_strided_slice %29 {offsets = [3, 0, 0], sizes = [1, 8, 128], strides = [1, 1, 1]} : vector<4x8x128xf32> to vector<1x8x128xf32>
    %153 = vector.shape_cast %152 : vector<1x8x128xf32> to vector<8x128xf32>
    %154 = vector.broadcast %151 : f32 to vector<8x128xf32>
    %155 = arith.mulf %154, %153 : vector<8x128xf32>
    %156 = arith.addf %145, %155 : vector<8x128xf32>
    %157 = vector.extract_strided_slice %32 {offsets = [3, 0, 0], sizes = [1, 8, 128], strides = [1, 1, 1]} : vector<4x8x128xf32> to vector<1x8x128xf32>
    %158 = vector.shape_cast %157 : vector<1x8x128xf32> to vector<8x128xf32>
    %159 = vector.broadcast %151 : f32 to vector<8x128xf32>
    %160 = arith.mulf %159, %158 : vector<8x128xf32>
    %161 = arith.addf %150, %160 : vector<8x128xf32>
    %c0_46 = arith.constant 0 : index
    %c3_47 = arith.constant 3 : index
    %162 = memref.load %arg4[%c0_46, %c3_47] : memref<4x8xf32, #tpu.memory_space<smem>>
    %163 = vector.extract_strided_slice %29 {offsets = [0, 0, 0], sizes = [1, 8, 128], strides = [1, 1, 1]} : vector<4x8x128xf32> to vector<1x8x128xf32>
    %164 = vector.shape_cast %163 : vector<1x8x128xf32> to vector<8x128xf32>
    %165 = vector.broadcast %162 : f32 to vector<8x128xf32>
    %166 = arith.mulf %165, %164 : vector<8x128xf32>
    %c0_48 = arith.constant 0 : index
    %c3_49 = arith.constant 3 : index
    %167 = memref.load %arg4[%c0_48, %c3_49] : memref<4x8xf32, #tpu.memory_space<smem>>
    %168 = vector.extract_strided_slice %32 {offsets = [0, 0, 0], sizes = [1, 8, 128], strides = [1, 1, 1]} : vector<4x8x128xf32> to vector<1x8x128xf32>
    %169 = vector.shape_cast %168 : vector<1x8x128xf32> to vector<8x128xf32>
    %170 = vector.broadcast %167 : f32 to vector<8x128xf32>
    %171 = arith.mulf %170, %169 : vector<8x128xf32>
    %c1_50 = arith.constant 1 : index
    %c3_51 = arith.constant 3 : index
    %172 = memref.load %arg4[%c1_50, %c3_51] : memref<4x8xf32, #tpu.memory_space<smem>>
    %173 = vector.extract_strided_slice %29 {offsets = [1, 0, 0], sizes = [1, 8, 128], strides = [1, 1, 1]} : vector<4x8x128xf32> to vector<1x8x128xf32>
    %174 = vector.shape_cast %173 : vector<1x8x128xf32> to vector<8x128xf32>
    %175 = vector.broadcast %172 : f32 to vector<8x128xf32>
    %176 = arith.mulf %175, %174 : vector<8x128xf32>
    %177 = arith.addf %166, %176 : vector<8x128xf32>
    %178 = vector.extract_strided_slice %32 {offsets = [1, 0, 0], sizes = [1, 8, 128], strides = [1, 1, 1]} : vector<4x8x128xf32> to vector<1x8x128xf32>
    %179 = vector.shape_cast %178 : vector<1x8x128xf32> to vector<8x128xf32>
    %180 = vector.broadcast %172 : f32 to vector<8x128xf32>
    %181 = arith.mulf %180, %179 : vector<8x128xf32>
    %182 = arith.addf %171, %181 : vector<8x128xf32>
    %c2_52 = arith.constant 2 : index
    %c3_53 = arith.constant 3 : index
    %183 = memref.load %arg4[%c2_52, %c3_53] : memref<4x8xf32, #tpu.memory_space<smem>>
    %184 = vector.extract_strided_slice %29 {offsets = [2, 0, 0], sizes = [1, 8, 128], strides = [1, 1, 1]} : vector<4x8x128xf32> to vector<1x8x128xf32>
    %185 = vector.shape_cast %184 : vector<1x8x128xf32> to vector<8x128xf32>
    %186 = vector.broadcast %183 : f32 to vector<8x128xf32>
    %187 = arith.mulf %186, %185 : vector<8x128xf32>
    %188 = arith.addf %177, %187 : vector<8x128xf32>
    %189 = vector.extract_strided_slice %32 {offsets = [2, 0, 0], sizes = [1, 8, 128], strides = [1, 1, 1]} : vector<4x8x128xf32> to vector<1x8x128xf32>
    %190 = vector.shape_cast %189 : vector<1x8x128xf32> to vector<8x128xf32>
    %191 = vector.broadcast %183 : f32 to vector<8x128xf32>
    %192 = arith.mulf %191, %190 : vector<8x128xf32>
    %193 = arith.addf %182, %192 : vector<8x128xf32>
    %c3_54 = arith.constant 3 : index
    %c3_55 = arith.constant 3 : index
    %194 = memref.load %arg4[%c3_54, %c3_55] : memref<4x8xf32, #tpu.memory_space<smem>>
    %195 = vector.extract_strided_slice %29 {offsets = [3, 0, 0], sizes = [1, 8, 128], strides = [1, 1, 1]} : vector<4x8x128xf32> to vector<1x8x128xf32>
    %196 = vector.shape_cast %195 : vector<1x8x128xf32> to vector<8x128xf32>
    %197 = vector.broadcast %194 : f32 to vector<8x128xf32>
    %198 = arith.mulf %197, %196 : vector<8x128xf32>
    %199 = arith.addf %188, %198 : vector<8x128xf32>
    %200 = vector.extract_strided_slice %32 {offsets = [3, 0, 0], sizes = [1, 8, 128], strides = [1, 1, 1]} : vector<4x8x128xf32> to vector<1x8x128xf32>
    %201 = vector.shape_cast %200 : vector<1x8x128xf32> to vector<8x128xf32>
    %202 = vector.broadcast %194 : f32 to vector<8x128xf32>
    %203 = arith.mulf %202, %201 : vector<8x128xf32>
    %204 = arith.addf %193, %203 : vector<8x128xf32>
    %c0_56 = arith.constant 0 : index
    %c4 = arith.constant 4 : index
    %205 = memref.load %arg4[%c0_56, %c4] : memref<4x8xf32, #tpu.memory_space<smem>>
    %206 = vector.extract_strided_slice %29 {offsets = [0, 0, 0], sizes = [1, 8, 128], strides = [1, 1, 1]} : vector<4x8x128xf32> to vector<1x8x128xf32>
    %207 = vector.shape_cast %206 : vector<1x8x128xf32> to vector<8x128xf32>
    %208 = vector.broadcast %205 : f32 to vector<8x128xf32>
    %209 = arith.mulf %208, %207 : vector<8x128xf32>
    %c0_57 = arith.constant 0 : index
    %c4_58 = arith.constant 4 : index
    %210 = memref.load %arg4[%c0_57, %c4_58] : memref<4x8xf32, #tpu.memory_space<smem>>
    %211 = vector.extract_strided_slice %32 {offsets = [0, 0, 0], sizes = [1, 8, 128], strides = [1, 1, 1]} : vector<4x8x128xf32> to vector<1x8x128xf32>
    %212 = vector.shape_cast %211 : vector<1x8x128xf32> to vector<8x128xf32>
    %213 = vector.broadcast %210 : f32 to vector<8x128xf32>
    %214 = arith.mulf %213, %212 : vector<8x128xf32>
    %c1_59 = arith.constant 1 : index
    %c4_60 = arith.constant 4 : index
    %215 = memref.load %arg4[%c1_59, %c4_60] : memref<4x8xf32, #tpu.memory_space<smem>>
    %216 = vector.extract_strided_slice %29 {offsets = [1, 0, 0], sizes = [1, 8, 128], strides = [1, 1, 1]} : vector<4x8x128xf32> to vector<1x8x128xf32>
    %217 = vector.shape_cast %216 : vector<1x8x128xf32> to vector<8x128xf32>
    %218 = vector.broadcast %215 : f32 to vector<8x128xf32>
    %219 = arith.mulf %218, %217 : vector<8x128xf32>
    %220 = arith.addf %209, %219 : vector<8x128xf32>
    %221 = vector.extract_strided_slice %32 {offsets = [1, 0, 0], sizes = [1, 8, 128], strides = [1, 1, 1]} : vector<4x8x128xf32> to vector<1x8x128xf32>
    %222 = vector.shape_cast %221 : vector<1x8x128xf32> to vector<8x128xf32>
    %223 = vector.broadcast %215 : f32 to vector<8x128xf32>
    %224 = arith.mulf %223, %222 : vector<8x128xf32>
    %225 = arith.addf %214, %224 : vector<8x128xf32>
    %c2_61 = arith.constant 2 : index
    %c4_62 = arith.constant 4 : index
    %226 = memref.load %arg4[%c2_61, %c4_62] : memref<4x8xf32, #tpu.memory_space<smem>>
    %227 = vector.extract_strided_slice %29 {offsets = [2, 0, 0], sizes = [1, 8, 128], strides = [1, 1, 1]} : vector<4x8x128xf32> to vector<1x8x128xf32>
    %228 = vector.shape_cast %227 : vector<1x8x128xf32> to vector<8x128xf32>
    %229 = vector.broadcast %226 : f32 to vector<8x128xf32>
    %230 = arith.mulf %229, %228 : vector<8x128xf32>
    %231 = arith.addf %220, %230 : vector<8x128xf32>
    %232 = vector.extract_strided_slice %32 {offsets = [2, 0, 0], sizes = [1, 8, 128], strides = [1, 1, 1]} : vector<4x8x128xf32> to vector<1x8x128xf32>
    %233 = vector.shape_cast %232 : vector<1x8x128xf32> to vector<8x128xf32>
    %234 = vector.broadcast %226 : f32 to vector<8x128xf32>
    %235 = arith.mulf %234, %233 : vector<8x128xf32>
    %236 = arith.addf %225, %235 : vector<8x128xf32>
    %c3_63 = arith.constant 3 : index
    %c4_64 = arith.constant 4 : index
    %237 = memref.load %arg4[%c3_63, %c4_64] : memref<4x8xf32, #tpu.memory_space<smem>>
    %238 = vector.extract_strided_slice %29 {offsets = [3, 0, 0], sizes = [1, 8, 128], strides = [1, 1, 1]} : vector<4x8x128xf32> to vector<1x8x128xf32>
    %239 = vector.shape_cast %238 : vector<1x8x128xf32> to vector<8x128xf32>
    %240 = vector.broadcast %237 : f32 to vector<8x128xf32>
    %241 = arith.mulf %240, %239 : vector<8x128xf32>
    %242 = arith.addf %231, %241 : vector<8x128xf32>
    %243 = vector.extract_strided_slice %32 {offsets = [3, 0, 0], sizes = [1, 8, 128], strides = [1, 1, 1]} : vector<4x8x128xf32> to vector<1x8x128xf32>
    %244 = vector.shape_cast %243 : vector<1x8x128xf32> to vector<8x128xf32>
    %245 = vector.broadcast %237 : f32 to vector<8x128xf32>
    %246 = arith.mulf %245, %244 : vector<8x128xf32>
    %247 = arith.addf %236, %246 : vector<8x128xf32>
    %c0_65 = arith.constant 0 : index
    %c5 = arith.constant 5 : index
    %248 = memref.load %arg4[%c0_65, %c5] : memref<4x8xf32, #tpu.memory_space<smem>>
    %249 = vector.extract_strided_slice %29 {offsets = [0, 0, 0], sizes = [1, 8, 128], strides = [1, 1, 1]} : vector<4x8x128xf32> to vector<1x8x128xf32>
    %250 = vector.shape_cast %249 : vector<1x8x128xf32> to vector<8x128xf32>
    %251 = vector.broadcast %248 : f32 to vector<8x128xf32>
    %252 = arith.mulf %251, %250 : vector<8x128xf32>
    %c0_66 = arith.constant 0 : index
    %c5_67 = arith.constant 5 : index
    %253 = memref.load %arg4[%c0_66, %c5_67] : memref<4x8xf32, #tpu.memory_space<smem>>
    %254 = vector.extract_strided_slice %32 {offsets = [0, 0, 0], sizes = [1, 8, 128], strides = [1, 1, 1]} : vector<4x8x128xf32> to vector<1x8x128xf32>
    %255 = vector.shape_cast %254 : vector<1x8x128xf32> to vector<8x128xf32>
    %256 = vector.broadcast %253 : f32 to vector<8x128xf32>
    %257 = arith.mulf %256, %255 : vector<8x128xf32>
    %c1_68 = arith.constant 1 : index
    %c5_69 = arith.constant 5 : index
    %258 = memref.load %arg4[%c1_68, %c5_69] : memref<4x8xf32, #tpu.memory_space<smem>>
    %259 = vector.extract_strided_slice %29 {offsets = [1, 0, 0], sizes = [1, 8, 128], strides = [1, 1, 1]} : vector<4x8x128xf32> to vector<1x8x128xf32>
    %260 = vector.shape_cast %259 : vector<1x8x128xf32> to vector<8x128xf32>
    %261 = vector.broadcast %258 : f32 to vector<8x128xf32>
    %262 = arith.mulf %261, %260 : vector<8x128xf32>
    %263 = arith.addf %252, %262 : vector<8x128xf32>
    %264 = vector.extract_strided_slice %32 {offsets = [1, 0, 0], sizes = [1, 8, 128], strides = [1, 1, 1]} : vector<4x8x128xf32> to vector<1x8x128xf32>
    %265 = vector.shape_cast %264 : vector<1x8x128xf32> to vector<8x128xf32>
    %266 = vector.broadcast %258 : f32 to vector<8x128xf32>
    %267 = arith.mulf %266, %265 : vector<8x128xf32>
    %268 = arith.addf %257, %267 : vector<8x128xf32>
    %c2_70 = arith.constant 2 : index
    %c5_71 = arith.constant 5 : index
    %269 = memref.load %arg4[%c2_70, %c5_71] : memref<4x8xf32, #tpu.memory_space<smem>>
    %270 = vector.extract_strided_slice %29 {offsets = [2, 0, 0], sizes = [1, 8, 128], strides = [1, 1, 1]} : vector<4x8x128xf32> to vector<1x8x128xf32>
    %271 = vector.shape_cast %270 : vector<1x8x128xf32> to vector<8x128xf32>
    %272 = vector.broadcast %269 : f32 to vector<8x128xf32>
    %273 = arith.mulf %272, %271 : vector<8x128xf32>
    %274 = arith.addf %263, %273 : vector<8x128xf32>
    %275 = vector.extract_strided_slice %32 {offsets = [2, 0, 0], sizes = [1, 8, 128], strides = [1, 1, 1]} : vector<4x8x128xf32> to vector<1x8x128xf32>
    %276 = vector.shape_cast %275 : vector<1x8x128xf32> to vector<8x128xf32>
    %277 = vector.broadcast %269 : f32 to vector<8x128xf32>
    %278 = arith.mulf %277, %276 : vector<8x128xf32>
    %279 = arith.addf %268, %278 : vector<8x128xf32>
    %c3_72 = arith.constant 3 : index
    %c5_73 = arith.constant 5 : index
    %280 = memref.load %arg4[%c3_72, %c5_73] : memref<4x8xf32, #tpu.memory_space<smem>>
    %281 = vector.extract_strided_slice %29 {offsets = [3, 0, 0], sizes = [1, 8, 128], strides = [1, 1, 1]} : vector<4x8x128xf32> to vector<1x8x128xf32>
    %282 = vector.shape_cast %281 : vector<1x8x128xf32> to vector<8x128xf32>
    %283 = vector.broadcast %280 : f32 to vector<8x128xf32>
    %284 = arith.mulf %283, %282 : vector<8x128xf32>
    %285 = arith.addf %274, %284 : vector<8x128xf32>
    %286 = vector.extract_strided_slice %32 {offsets = [3, 0, 0], sizes = [1, 8, 128], strides = [1, 1, 1]} : vector<4x8x128xf32> to vector<1x8x128xf32>
    %287 = vector.shape_cast %286 : vector<1x8x128xf32> to vector<8x128xf32>
    %288 = vector.broadcast %280 : f32 to vector<8x128xf32>
    %289 = arith.mulf %288, %287 : vector<8x128xf32>
    %290 = arith.addf %279, %289 : vector<8x128xf32>
    %c0_74 = arith.constant 0 : index
    %c6 = arith.constant 6 : index
    %291 = memref.load %arg4[%c0_74, %c6] : memref<4x8xf32, #tpu.memory_space<smem>>
    %292 = vector.extract_strided_slice %29 {offsets = [0, 0, 0], sizes = [1, 8, 128], strides = [1, 1, 1]} : vector<4x8x128xf32> to vector<1x8x128xf32>
    %293 = vector.shape_cast %292 : vector<1x8x128xf32> to vector<8x128xf32>
    %294 = vector.broadcast %291 : f32 to vector<8x128xf32>
    %295 = arith.mulf %294, %293 : vector<8x128xf32>
    %c0_75 = arith.constant 0 : index
    %c6_76 = arith.constant 6 : index
    %296 = memref.load %arg4[%c0_75, %c6_76] : memref<4x8xf32, #tpu.memory_space<smem>>
    %297 = vector.extract_strided_slice %32 {offsets = [0, 0, 0], sizes = [1, 8, 128], strides = [1, 1, 1]} : vector<4x8x128xf32> to vector<1x8x128xf32>
    %298 = vector.shape_cast %297 : vector<1x8x128xf32> to vector<8x128xf32>
    %299 = vector.broadcast %296 : f32 to vector<8x128xf32>
    %300 = arith.mulf %299, %298 : vector<8x128xf32>
    %c1_77 = arith.constant 1 : index
    %c6_78 = arith.constant 6 : index
    %301 = memref.load %arg4[%c1_77, %c6_78] : memref<4x8xf32, #tpu.memory_space<smem>>
    %302 = vector.extract_strided_slice %29 {offsets = [1, 0, 0], sizes = [1, 8, 128], strides = [1, 1, 1]} : vector<4x8x128xf32> to vector<1x8x128xf32>
    %303 = vector.shape_cast %302 : vector<1x8x128xf32> to vector<8x128xf32>
    %304 = vector.broadcast %301 : f32 to vector<8x128xf32>
    %305 = arith.mulf %304, %303 : vector<8x128xf32>
    %306 = arith.addf %295, %305 : vector<8x128xf32>
    %307 = vector.extract_strided_slice %32 {offsets = [1, 0, 0], sizes = [1, 8, 128], strides = [1, 1, 1]} : vector<4x8x128xf32> to vector<1x8x128xf32>
    %308 = vector.shape_cast %307 : vector<1x8x128xf32> to vector<8x128xf32>
    %309 = vector.broadcast %301 : f32 to vector<8x128xf32>
    %310 = arith.mulf %309, %308 : vector<8x128xf32>
    %311 = arith.addf %300, %310 : vector<8x128xf32>
    %c2_79 = arith.constant 2 : index
    %c6_80 = arith.constant 6 : index
    %312 = memref.load %arg4[%c2_79, %c6_80] : memref<4x8xf32, #tpu.memory_space<smem>>
    %313 = vector.extract_strided_slice %29 {offsets = [2, 0, 0], sizes = [1, 8, 128], strides = [1, 1, 1]} : vector<4x8x128xf32> to vector<1x8x128xf32>
    %314 = vector.shape_cast %313 : vector<1x8x128xf32> to vector<8x128xf32>
    %315 = vector.broadcast %312 : f32 to vector<8x128xf32>
    %316 = arith.mulf %315, %314 : vector<8x128xf32>
    %317 = arith.addf %306, %316 : vector<8x128xf32>
    %318 = vector.extract_strided_slice %32 {offsets = [2, 0, 0], sizes = [1, 8, 128], strides = [1, 1, 1]} : vector<4x8x128xf32> to vector<1x8x128xf32>
    %319 = vector.shape_cast %318 : vector<1x8x128xf32> to vector<8x128xf32>
    %320 = vector.broadcast %312 : f32 to vector<8x128xf32>
    %321 = arith.mulf %320, %319 : vector<8x128xf32>
    %322 = arith.addf %311, %321 : vector<8x128xf32>
    %c3_81 = arith.constant 3 : index
    %c6_82 = arith.constant 6 : index
    %323 = memref.load %arg4[%c3_81, %c6_82] : memref<4x8xf32, #tpu.memory_space<smem>>
    %324 = vector.extract_strided_slice %29 {offsets = [3, 0, 0], sizes = [1, 8, 128], strides = [1, 1, 1]} : vector<4x8x128xf32> to vector<1x8x128xf32>
    %325 = vector.shape_cast %324 : vector<1x8x128xf32> to vector<8x128xf32>
    %326 = vector.broadcast %323 : f32 to vector<8x128xf32>
    %327 = arith.mulf %326, %325 : vector<8x128xf32>
    %328 = arith.addf %317, %327 : vector<8x128xf32>
    %329 = vector.extract_strided_slice %32 {offsets = [3, 0, 0], sizes = [1, 8, 128], strides = [1, 1, 1]} : vector<4x8x128xf32> to vector<1x8x128xf32>
    %330 = vector.shape_cast %329 : vector<1x8x128xf32> to vector<8x128xf32>
    %331 = vector.broadcast %323 : f32 to vector<8x128xf32>
    %332 = arith.mulf %331, %330 : vector<8x128xf32>
    %333 = arith.addf %322, %332 : vector<8x128xf32>
    %c0_83 = arith.constant 0 : index
    %c7 = arith.constant 7 : index
    %334 = memref.load %arg4[%c0_83, %c7] : memref<4x8xf32, #tpu.memory_space<smem>>
    %335 = vector.extract_strided_slice %29 {offsets = [0, 0, 0], sizes = [1, 8, 128], strides = [1, 1, 1]} : vector<4x8x128xf32> to vector<1x8x128xf32>
    %336 = vector.shape_cast %335 : vector<1x8x128xf32> to vector<8x128xf32>
    %337 = vector.broadcast %334 : f32 to vector<8x128xf32>
    %338 = arith.mulf %337, %336 : vector<8x128xf32>
    %c0_84 = arith.constant 0 : index
    %c7_85 = arith.constant 7 : index
    %339 = memref.load %arg4[%c0_84, %c7_85] : memref<4x8xf32, #tpu.memory_space<smem>>
    %340 = vector.extract_strided_slice %32 {offsets = [0, 0, 0], sizes = [1, 8, 128], strides = [1, 1, 1]} : vector<4x8x128xf32> to vector<1x8x128xf32>
    %341 = vector.shape_cast %340 : vector<1x8x128xf32> to vector<8x128xf32>
    %342 = vector.broadcast %339 : f32 to vector<8x128xf32>
    %343 = arith.mulf %342, %341 : vector<8x128xf32>
    %c1_86 = arith.constant 1 : index
    %c7_87 = arith.constant 7 : index
    %344 = memref.load %arg4[%c1_86, %c7_87] : memref<4x8xf32, #tpu.memory_space<smem>>
    %345 = vector.extract_strided_slice %29 {offsets = [1, 0, 0], sizes = [1, 8, 128], strides = [1, 1, 1]} : vector<4x8x128xf32> to vector<1x8x128xf32>
    %346 = vector.shape_cast %345 : vector<1x8x128xf32> to vector<8x128xf32>
    %347 = vector.broadcast %344 : f32 to vector<8x128xf32>
    %348 = arith.mulf %347, %346 : vector<8x128xf32>
    %349 = arith.addf %338, %348 : vector<8x128xf32>
    %350 = vector.extract_strided_slice %32 {offsets = [1, 0, 0], sizes = [1, 8, 128], strides = [1, 1, 1]} : vector<4x8x128xf32> to vector<1x8x128xf32>
    %351 = vector.shape_cast %350 : vector<1x8x128xf32> to vector<8x128xf32>
    %352 = vector.broadcast %344 : f32 to vector<8x128xf32>
    %353 = arith.mulf %352, %351 : vector<8x128xf32>
    %354 = arith.addf %343, %353 : vector<8x128xf32>
    %c2_88 = arith.constant 2 : index
    %c7_89 = arith.constant 7 : index
    %355 = memref.load %arg4[%c2_88, %c7_89] : memref<4x8xf32, #tpu.memory_space<smem>>
    %356 = vector.extract_strided_slice %29 {offsets = [2, 0, 0], sizes = [1, 8, 128], strides = [1, 1, 1]} : vector<4x8x128xf32> to vector<1x8x128xf32>
    %357 = vector.shape_cast %356 : vector<1x8x128xf32> to vector<8x128xf32>
    %358 = vector.broadcast %355 : f32 to vector<8x128xf32>
    %359 = arith.mulf %358, %357 : vector<8x128xf32>
    %360 = arith.addf %349, %359 : vector<8x128xf32>
    %361 = vector.extract_strided_slice %32 {offsets = [2, 0, 0], sizes = [1, 8, 128], strides = [1, 1, 1]} : vector<4x8x128xf32> to vector<1x8x128xf32>
    %362 = vector.shape_cast %361 : vector<1x8x128xf32> to vector<8x128xf32>
    %363 = vector.broadcast %355 : f32 to vector<8x128xf32>
    %364 = arith.mulf %363, %362 : vector<8x128xf32>
    %365 = arith.addf %354, %364 : vector<8x128xf32>
    %c3_90 = arith.constant 3 : index
    %c7_91 = arith.constant 7 : index
    %366 = memref.load %arg4[%c3_90, %c7_91] : memref<4x8xf32, #tpu.memory_space<smem>>
    %367 = vector.extract_strided_slice %29 {offsets = [3, 0, 0], sizes = [1, 8, 128], strides = [1, 1, 1]} : vector<4x8x128xf32> to vector<1x8x128xf32>
    %368 = vector.shape_cast %367 : vector<1x8x128xf32> to vector<8x128xf32>
    %369 = vector.broadcast %366 : f32 to vector<8x128xf32>
    %370 = arith.mulf %369, %368 : vector<8x128xf32>
    %371 = arith.addf %360, %370 : vector<8x128xf32>
    %372 = vector.extract_strided_slice %32 {offsets = [3, 0, 0], sizes = [1, 8, 128], strides = [1, 1, 1]} : vector<4x8x128xf32> to vector<1x8x128xf32>
    %373 = vector.shape_cast %372 : vector<1x8x128xf32> to vector<8x128xf32>
    %374 = vector.broadcast %366 : f32 to vector<8x128xf32>
    %375 = arith.mulf %374, %373 : vector<8x128xf32>
    %376 = arith.addf %365, %375 : vector<8x128xf32>
    %377 = vector.shape_cast %70 : vector<8x128xf32> to vector<1x8x128xf32>
    %378 = vector.shape_cast %113 : vector<8x128xf32> to vector<1x8x128xf32>
    %379 = vector.shape_cast %156 : vector<8x128xf32> to vector<1x8x128xf32>
    %380 = vector.shape_cast %199 : vector<8x128xf32> to vector<1x8x128xf32>
    %381 = vector.shape_cast %242 : vector<8x128xf32> to vector<1x8x128xf32>
    %382 = vector.shape_cast %285 : vector<8x128xf32> to vector<1x8x128xf32>
    %383 = vector.shape_cast %328 : vector<8x128xf32> to vector<1x8x128xf32>
    %384 = vector.shape_cast %371 : vector<8x128xf32> to vector<1x8x128xf32>
    %385 = tpu.concatenate %377, %378, %379, %380, %381, %382, %383, %384 in 0 : vector<1x8x128xf32>, vector<1x8x128xf32>, vector<1x8x128xf32>, vector<1x8x128xf32>, vector<1x8x128xf32>, vector<1x8x128xf32>, vector<1x8x128xf32>, vector<1x8x128xf32> -> vector<8x8x128xf32>
    %386 = vector.shape_cast %75 : vector<8x128xf32> to vector<1x8x128xf32>
    %387 = vector.shape_cast %118 : vector<8x128xf32> to vector<1x8x128xf32>
    %388 = vector.shape_cast %161 : vector<8x128xf32> to vector<1x8x128xf32>
    %389 = vector.shape_cast %204 : vector<8x128xf32> to vector<1x8x128xf32>
    %390 = vector.shape_cast %247 : vector<8x128xf32> to vector<1x8x128xf32>
    %391 = vector.shape_cast %290 : vector<8x128xf32> to vector<1x8x128xf32>
    %392 = vector.shape_cast %333 : vector<8x128xf32> to vector<1x8x128xf32>
    %393 = vector.shape_cast %376 : vector<8x128xf32> to vector<1x8x128xf32>
    %394 = tpu.concatenate %386, %387, %388, %389, %390, %391, %392, %393 in 0 : vector<1x8x128xf32>, vector<1x8x128xf32>, vector<1x8x128xf32>, vector<1x8x128xf32>, vector<1x8x128xf32>, vector<1x8x128xf32>, vector<1x8x128xf32>, vector<1x8x128xf32> -> vector<8x8x128xf32>
    %395 = arith.mulf %19, %394 : vector<8x8x128xf32>
    %396 = arith.divf %395, %385 : vector<8x8x128xf32>
    %397 = arith.addf %396, %1 : vector<8x8x128xf32>
    %cst_92 = arith.constant 0.000000e+00 : f32
    %398 = vector.broadcast %cst_92 : f32 to vector<8x8x128xf32>
    %399 = arith.subf %398, %397 : vector<8x8x128xf32>
    %cst_93 = arith.constant 0.000000e+00 : f32
    %400 = vector.broadcast %cst_93 : f32 to vector<8x8x128xf32>
    %401 = arith.maximumf %399, %400 : vector<8x8x128xf32>
    %402 = math.absf %399 : vector<8x8x128xf32>
    %cst_94 = arith.constant 0.000000e+00 : f32
    %403 = vector.broadcast %cst_94 : f32 to vector<8x8x128xf32>
    %404 = arith.subf %403, %402 : vector<8x8x128xf32>
    %405 = math.exp %404 : vector<8x8x128xf32>
    %cst_95 = arith.constant 1.000000e+00 : f32
    %406 = vector.broadcast %cst_95 : f32 to vector<8x8x128xf32>
    %407 = arith.addf %406, %405 : vector<8x8x128xf32>
    %408 = math.log %407 : vector<8x8x128xf32>
    %409 = arith.addf %401, %408 : vector<8x8x128xf32>
    %cst_96 = arith.constant 0.000000e+00 : f32
    %410 = vector.broadcast %cst_96 : f32 to vector<8x8x128xf32>
    %411 = arith.subf %410, %409 : vector<8x8x128xf32>
    %412 = math.exp %411 : vector<8x8x128xf32>
    %cst_97 = arith.constant 2.000000e+00 : f32
    %413 = vector.broadcast %cst_97 : f32 to vector<8x8x128xf32>
    %414 = arith.mulf %413, %409 : vector<8x8x128xf32>
    %415 = arith.addf %414, %397 : vector<8x8x128xf32>
    %416 = arith.subf %24, %415 : vector<8x8x128xf32>
    %cst_98 = arith.constant 2.000000e-06 : f32
    %417 = vector.broadcast %cst_98 : f32 to vector<8x8x128xf32>
    %418 = arith.addf %416, %417 : vector<8x8x128xf32>
    %cst_99 = arith.constant dense<0xFF800000> : vector<8x128xf32>
    %419 = vector.multi_reduction <maximumf>, %418, %cst_99 [0] : vector<8x8x128xf32> to vector<8x128xf32>
    %420 = vector.shape_cast %419 : vector<8x128xf32> to vector<1x8x128xf32>
    %421 = vector.broadcast %420 : vector<1x8x128xf32> to vector<8x8x128xf32>
    %422 = arith.subf %418, %421 : vector<8x8x128xf32>
    %423 = math.exp %422 : vector<8x8x128xf32>
    %cst_100 = arith.constant dense<0xFF800000> : vector<8x128xf32>
    %424 = vector.multi_reduction <maximumf>, %2, %cst_100 [0] : vector<8x8x128xf32> to vector<8x128xf32>
    %425 = vector.shape_cast %424 : vector<8x128xf32> to vector<1x8x128xf32>
    %426 = vector.broadcast %425 : vector<1x8x128xf32> to vector<8x8x128xf32>
    %427 = arith.subf %2, %426 : vector<8x8x128xf32>
    %428 = math.exp %427 : vector<8x8x128xf32>
    %429 = arith.mulf %428, %412 : vector<8x8x128xf32>
    %430 = arith.mulf %428, %423 : vector<8x8x128xf32>
    %c0_101 = arith.constant 0 : index
    %c0_102 = arith.constant 0 : index
    %431 = memref.load %arg5[%c0_101, %c0_102] : memref<8x4xf32, #tpu.memory_space<smem>>
    %432 = vector.extract_strided_slice %428 {offsets = [0, 0, 0], sizes = [1, 8, 128], strides = [1, 1, 1]} : vector<8x8x128xf32> to vector<1x8x128xf32>
    %433 = vector.shape_cast %432 : vector<1x8x128xf32> to vector<8x128xf32>
    %434 = vector.broadcast %431 : f32 to vector<8x128xf32>
    %435 = arith.mulf %434, %433 : vector<8x128xf32>
    %436 = vector.extract_strided_slice %429 {offsets = [0, 0, 0], sizes = [1, 8, 128], strides = [1, 1, 1]} : vector<8x8x128xf32> to vector<1x8x128xf32>
    %437 = vector.shape_cast %436 : vector<1x8x128xf32> to vector<8x128xf32>
    %438 = vector.broadcast %431 : f32 to vector<8x128xf32>
    %439 = arith.mulf %438, %437 : vector<8x128xf32>
    %440 = vector.extract_strided_slice %430 {offsets = [0, 0, 0], sizes = [1, 8, 128], strides = [1, 1, 1]} : vector<8x8x128xf32> to vector<1x8x128xf32>
    %441 = vector.shape_cast %440 : vector<1x8x128xf32> to vector<8x128xf32>
    %442 = vector.broadcast %431 : f32 to vector<8x128xf32>
    %443 = arith.mulf %442, %441 : vector<8x128xf32>
    %c1_103 = arith.constant 1 : index
    %c0_104 = arith.constant 0 : index
    %444 = memref.load %arg5[%c1_103, %c0_104] : memref<8x4xf32, #tpu.memory_space<smem>>
    %445 = vector.extract_strided_slice %428 {offsets = [1, 0, 0], sizes = [1, 8, 128], strides = [1, 1, 1]} : vector<8x8x128xf32> to vector<1x8x128xf32>
    %446 = vector.shape_cast %445 : vector<1x8x128xf32> to vector<8x128xf32>
    %447 = vector.broadcast %444 : f32 to vector<8x128xf32>
    %448 = arith.mulf %447, %446 : vector<8x128xf32>
    %449 = arith.addf %435, %448 : vector<8x128xf32>
    %450 = vector.extract_strided_slice %429 {offsets = [1, 0, 0], sizes = [1, 8, 128], strides = [1, 1, 1]} : vector<8x8x128xf32> to vector<1x8x128xf32>
    %451 = vector.shape_cast %450 : vector<1x8x128xf32> to vector<8x128xf32>
    %452 = vector.broadcast %444 : f32 to vector<8x128xf32>
    %453 = arith.mulf %452, %451 : vector<8x128xf32>
    %454 = arith.addf %439, %453 : vector<8x128xf32>
    %455 = vector.extract_strided_slice %430 {offsets = [1, 0, 0], sizes = [1, 8, 128], strides = [1, 1, 1]} : vector<8x8x128xf32> to vector<1x8x128xf32>
    %456 = vector.shape_cast %455 : vector<1x8x128xf32> to vector<8x128xf32>
    %457 = vector.broadcast %444 : f32 to vector<8x128xf32>
    %458 = arith.mulf %457, %456 : vector<8x128xf32>
    %459 = arith.addf %443, %458 : vector<8x128xf32>
    %c2_105 = arith.constant 2 : index
    %c0_106 = arith.constant 0 : index
    %460 = memref.load %arg5[%c2_105, %c0_106] : memref<8x4xf32, #tpu.memory_space<smem>>
    %461 = vector.extract_strided_slice %428 {offsets = [2, 0, 0], sizes = [1, 8, 128], strides = [1, 1, 1]} : vector<8x8x128xf32> to vector<1x8x128xf32>
    %462 = vector.shape_cast %461 : vector<1x8x128xf32> to vector<8x128xf32>
    %463 = vector.broadcast %460 : f32 to vector<8x128xf32>
    %464 = arith.mulf %463, %462 : vector<8x128xf32>
    %465 = arith.addf %449, %464 : vector<8x128xf32>
    %466 = vector.extract_strided_slice %429 {offsets = [2, 0, 0], sizes = [1, 8, 128], strides = [1, 1, 1]} : vector<8x8x128xf32> to vector<1x8x128xf32>
    %467 = vector.shape_cast %466 : vector<1x8x128xf32> to vector<8x128xf32>
    %468 = vector.broadcast %460 : f32 to vector<8x128xf32>
    %469 = arith.mulf %468, %467 : vector<8x128xf32>
    %470 = arith.addf %454, %469 : vector<8x128xf32>
    %471 = vector.extract_strided_slice %430 {offsets = [2, 0, 0], sizes = [1, 8, 128], strides = [1, 1, 1]} : vector<8x8x128xf32> to vector<1x8x128xf32>
    %472 = vector.shape_cast %471 : vector<1x8x128xf32> to vector<8x128xf32>
    %473 = vector.broadcast %460 : f32 to vector<8x128xf32>
    %474 = arith.mulf %473, %472 : vector<8x128xf32>
    %475 = arith.addf %459, %474 : vector<8x128xf32>
    %c3_107 = arith.constant 3 : index
    %c0_108 = arith.constant 0 : index
    %476 = memref.load %arg5[%c3_107, %c0_108] : memref<8x4xf32, #tpu.memory_space<smem>>
    %477 = vector.extract_strided_slice %428 {offsets = [3, 0, 0], sizes = [1, 8, 128], strides = [1, 1, 1]} : vector<8x8x128xf32> to vector<1x8x128xf32>
    %478 = vector.shape_cast %477 : vector<1x8x128xf32> to vector<8x128xf32>
    %479 = vector.broadcast %476 : f32 to vector<8x128xf32>
    %480 = arith.mulf %479, %478 : vector<8x128xf32>
    %481 = arith.addf %465, %480 : vector<8x128xf32>
    %482 = vector.extract_strided_slice %429 {offsets = [3, 0, 0], sizes = [1, 8, 128], strides = [1, 1, 1]} : vector<8x8x128xf32> to vector<1x8x128xf32>
    %483 = vector.shape_cast %482 : vector<1x8x128xf32> to vector<8x128xf32>
    %484 = vector.broadcast %476 : f32 to vector<8x128xf32>
    %485 = arith.mulf %484, %483 : vector<8x128xf32>
    %486 = arith.addf %470, %485 : vector<8x128xf32>
    %487 = vector.extract_strided_slice %430 {offsets = [3, 0, 0], sizes = [1, 8, 128], strides = [1, 1, 1]} : vector<8x8x128xf32> to vector<1x8x128xf32>
    %488 = vector.shape_cast %487 : vector<1x8x128xf32> to vector<8x128xf32>
    %489 = vector.broadcast %476 : f32 to vector<8x128xf32>
    %490 = arith.mulf %489, %488 : vector<8x128xf32>
    %491 = arith.addf %475, %490 : vector<8x128xf32>
    %c4_109 = arith.constant 4 : index
    %c0_110 = arith.constant 0 : index
    %492 = memref.load %arg5[%c4_109, %c0_110] : memref<8x4xf32, #tpu.memory_space<smem>>
    %493 = vector.extract_strided_slice %428 {offsets = [4, 0, 0], sizes = [1, 8, 128], strides = [1, 1, 1]} : vector<8x8x128xf32> to vector<1x8x128xf32>
    %494 = vector.shape_cast %493 : vector<1x8x128xf32> to vector<8x128xf32>
    %495 = vector.broadcast %492 : f32 to vector<8x128xf32>
    %496 = arith.mulf %495, %494 : vector<8x128xf32>
    %497 = arith.addf %481, %496 : vector<8x128xf32>
    %498 = vector.extract_strided_slice %429 {offsets = [4, 0, 0], sizes = [1, 8, 128], strides = [1, 1, 1]} : vector<8x8x128xf32> to vector<1x8x128xf32>
    %499 = vector.shape_cast %498 : vector<1x8x128xf32> to vector<8x128xf32>
    %500 = vector.broadcast %492 : f32 to vector<8x128xf32>
    %501 = arith.mulf %500, %499 : vector<8x128xf32>
    %502 = arith.addf %486, %501 : vector<8x128xf32>
    %503 = vector.extract_strided_slice %430 {offsets = [4, 0, 0], sizes = [1, 8, 128], strides = [1, 1, 1]} : vector<8x8x128xf32> to vector<1x8x128xf32>
    %504 = vector.shape_cast %503 : vector<1x8x128xf32> to vector<8x128xf32>
    %505 = vector.broadcast %492 : f32 to vector<8x128xf32>
    %506 = arith.mulf %505, %504 : vector<8x128xf32>
    %507 = arith.addf %491, %506 : vector<8x128xf32>
    %c5_111 = arith.constant 5 : index
    %c0_112 = arith.constant 0 : index
    %508 = memref.load %arg5[%c5_111, %c0_112] : memref<8x4xf32, #tpu.memory_space<smem>>
    %509 = vector.extract_strided_slice %428 {offsets = [5, 0, 0], sizes = [1, 8, 128], strides = [1, 1, 1]} : vector<8x8x128xf32> to vector<1x8x128xf32>
    %510 = vector.shape_cast %509 : vector<1x8x128xf32> to vector<8x128xf32>
    %511 = vector.broadcast %508 : f32 to vector<8x128xf32>
    %512 = arith.mulf %511, %510 : vector<8x128xf32>
    %513 = arith.addf %497, %512 : vector<8x128xf32>
    %514 = vector.extract_strided_slice %429 {offsets = [5, 0, 0], sizes = [1, 8, 128], strides = [1, 1, 1]} : vector<8x8x128xf32> to vector<1x8x128xf32>
    %515 = vector.shape_cast %514 : vector<1x8x128xf32> to vector<8x128xf32>
    %516 = vector.broadcast %508 : f32 to vector<8x128xf32>
    %517 = arith.mulf %516, %515 : vector<8x128xf32>
    %518 = arith.addf %502, %517 : vector<8x128xf32>
    %519 = vector.extract_strided_slice %430 {offsets = [5, 0, 0], sizes = [1, 8, 128], strides = [1, 1, 1]} : vector<8x8x128xf32> to vector<1x8x128xf32>
    %520 = vector.shape_cast %519 : vector<1x8x128xf32> to vector<8x128xf32>
    %521 = vector.broadcast %508 : f32 to vector<8x128xf32>
    %522 = arith.mulf %521, %520 : vector<8x128xf32>
    %523 = arith.addf %507, %522 : vector<8x128xf32>
    %c6_113 = arith.constant 6 : index
    %c0_114 = arith.constant 0 : index
    %524 = memref.load %arg5[%c6_113, %c0_114] : memref<8x4xf32, #tpu.memory_space<smem>>
    %525 = vector.extract_strided_slice %428 {offsets = [6, 0, 0], sizes = [1, 8, 128], strides = [1, 1, 1]} : vector<8x8x128xf32> to vector<1x8x128xf32>
    %526 = vector.shape_cast %525 : vector<1x8x128xf32> to vector<8x128xf32>
    %527 = vector.broadcast %524 : f32 to vector<8x128xf32>
    %528 = arith.mulf %527, %526 : vector<8x128xf32>
    %529 = arith.addf %513, %528 : vector<8x128xf32>
    %530 = vector.extract_strided_slice %429 {offsets = [6, 0, 0], sizes = [1, 8, 128], strides = [1, 1, 1]} : vector<8x8x128xf32> to vector<1x8x128xf32>
    %531 = vector.shape_cast %530 : vector<1x8x128xf32> to vector<8x128xf32>
    %532 = vector.broadcast %524 : f32 to vector<8x128xf32>
    %533 = arith.mulf %532, %531 : vector<8x128xf32>
    %534 = arith.addf %518, %533 : vector<8x128xf32>
    %535 = vector.extract_strided_slice %430 {offsets = [6, 0, 0], sizes = [1, 8, 128], strides = [1, 1, 1]} : vector<8x8x128xf32> to vector<1x8x128xf32>
    %536 = vector.shape_cast %535 : vector<1x8x128xf32> to vector<8x128xf32>
    %537 = vector.broadcast %524 : f32 to vector<8x128xf32>
    %538 = arith.mulf %537, %536 : vector<8x128xf32>
    %539 = arith.addf %523, %538 : vector<8x128xf32>
    %c7_115 = arith.constant 7 : index
    %c0_116 = arith.constant 0 : index
    %540 = memref.load %arg5[%c7_115, %c0_116] : memref<8x4xf32, #tpu.memory_space<smem>>
    %541 = vector.extract_strided_slice %428 {offsets = [7, 0, 0], sizes = [1, 8, 128], strides = [1, 1, 1]} : vector<8x8x128xf32> to vector<1x8x128xf32>
    %542 = vector.shape_cast %541 : vector<1x8x128xf32> to vector<8x128xf32>
    %543 = vector.broadcast %540 : f32 to vector<8x128xf32>
    %544 = arith.mulf %543, %542 : vector<8x128xf32>
    %545 = arith.addf %529, %544 : vector<8x128xf32>
    %546 = vector.extract_strided_slice %429 {offsets = [7, 0, 0], sizes = [1, 8, 128], strides = [1, 1, 1]} : vector<8x8x128xf32> to vector<1x8x128xf32>
    %547 = vector.shape_cast %546 : vector<1x8x128xf32> to vector<8x128xf32>
    %548 = vector.broadcast %540 : f32 to vector<8x128xf32>
    %549 = arith.mulf %548, %547 : vector<8x128xf32>
    %550 = arith.addf %534, %549 : vector<8x128xf32>
    %551 = vector.extract_strided_slice %430 {offsets = [7, 0, 0], sizes = [1, 8, 128], strides = [1, 1, 1]} : vector<8x8x128xf32> to vector<1x8x128xf32>
    %552 = vector.shape_cast %551 : vector<1x8x128xf32> to vector<8x128xf32>
    %553 = vector.broadcast %540 : f32 to vector<8x128xf32>
    %554 = arith.mulf %553, %552 : vector<8x128xf32>
    %555 = arith.addf %539, %554 : vector<8x128xf32>
    %c0_117 = arith.constant 0 : index
    %c1_118 = arith.constant 1 : index
    %556 = memref.load %arg5[%c0_117, %c1_118] : memref<8x4xf32, #tpu.memory_space<smem>>
    %557 = vector.extract_strided_slice %428 {offsets = [0, 0, 0], sizes = [1, 8, 128], strides = [1, 1, 1]} : vector<8x8x128xf32> to vector<1x8x128xf32>
    %558 = vector.shape_cast %557 : vector<1x8x128xf32> to vector<8x128xf32>
    %559 = vector.broadcast %556 : f32 to vector<8x128xf32>
    %560 = arith.mulf %559, %558 : vector<8x128xf32>
    %561 = vector.extract_strided_slice %429 {offsets = [0, 0, 0], sizes = [1, 8, 128], strides = [1, 1, 1]} : vector<8x8x128xf32> to vector<1x8x128xf32>
    %562 = vector.shape_cast %561 : vector<1x8x128xf32> to vector<8x128xf32>
    %563 = vector.broadcast %556 : f32 to vector<8x128xf32>
    %564 = arith.mulf %563, %562 : vector<8x128xf32>
    %565 = vector.extract_strided_slice %430 {offsets = [0, 0, 0], sizes = [1, 8, 128], strides = [1, 1, 1]} : vector<8x8x128xf32> to vector<1x8x128xf32>
    %566 = vector.shape_cast %565 : vector<1x8x128xf32> to vector<8x128xf32>
    %567 = vector.broadcast %556 : f32 to vector<8x128xf32>
    %568 = arith.mulf %567, %566 : vector<8x128xf32>
    %c1_119 = arith.constant 1 : index
    %c1_120 = arith.constant 1 : index
    %569 = memref.load %arg5[%c1_119, %c1_120] : memref<8x4xf32, #tpu.memory_space<smem>>
    %570 = vector.extract_strided_slice %428 {offsets = [1, 0, 0], sizes = [1, 8, 128], strides = [1, 1, 1]} : vector<8x8x128xf32> to vector<1x8x128xf32>
    %571 = vector.shape_cast %570 : vector<1x8x128xf32> to vector<8x128xf32>
    %572 = vector.broadcast %569 : f32 to vector<8x128xf32>
    %573 = arith.mulf %572, %571 : vector<8x128xf32>
    %574 = arith.addf %560, %573 : vector<8x128xf32>
    %575 = vector.extract_strided_slice %429 {offsets = [1, 0, 0], sizes = [1, 8, 128], strides = [1, 1, 1]} : vector<8x8x128xf32> to vector<1x8x128xf32>
    %576 = vector.shape_cast %575 : vector<1x8x128xf32> to vector<8x128xf32>
    %577 = vector.broadcast %569 : f32 to vector<8x128xf32>
    %578 = arith.mulf %577, %576 : vector<8x128xf32>
    %579 = arith.addf %564, %578 : vector<8x128xf32>
    %580 = vector.extract_strided_slice %430 {offsets = [1, 0, 0], sizes = [1, 8, 128], strides = [1, 1, 1]} : vector<8x8x128xf32> to vector<1x8x128xf32>
    %581 = vector.shape_cast %580 : vector<1x8x128xf32> to vector<8x128xf32>
    %582 = vector.broadcast %569 : f32 to vector<8x128xf32>
    %583 = arith.mulf %582, %581 : vector<8x128xf32>
    %584 = arith.addf %568, %583 : vector<8x128xf32>
    %c2_121 = arith.constant 2 : index
    %c1_122 = arith.constant 1 : index
    %585 = memref.load %arg5[%c2_121, %c1_122] : memref<8x4xf32, #tpu.memory_space<smem>>
    %586 = vector.extract_strided_slice %428 {offsets = [2, 0, 0], sizes = [1, 8, 128], strides = [1, 1, 1]} : vector<8x8x128xf32> to vector<1x8x128xf32>
    %587 = vector.shape_cast %586 : vector<1x8x128xf32> to vector<8x128xf32>
    %588 = vector.broadcast %585 : f32 to vector<8x128xf32>
    %589 = arith.mulf %588, %587 : vector<8x128xf32>
    %590 = arith.addf %574, %589 : vector<8x128xf32>
    %591 = vector.extract_strided_slice %429 {offsets = [2, 0, 0], sizes = [1, 8, 128], strides = [1, 1, 1]} : vector<8x8x128xf32> to vector<1x8x128xf32>
    %592 = vector.shape_cast %591 : vector<1x8x128xf32> to vector<8x128xf32>
    %593 = vector.broadcast %585 : f32 to vector<8x128xf32>
    %594 = arith.mulf %593, %592 : vector<8x128xf32>
    %595 = arith.addf %579, %594 : vector<8x128xf32>
    %596 = vector.extract_strided_slice %430 {offsets = [2, 0, 0], sizes = [1, 8, 128], strides = [1, 1, 1]} : vector<8x8x128xf32> to vector<1x8x128xf32>
    %597 = vector.shape_cast %596 : vector<1x8x128xf32> to vector<8x128xf32>
    %598 = vector.broadcast %585 : f32 to vector<8x128xf32>
    %599 = arith.mulf %598, %597 : vector<8x128xf32>
    %600 = arith.addf %584, %599 : vector<8x128xf32>
    %c3_123 = arith.constant 3 : index
    %c1_124 = arith.constant 1 : index
    %601 = memref.load %arg5[%c3_123, %c1_124] : memref<8x4xf32, #tpu.memory_space<smem>>
    %602 = vector.extract_strided_slice %428 {offsets = [3, 0, 0], sizes = [1, 8, 128], strides = [1, 1, 1]} : vector<8x8x128xf32> to vector<1x8x128xf32>
    %603 = vector.shape_cast %602 : vector<1x8x128xf32> to vector<8x128xf32>
    %604 = vector.broadcast %601 : f32 to vector<8x128xf32>
    %605 = arith.mulf %604, %603 : vector<8x128xf32>
    %606 = arith.addf %590, %605 : vector<8x128xf32>
    %607 = vector.extract_strided_slice %429 {offsets = [3, 0, 0], sizes = [1, 8, 128], strides = [1, 1, 1]} : vector<8x8x128xf32> to vector<1x8x128xf32>
    %608 = vector.shape_cast %607 : vector<1x8x128xf32> to vector<8x128xf32>
    %609 = vector.broadcast %601 : f32 to vector<8x128xf32>
    %610 = arith.mulf %609, %608 : vector<8x128xf32>
    %611 = arith.addf %595, %610 : vector<8x128xf32>
    %612 = vector.extract_strided_slice %430 {offsets = [3, 0, 0], sizes = [1, 8, 128], strides = [1, 1, 1]} : vector<8x8x128xf32> to vector<1x8x128xf32>
    %613 = vector.shape_cast %612 : vector<1x8x128xf32> to vector<8x128xf32>
    %614 = vector.broadcast %601 : f32 to vector<8x128xf32>
    %615 = arith.mulf %614, %613 : vector<8x128xf32>
    %616 = arith.addf %600, %615 : vector<8x128xf32>
    %c4_125 = arith.constant 4 : index
    %c1_126 = arith.constant 1 : index
    %617 = memref.load %arg5[%c4_125, %c1_126] : memref<8x4xf32, #tpu.memory_space<smem>>
    %618 = vector.extract_strided_slice %428 {offsets = [4, 0, 0], sizes = [1, 8, 128], strides = [1, 1, 1]} : vector<8x8x128xf32> to vector<1x8x128xf32>
    %619 = vector.shape_cast %618 : vector<1x8x128xf32> to vector<8x128xf32>
    %620 = vector.broadcast %617 : f32 to vector<8x128xf32>
    %621 = arith.mulf %620, %619 : vector<8x128xf32>
    %622 = arith.addf %606, %621 : vector<8x128xf32>
    %623 = vector.extract_strided_slice %429 {offsets = [4, 0, 0], sizes = [1, 8, 128], strides = [1, 1, 1]} : vector<8x8x128xf32> to vector<1x8x128xf32>
    %624 = vector.shape_cast %623 : vector<1x8x128xf32> to vector<8x128xf32>
    %625 = vector.broadcast %617 : f32 to vector<8x128xf32>
    %626 = arith.mulf %625, %624 : vector<8x128xf32>
    %627 = arith.addf %611, %626 : vector<8x128xf32>
    %628 = vector.extract_strided_slice %430 {offsets = [4, 0, 0], sizes = [1, 8, 128], strides = [1, 1, 1]} : vector<8x8x128xf32> to vector<1x8x128xf32>
    %629 = vector.shape_cast %628 : vector<1x8x128xf32> to vector<8x128xf32>
    %630 = vector.broadcast %617 : f32 to vector<8x128xf32>
    %631 = arith.mulf %630, %629 : vector<8x128xf32>
    %632 = arith.addf %616, %631 : vector<8x128xf32>
    %c5_127 = arith.constant 5 : index
    %c1_128 = arith.constant 1 : index
    %633 = memref.load %arg5[%c5_127, %c1_128] : memref<8x4xf32, #tpu.memory_space<smem>>
    %634 = vector.extract_strided_slice %428 {offsets = [5, 0, 0], sizes = [1, 8, 128], strides = [1, 1, 1]} : vector<8x8x128xf32> to vector<1x8x128xf32>
    %635 = vector.shape_cast %634 : vector<1x8x128xf32> to vector<8x128xf32>
    %636 = vector.broadcast %633 : f32 to vector<8x128xf32>
    %637 = arith.mulf %636, %635 : vector<8x128xf32>
    %638 = arith.addf %622, %637 : vector<8x128xf32>
    %639 = vector.extract_strided_slice %429 {offsets = [5, 0, 0], sizes = [1, 8, 128], strides = [1, 1, 1]} : vector<8x8x128xf32> to vector<1x8x128xf32>
    %640 = vector.shape_cast %639 : vector<1x8x128xf32> to vector<8x128xf32>
    %641 = vector.broadcast %633 : f32 to vector<8x128xf32>
    %642 = arith.mulf %641, %640 : vector<8x128xf32>
    %643 = arith.addf %627, %642 : vector<8x128xf32>
    %644 = vector.extract_strided_slice %430 {offsets = [5, 0, 0], sizes = [1, 8, 128], strides = [1, 1, 1]} : vector<8x8x128xf32> to vector<1x8x128xf32>
    %645 = vector.shape_cast %644 : vector<1x8x128xf32> to vector<8x128xf32>
    %646 = vector.broadcast %633 : f32 to vector<8x128xf32>
    %647 = arith.mulf %646, %645 : vector<8x128xf32>
    %648 = arith.addf %632, %647 : vector<8x128xf32>
    %c6_129 = arith.constant 6 : index
    %c1_130 = arith.constant 1 : index
    %649 = memref.load %arg5[%c6_129, %c1_130] : memref<8x4xf32, #tpu.memory_space<smem>>
    %650 = vector.extract_strided_slice %428 {offsets = [6, 0, 0], sizes = [1, 8, 128], strides = [1, 1, 1]} : vector<8x8x128xf32> to vector<1x8x128xf32>
    %651 = vector.shape_cast %650 : vector<1x8x128xf32> to vector<8x128xf32>
    %652 = vector.broadcast %649 : f32 to vector<8x128xf32>
    %653 = arith.mulf %652, %651 : vector<8x128xf32>
    %654 = arith.addf %638, %653 : vector<8x128xf32>
    %655 = vector.extract_strided_slice %429 {offsets = [6, 0, 0], sizes = [1, 8, 128], strides = [1, 1, 1]} : vector<8x8x128xf32> to vector<1x8x128xf32>
    %656 = vector.shape_cast %655 : vector<1x8x128xf32> to vector<8x128xf32>
    %657 = vector.broadcast %649 : f32 to vector<8x128xf32>
    %658 = arith.mulf %657, %656 : vector<8x128xf32>
    %659 = arith.addf %643, %658 : vector<8x128xf32>
    %660 = vector.extract_strided_slice %430 {offsets = [6, 0, 0], sizes = [1, 8, 128], strides = [1, 1, 1]} : vector<8x8x128xf32> to vector<1x8x128xf32>
    %661 = vector.shape_cast %660 : vector<1x8x128xf32> to vector<8x128xf32>
    %662 = vector.broadcast %649 : f32 to vector<8x128xf32>
    %663 = arith.mulf %662, %661 : vector<8x128xf32>
    %664 = arith.addf %648, %663 : vector<8x128xf32>
    %c7_131 = arith.constant 7 : index
    %c1_132 = arith.constant 1 : index
    %665 = memref.load %arg5[%c7_131, %c1_132] : memref<8x4xf32, #tpu.memory_space<smem>>
    %666 = vector.extract_strided_slice %428 {offsets = [7, 0, 0], sizes = [1, 8, 128], strides = [1, 1, 1]} : vector<8x8x128xf32> to vector<1x8x128xf32>
    %667 = vector.shape_cast %666 : vector<1x8x128xf32> to vector<8x128xf32>
    %668 = vector.broadcast %665 : f32 to vector<8x128xf32>
    %669 = arith.mulf %668, %667 : vector<8x128xf32>
    %670 = arith.addf %654, %669 : vector<8x128xf32>
    %671 = vector.extract_strided_slice %429 {offsets = [7, 0, 0], sizes = [1, 8, 128], strides = [1, 1, 1]} : vector<8x8x128xf32> to vector<1x8x128xf32>
    %672 = vector.shape_cast %671 : vector<1x8x128xf32> to vector<8x128xf32>
    %673 = vector.broadcast %665 : f32 to vector<8x128xf32>
    %674 = arith.mulf %673, %672 : vector<8x128xf32>
    %675 = arith.addf %659, %674 : vector<8x128xf32>
    %676 = vector.extract_strided_slice %430 {offsets = [7, 0, 0], sizes = [1, 8, 128], strides = [1, 1, 1]} : vector<8x8x128xf32> to vector<1x8x128xf32>
    %677 = vector.shape_cast %676 : vector<1x8x128xf32> to vector<8x128xf32>
    %678 = vector.broadcast %665 : f32 to vector<8x128xf32>
    %679 = arith.mulf %678, %677 : vector<8x128xf32>
    %680 = arith.addf %664, %679 : vector<8x128xf32>
    %c0_133 = arith.constant 0 : index
    %c2_134 = arith.constant 2 : index
    %681 = memref.load %arg5[%c0_133, %c2_134] : memref<8x4xf32, #tpu.memory_space<smem>>
    %682 = vector.extract_strided_slice %428 {offsets = [0, 0, 0], sizes = [1, 8, 128], strides = [1, 1, 1]} : vector<8x8x128xf32> to vector<1x8x128xf32>
    %683 = vector.shape_cast %682 : vector<1x8x128xf32> to vector<8x128xf32>
    %684 = vector.broadcast %681 : f32 to vector<8x128xf32>
    %685 = arith.mulf %684, %683 : vector<8x128xf32>
    %686 = vector.extract_strided_slice %429 {offsets = [0, 0, 0], sizes = [1, 8, 128], strides = [1, 1, 1]} : vector<8x8x128xf32> to vector<1x8x128xf32>
    %687 = vector.shape_cast %686 : vector<1x8x128xf32> to vector<8x128xf32>
    %688 = vector.broadcast %681 : f32 to vector<8x128xf32>
    %689 = arith.mulf %688, %687 : vector<8x128xf32>
    %690 = vector.extract_strided_slice %430 {offsets = [0, 0, 0], sizes = [1, 8, 128], strides = [1, 1, 1]} : vector<8x8x128xf32> to vector<1x8x128xf32>
    %691 = vector.shape_cast %690 : vector<1x8x128xf32> to vector<8x128xf32>
    %692 = vector.broadcast %681 : f32 to vector<8x128xf32>
    %693 = arith.mulf %692, %691 : vector<8x128xf32>
    %c1_135 = arith.constant 1 : index
    %c2_136 = arith.constant 2 : index
    %694 = memref.load %arg5[%c1_135, %c2_136] : memref<8x4xf32, #tpu.memory_space<smem>>
    %695 = vector.extract_strided_slice %428 {offsets = [1, 0, 0], sizes = [1, 8, 128], strides = [1, 1, 1]} : vector<8x8x128xf32> to vector<1x8x128xf32>
    %696 = vector.shape_cast %695 : vector<1x8x128xf32> to vector<8x128xf32>
    %697 = vector.broadcast %694 : f32 to vector<8x128xf32>
    %698 = arith.mulf %697, %696 : vector<8x128xf32>
    %699 = arith.addf %685, %698 : vector<8x128xf32>
    %700 = vector.extract_strided_slice %429 {offsets = [1, 0, 0], sizes = [1, 8, 128], strides = [1, 1, 1]} : vector<8x8x128xf32> to vector<1x8x128xf32>
    %701 = vector.shape_cast %700 : vector<1x8x128xf32> to vector<8x128xf32>
    %702 = vector.broadcast %694 : f32 to vector<8x128xf32>
    %703 = arith.mulf %702, %701 : vector<8x128xf32>
    %704 = arith.addf %689, %703 : vector<8x128xf32>
    %705 = vector.extract_strided_slice %430 {offsets = [1, 0, 0], sizes = [1, 8, 128], strides = [1, 1, 1]} : vector<8x8x128xf32> to vector<1x8x128xf32>
    %706 = vector.shape_cast %705 : vector<1x8x128xf32> to vector<8x128xf32>
    %707 = vector.broadcast %694 : f32 to vector<8x128xf32>
    %708 = arith.mulf %707, %706 : vector<8x128xf32>
    %709 = arith.addf %693, %708 : vector<8x128xf32>
    %c2_137 = arith.constant 2 : index
    %c2_138 = arith.constant 2 : index
    %710 = memref.load %arg5[%c2_137, %c2_138] : memref<8x4xf32, #tpu.memory_space<smem>>
    %711 = vector.extract_strided_slice %428 {offsets = [2, 0, 0], sizes = [1, 8, 128], strides = [1, 1, 1]} : vector<8x8x128xf32> to vector<1x8x128xf32>
    %712 = vector.shape_cast %711 : vector<1x8x128xf32> to vector<8x128xf32>
    %713 = vector.broadcast %710 : f32 to vector<8x128xf32>
    %714 = arith.mulf %713, %712 : vector<8x128xf32>
    %715 = arith.addf %699, %714 : vector<8x128xf32>
    %716 = vector.extract_strided_slice %429 {offsets = [2, 0, 0], sizes = [1, 8, 128], strides = [1, 1, 1]} : vector<8x8x128xf32> to vector<1x8x128xf32>
    %717 = vector.shape_cast %716 : vector<1x8x128xf32> to vector<8x128xf32>
    %718 = vector.broadcast %710 : f32 to vector<8x128xf32>
    %719 = arith.mulf %718, %717 : vector<8x128xf32>
    %720 = arith.addf %704, %719 : vector<8x128xf32>
    %721 = vector.extract_strided_slice %430 {offsets = [2, 0, 0], sizes = [1, 8, 128], strides = [1, 1, 1]} : vector<8x8x128xf32> to vector<1x8x128xf32>
    %722 = vector.shape_cast %721 : vector<1x8x128xf32> to vector<8x128xf32>
    %723 = vector.broadcast %710 : f32 to vector<8x128xf32>
    %724 = arith.mulf %723, %722 : vector<8x128xf32>
    %725 = arith.addf %709, %724 : vector<8x128xf32>
    %c3_139 = arith.constant 3 : index
    %c2_140 = arith.constant 2 : index
    %726 = memref.load %arg5[%c3_139, %c2_140] : memref<8x4xf32, #tpu.memory_space<smem>>
    %727 = vector.extract_strided_slice %428 {offsets = [3, 0, 0], sizes = [1, 8, 128], strides = [1, 1, 1]} : vector<8x8x128xf32> to vector<1x8x128xf32>
    %728 = vector.shape_cast %727 : vector<1x8x128xf32> to vector<8x128xf32>
    %729 = vector.broadcast %726 : f32 to vector<8x128xf32>
    %730 = arith.mulf %729, %728 : vector<8x128xf32>
    %731 = arith.addf %715, %730 : vector<8x128xf32>
    %732 = vector.extract_strided_slice %429 {offsets = [3, 0, 0], sizes = [1, 8, 128], strides = [1, 1, 1]} : vector<8x8x128xf32> to vector<1x8x128xf32>
    %733 = vector.shape_cast %732 : vector<1x8x128xf32> to vector<8x128xf32>
    %734 = vector.broadcast %726 : f32 to vector<8x128xf32>
    %735 = arith.mulf %734, %733 : vector<8x128xf32>
    %736 = arith.addf %720, %735 : vector<8x128xf32>
    %737 = vector.extract_strided_slice %430 {offsets = [3, 0, 0], sizes = [1, 8, 128], strides = [1, 1, 1]} : vector<8x8x128xf32> to vector<1x8x128xf32>
    %738 = vector.shape_cast %737 : vector<1x8x128xf32> to vector<8x128xf32>
    %739 = vector.broadcast %726 : f32 to vector<8x128xf32>
    %740 = arith.mulf %739, %738 : vector<8x128xf32>
    %741 = arith.addf %725, %740 : vector<8x128xf32>
    %c4_141 = arith.constant 4 : index
    %c2_142 = arith.constant 2 : index
    %742 = memref.load %arg5[%c4_141, %c2_142] : memref<8x4xf32, #tpu.memory_space<smem>>
    %743 = vector.extract_strided_slice %428 {offsets = [4, 0, 0], sizes = [1, 8, 128], strides = [1, 1, 1]} : vector<8x8x128xf32> to vector<1x8x128xf32>
    %744 = vector.shape_cast %743 : vector<1x8x128xf32> to vector<8x128xf32>
    %745 = vector.broadcast %742 : f32 to vector<8x128xf32>
    %746 = arith.mulf %745, %744 : vector<8x128xf32>
    %747 = arith.addf %731, %746 : vector<8x128xf32>
    %748 = vector.extract_strided_slice %429 {offsets = [4, 0, 0], sizes = [1, 8, 128], strides = [1, 1, 1]} : vector<8x8x128xf32> to vector<1x8x128xf32>
    %749 = vector.shape_cast %748 : vector<1x8x128xf32> to vector<8x128xf32>
    %750 = vector.broadcast %742 : f32 to vector<8x128xf32>
    %751 = arith.mulf %750, %749 : vector<8x128xf32>
    %752 = arith.addf %736, %751 : vector<8x128xf32>
    %753 = vector.extract_strided_slice %430 {offsets = [4, 0, 0], sizes = [1, 8, 128], strides = [1, 1, 1]} : vector<8x8x128xf32> to vector<1x8x128xf32>
    %754 = vector.shape_cast %753 : vector<1x8x128xf32> to vector<8x128xf32>
    %755 = vector.broadcast %742 : f32 to vector<8x128xf32>
    %756 = arith.mulf %755, %754 : vector<8x128xf32>
    %757 = arith.addf %741, %756 : vector<8x128xf32>
    %c5_143 = arith.constant 5 : index
    %c2_144 = arith.constant 2 : index
    %758 = memref.load %arg5[%c5_143, %c2_144] : memref<8x4xf32, #tpu.memory_space<smem>>
    %759 = vector.extract_strided_slice %428 {offsets = [5, 0, 0], sizes = [1, 8, 128], strides = [1, 1, 1]} : vector<8x8x128xf32> to vector<1x8x128xf32>
    %760 = vector.shape_cast %759 : vector<1x8x128xf32> to vector<8x128xf32>
    %761 = vector.broadcast %758 : f32 to vector<8x128xf32>
    %762 = arith.mulf %761, %760 : vector<8x128xf32>
    %763 = arith.addf %747, %762 : vector<8x128xf32>
    %764 = vector.extract_strided_slice %429 {offsets = [5, 0, 0], sizes = [1, 8, 128], strides = [1, 1, 1]} : vector<8x8x128xf32> to vector<1x8x128xf32>
    %765 = vector.shape_cast %764 : vector<1x8x128xf32> to vector<8x128xf32>
    %766 = vector.broadcast %758 : f32 to vector<8x128xf32>
    %767 = arith.mulf %766, %765 : vector<8x128xf32>
    %768 = arith.addf %752, %767 : vector<8x128xf32>
    %769 = vector.extract_strided_slice %430 {offsets = [5, 0, 0], sizes = [1, 8, 128], strides = [1, 1, 1]} : vector<8x8x128xf32> to vector<1x8x128xf32>
    %770 = vector.shape_cast %769 : vector<1x8x128xf32> to vector<8x128xf32>
    %771 = vector.broadcast %758 : f32 to vector<8x128xf32>
    %772 = arith.mulf %771, %770 : vector<8x128xf32>
    %773 = arith.addf %757, %772 : vector<8x128xf32>
    %c6_145 = arith.constant 6 : index
    %c2_146 = arith.constant 2 : index
    %774 = memref.load %arg5[%c6_145, %c2_146] : memref<8x4xf32, #tpu.memory_space<smem>>
    %775 = vector.extract_strided_slice %428 {offsets = [6, 0, 0], sizes = [1, 8, 128], strides = [1, 1, 1]} : vector<8x8x128xf32> to vector<1x8x128xf32>
    %776 = vector.shape_cast %775 : vector<1x8x128xf32> to vector<8x128xf32>
    %777 = vector.broadcast %774 : f32 to vector<8x128xf32>
    %778 = arith.mulf %777, %776 : vector<8x128xf32>
    %779 = arith.addf %763, %778 : vector<8x128xf32>
    %780 = vector.extract_strided_slice %429 {offsets = [6, 0, 0], sizes = [1, 8, 128], strides = [1, 1, 1]} : vector<8x8x128xf32> to vector<1x8x128xf32>
    %781 = vector.shape_cast %780 : vector<1x8x128xf32> to vector<8x128xf32>
    %782 = vector.broadcast %774 : f32 to vector<8x128xf32>
    %783 = arith.mulf %782, %781 : vector<8x128xf32>
    %784 = arith.addf %768, %783 : vector<8x128xf32>
    %785 = vector.extract_strided_slice %430 {offsets = [6, 0, 0], sizes = [1, 8, 128], strides = [1, 1, 1]} : vector<8x8x128xf32> to vector<1x8x128xf32>
    %786 = vector.shape_cast %785 : vector<1x8x128xf32> to vector<8x128xf32>
    %787 = vector.broadcast %774 : f32 to vector<8x128xf32>
    %788 = arith.mulf %787, %786 : vector<8x128xf32>
    %789 = arith.addf %773, %788 : vector<8x128xf32>
    %c7_147 = arith.constant 7 : index
    %c2_148 = arith.constant 2 : index
    %790 = memref.load %arg5[%c7_147, %c2_148] : memref<8x4xf32, #tpu.memory_space<smem>>
    %791 = vector.extract_strided_slice %428 {offsets = [7, 0, 0], sizes = [1, 8, 128], strides = [1, 1, 1]} : vector<8x8x128xf32> to vector<1x8x128xf32>
    %792 = vector.shape_cast %791 : vector<1x8x128xf32> to vector<8x128xf32>
    %793 = vector.broadcast %790 : f32 to vector<8x128xf32>
    %794 = arith.mulf %793, %792 : vector<8x128xf32>
    %795 = arith.addf %779, %794 : vector<8x128xf32>
    %796 = vector.extract_strided_slice %429 {offsets = [7, 0, 0], sizes = [1, 8, 128], strides = [1, 1, 1]} : vector<8x8x128xf32> to vector<1x8x128xf32>
    %797 = vector.shape_cast %796 : vector<1x8x128xf32> to vector<8x128xf32>
    %798 = vector.broadcast %790 : f32 to vector<8x128xf32>
    %799 = arith.mulf %798, %797 : vector<8x128xf32>
    %800 = arith.addf %784, %799 : vector<8x128xf32>
    %801 = vector.extract_strided_slice %430 {offsets = [7, 0, 0], sizes = [1, 8, 128], strides = [1, 1, 1]} : vector<8x8x128xf32> to vector<1x8x128xf32>
    %802 = vector.shape_cast %801 : vector<1x8x128xf32> to vector<8x128xf32>
    %803 = vector.broadcast %790 : f32 to vector<8x128xf32>
    %804 = arith.mulf %803, %802 : vector<8x128xf32>
    %805 = arith.addf %789, %804 : vector<8x128xf32>
    %c0_149 = arith.constant 0 : index
    %c3_150 = arith.constant 3 : index
    %806 = memref.load %arg5[%c0_149, %c3_150] : memref<8x4xf32, #tpu.memory_space<smem>>
    %807 = vector.extract_strided_slice %428 {offsets = [0, 0, 0], sizes = [1, 8, 128], strides = [1, 1, 1]} : vector<8x8x128xf32> to vector<1x8x128xf32>
    %808 = vector.shape_cast %807 : vector<1x8x128xf32> to vector<8x128xf32>
    %809 = vector.broadcast %806 : f32 to vector<8x128xf32>
    %810 = arith.mulf %809, %808 : vector<8x128xf32>
    %811 = vector.extract_strided_slice %429 {offsets = [0, 0, 0], sizes = [1, 8, 128], strides = [1, 1, 1]} : vector<8x8x128xf32> to vector<1x8x128xf32>
    %812 = vector.shape_cast %811 : vector<1x8x128xf32> to vector<8x128xf32>
    %813 = vector.broadcast %806 : f32 to vector<8x128xf32>
    %814 = arith.mulf %813, %812 : vector<8x128xf32>
    %815 = vector.extract_strided_slice %430 {offsets = [0, 0, 0], sizes = [1, 8, 128], strides = [1, 1, 1]} : vector<8x8x128xf32> to vector<1x8x128xf32>
    %816 = vector.shape_cast %815 : vector<1x8x128xf32> to vector<8x128xf32>
    %817 = vector.broadcast %806 : f32 to vector<8x128xf32>
    %818 = arith.mulf %817, %816 : vector<8x128xf32>
    %c1_151 = arith.constant 1 : index
    %c3_152 = arith.constant 3 : index
    %819 = memref.load %arg5[%c1_151, %c3_152] : memref<8x4xf32, #tpu.memory_space<smem>>
    %820 = vector.extract_strided_slice %428 {offsets = [1, 0, 0], sizes = [1, 8, 128], strides = [1, 1, 1]} : vector<8x8x128xf32> to vector<1x8x128xf32>
    %821 = vector.shape_cast %820 : vector<1x8x128xf32> to vector<8x128xf32>
    %822 = vector.broadcast %819 : f32 to vector<8x128xf32>
    %823 = arith.mulf %822, %821 : vector<8x128xf32>
    %824 = arith.addf %810, %823 : vector<8x128xf32>
    %825 = vector.extract_strided_slice %429 {offsets = [1, 0, 0], sizes = [1, 8, 128], strides = [1, 1, 1]} : vector<8x8x128xf32> to vector<1x8x128xf32>
    %826 = vector.shape_cast %825 : vector<1x8x128xf32> to vector<8x128xf32>
    %827 = vector.broadcast %819 : f32 to vector<8x128xf32>
    %828 = arith.mulf %827, %826 : vector<8x128xf32>
    %829 = arith.addf %814, %828 : vector<8x128xf32>
    %830 = vector.extract_strided_slice %430 {offsets = [1, 0, 0], sizes = [1, 8, 128], strides = [1, 1, 1]} : vector<8x8x128xf32> to vector<1x8x128xf32>
    %831 = vector.shape_cast %830 : vector<1x8x128xf32> to vector<8x128xf32>
    %832 = vector.broadcast %819 : f32 to vector<8x128xf32>
    %833 = arith.mulf %832, %831 : vector<8x128xf32>
    %834 = arith.addf %818, %833 : vector<8x128xf32>
    %c2_153 = arith.constant 2 : index
    %c3_154 = arith.constant 3 : index
    %835 = memref.load %arg5[%c2_153, %c3_154] : memref<8x4xf32, #tpu.memory_space<smem>>
    %836 = vector.extract_strided_slice %428 {offsets = [2, 0, 0], sizes = [1, 8, 128], strides = [1, 1, 1]} : vector<8x8x128xf32> to vector<1x8x128xf32>
    %837 = vector.shape_cast %836 : vector<1x8x128xf32> to vector<8x128xf32>
    %838 = vector.broadcast %835 : f32 to vector<8x128xf32>
    %839 = arith.mulf %838, %837 : vector<8x128xf32>
    %840 = arith.addf %824, %839 : vector<8x128xf32>
    %841 = vector.extract_strided_slice %429 {offsets = [2, 0, 0], sizes = [1, 8, 128], strides = [1, 1, 1]} : vector<8x8x128xf32> to vector<1x8x128xf32>
    %842 = vector.shape_cast %841 : vector<1x8x128xf32> to vector<8x128xf32>
    %843 = vector.broadcast %835 : f32 to vector<8x128xf32>
    %844 = arith.mulf %843, %842 : vector<8x128xf32>
    %845 = arith.addf %829, %844 : vector<8x128xf32>
    %846 = vector.extract_strided_slice %430 {offsets = [2, 0, 0], sizes = [1, 8, 128], strides = [1, 1, 1]} : vector<8x8x128xf32> to vector<1x8x128xf32>
    %847 = vector.shape_cast %846 : vector<1x8x128xf32> to vector<8x128xf32>
    %848 = vector.broadcast %835 : f32 to vector<8x128xf32>
    %849 = arith.mulf %848, %847 : vector<8x128xf32>
    %850 = arith.addf %834, %849 : vector<8x128xf32>
    %c3_155 = arith.constant 3 : index
    %c3_156 = arith.constant 3 : index
    %851 = memref.load %arg5[%c3_155, %c3_156] : memref<8x4xf32, #tpu.memory_space<smem>>
    %852 = vector.extract_strided_slice %428 {offsets = [3, 0, 0], sizes = [1, 8, 128], strides = [1, 1, 1]} : vector<8x8x128xf32> to vector<1x8x128xf32>
    %853 = vector.shape_cast %852 : vector<1x8x128xf32> to vector<8x128xf32>
    %854 = vector.broadcast %851 : f32 to vector<8x128xf32>
    %855 = arith.mulf %854, %853 : vector<8x128xf32>
    %856 = arith.addf %840, %855 : vector<8x128xf32>
    %857 = vector.extract_strided_slice %429 {offsets = [3, 0, 0], sizes = [1, 8, 128], strides = [1, 1, 1]} : vector<8x8x128xf32> to vector<1x8x128xf32>
    %858 = vector.shape_cast %857 : vector<1x8x128xf32> to vector<8x128xf32>
    %859 = vector.broadcast %851 : f32 to vector<8x128xf32>
    %860 = arith.mulf %859, %858 : vector<8x128xf32>
    %861 = arith.addf %845, %860 : vector<8x128xf32>
    %862 = vector.extract_strided_slice %430 {offsets = [3, 0, 0], sizes = [1, 8, 128], strides = [1, 1, 1]} : vector<8x8x128xf32> to vector<1x8x128xf32>
    %863 = vector.shape_cast %862 : vector<1x8x128xf32> to vector<8x128xf32>
    %864 = vector.broadcast %851 : f32 to vector<8x128xf32>
    %865 = arith.mulf %864, %863 : vector<8x128xf32>
    %866 = arith.addf %850, %865 : vector<8x128xf32>
    %c4_157 = arith.constant 4 : index
    %c3_158 = arith.constant 3 : index
    %867 = memref.load %arg5[%c4_157, %c3_158] : memref<8x4xf32, #tpu.memory_space<smem>>
    %868 = vector.extract_strided_slice %428 {offsets = [4, 0, 0], sizes = [1, 8, 128], strides = [1, 1, 1]} : vector<8x8x128xf32> to vector<1x8x128xf32>
    %869 = vector.shape_cast %868 : vector<1x8x128xf32> to vector<8x128xf32>
    %870 = vector.broadcast %867 : f32 to vector<8x128xf32>
    %871 = arith.mulf %870, %869 : vector<8x128xf32>
    %872 = arith.addf %856, %871 : vector<8x128xf32>
    %873 = vector.extract_strided_slice %429 {offsets = [4, 0, 0], sizes = [1, 8, 128], strides = [1, 1, 1]} : vector<8x8x128xf32> to vector<1x8x128xf32>
    %874 = vector.shape_cast %873 : vector<1x8x128xf32> to vector<8x128xf32>
    %875 = vector.broadcast %867 : f32 to vector<8x128xf32>
    %876 = arith.mulf %875, %874 : vector<8x128xf32>
    %877 = arith.addf %861, %876 : vector<8x128xf32>
    %878 = vector.extract_strided_slice %430 {offsets = [4, 0, 0], sizes = [1, 8, 128], strides = [1, 1, 1]} : vector<8x8x128xf32> to vector<1x8x128xf32>
    %879 = vector.shape_cast %878 : vector<1x8x128xf32> to vector<8x128xf32>
    %880 = vector.broadcast %867 : f32 to vector<8x128xf32>
    %881 = arith.mulf %880, %879 : vector<8x128xf32>
    %882 = arith.addf %866, %881 : vector<8x128xf32>
    %c5_159 = arith.constant 5 : index
    %c3_160 = arith.constant 3 : index
    %883 = memref.load %arg5[%c5_159, %c3_160] : memref<8x4xf32, #tpu.memory_space<smem>>
    %884 = vector.extract_strided_slice %428 {offsets = [5, 0, 0], sizes = [1, 8, 128], strides = [1, 1, 1]} : vector<8x8x128xf32> to vector<1x8x128xf32>
    %885 = vector.shape_cast %884 : vector<1x8x128xf32> to vector<8x128xf32>
    %886 = vector.broadcast %883 : f32 to vector<8x128xf32>
    %887 = arith.mulf %886, %885 : vector<8x128xf32>
    %888 = arith.addf %872, %887 : vector<8x128xf32>
    %889 = vector.extract_strided_slice %429 {offsets = [5, 0, 0], sizes = [1, 8, 128], strides = [1, 1, 1]} : vector<8x8x128xf32> to vector<1x8x128xf32>
    %890 = vector.shape_cast %889 : vector<1x8x128xf32> to vector<8x128xf32>
    %891 = vector.broadcast %883 : f32 to vector<8x128xf32>
    %892 = arith.mulf %891, %890 : vector<8x128xf32>
    %893 = arith.addf %877, %892 : vector<8x128xf32>
    %894 = vector.extract_strided_slice %430 {offsets = [5, 0, 0], sizes = [1, 8, 128], strides = [1, 1, 1]} : vector<8x8x128xf32> to vector<1x8x128xf32>
    %895 = vector.shape_cast %894 : vector<1x8x128xf32> to vector<8x128xf32>
    %896 = vector.broadcast %883 : f32 to vector<8x128xf32>
    %897 = arith.mulf %896, %895 : vector<8x128xf32>
    %898 = arith.addf %882, %897 : vector<8x128xf32>
    %c6_161 = arith.constant 6 : index
    %c3_162 = arith.constant 3 : index
    %899 = memref.load %arg5[%c6_161, %c3_162] : memref<8x4xf32, #tpu.memory_space<smem>>
    %900 = vector.extract_strided_slice %428 {offsets = [6, 0, 0], sizes = [1, 8, 128], strides = [1, 1, 1]} : vector<8x8x128xf32> to vector<1x8x128xf32>
    %901 = vector.shape_cast %900 : vector<1x8x128xf32> to vector<8x128xf32>
    %902 = vector.broadcast %899 : f32 to vector<8x128xf32>
    %903 = arith.mulf %902, %901 : vector<8x128xf32>
    %904 = arith.addf %888, %903 : vector<8x128xf32>
    %905 = vector.extract_strided_slice %429 {offsets = [6, 0, 0], sizes = [1, 8, 128], strides = [1, 1, 1]} : vector<8x8x128xf32> to vector<1x8x128xf32>
    %906 = vector.shape_cast %905 : vector<1x8x128xf32> to vector<8x128xf32>
    %907 = vector.broadcast %899 : f32 to vector<8x128xf32>
    %908 = arith.mulf %907, %906 : vector<8x128xf32>
    %909 = arith.addf %893, %908 : vector<8x128xf32>
    %910 = vector.extract_strided_slice %430 {offsets = [6, 0, 0], sizes = [1, 8, 128], strides = [1, 1, 1]} : vector<8x8x128xf32> to vector<1x8x128xf32>
    %911 = vector.shape_cast %910 : vector<1x8x128xf32> to vector<8x128xf32>
    %912 = vector.broadcast %899 : f32 to vector<8x128xf32>
    %913 = arith.mulf %912, %911 : vector<8x128xf32>
    %914 = arith.addf %898, %913 : vector<8x128xf32>
    %c7_163 = arith.constant 7 : index
    %c3_164 = arith.constant 3 : index
    %915 = memref.load %arg5[%c7_163, %c3_164] : memref<8x4xf32, #tpu.memory_space<smem>>
    %916 = vector.extract_strided_slice %428 {offsets = [7, 0, 0], sizes = [1, 8, 128], strides = [1, 1, 1]} : vector<8x8x128xf32> to vector<1x8x128xf32>
    %917 = vector.shape_cast %916 : vector<1x8x128xf32> to vector<8x128xf32>
    %918 = vector.broadcast %915 : f32 to vector<8x128xf32>
    %919 = arith.mulf %918, %917 : vector<8x128xf32>
    %920 = arith.addf %904, %919 : vector<8x128xf32>
    %921 = vector.extract_strided_slice %429 {offsets = [7, 0, 0], sizes = [1, 8, 128], strides = [1, 1, 1]} : vector<8x8x128xf32> to vector<1x8x128xf32>
    %922 = vector.shape_cast %921 : vector<1x8x128xf32> to vector<8x128xf32>
    %923 = vector.broadcast %915 : f32 to vector<8x128xf32>
    %924 = arith.mulf %923, %922 : vector<8x128xf32>
    %925 = arith.addf %909, %924 : vector<8x128xf32>
    %926 = vector.extract_strided_slice %430 {offsets = [7, 0, 0], sizes = [1, 8, 128], strides = [1, 1, 1]} : vector<8x8x128xf32> to vector<1x8x128xf32>
    %927 = vector.shape_cast %926 : vector<1x8x128xf32> to vector<8x128xf32>
    %928 = vector.broadcast %915 : f32 to vector<8x128xf32>
    %929 = arith.mulf %928, %927 : vector<8x128xf32>
    %930 = arith.addf %914, %929 : vector<8x128xf32>
    %931 = vector.shape_cast %545 : vector<8x128xf32> to vector<1x8x128xf32>
    %932 = vector.shape_cast %670 : vector<8x128xf32> to vector<1x8x128xf32>
    %933 = vector.shape_cast %795 : vector<8x128xf32> to vector<1x8x128xf32>
    %934 = vector.shape_cast %920 : vector<8x128xf32> to vector<1x8x128xf32>
    %935 = tpu.concatenate %931, %932, %933, %934 in 0 : vector<1x8x128xf32>, vector<1x8x128xf32>, vector<1x8x128xf32>, vector<1x8x128xf32> -> vector<4x8x128xf32>
    %936 = vector.shape_cast %550 : vector<8x128xf32> to vector<1x8x128xf32>
    %937 = vector.shape_cast %675 : vector<8x128xf32> to vector<1x8x128xf32>
    %938 = vector.shape_cast %800 : vector<8x128xf32> to vector<1x8x128xf32>
    %939 = vector.shape_cast %925 : vector<8x128xf32> to vector<1x8x128xf32>
    %940 = tpu.concatenate %936, %937, %938, %939 in 0 : vector<1x8x128xf32>, vector<1x8x128xf32>, vector<1x8x128xf32>, vector<1x8x128xf32> -> vector<4x8x128xf32>
    %941 = vector.shape_cast %555 : vector<8x128xf32> to vector<1x8x128xf32>
    %942 = vector.shape_cast %680 : vector<8x128xf32> to vector<1x8x128xf32>
    %943 = vector.shape_cast %805 : vector<8x128xf32> to vector<1x8x128xf32>
    %944 = vector.shape_cast %930 : vector<8x128xf32> to vector<1x8x128xf32>
    %945 = tpu.concatenate %941, %942, %943, %944 in 0 : vector<1x8x128xf32>, vector<1x8x128xf32>, vector<1x8x128xf32>, vector<1x8x128xf32> -> vector<4x8x128xf32>
    %cst_165 = arith.constant 1.000000e+00 : f32
    %946 = vector.broadcast %cst_165 : f32 to vector<4x8x128xf32>
    %947 = arith.divf %946, %935 : vector<4x8x128xf32>
    %948 = arith.mulf %940, %947 : vector<4x8x128xf32>
    %cst_166 = arith.constant 0.999998986 : f32
    %949 = vector.broadcast %cst_166 : f32 to vector<4x8x128xf32>
    %950 = arith.mulf %948, %949 : vector<4x8x128xf32>
    %cst_167 = arith.constant 5.000000e-07 : f32
    %951 = vector.broadcast %cst_167 : f32 to vector<4x8x128xf32>
    %952 = arith.addf %950, %951 : vector<4x8x128xf32>
    %cst_168 = arith.constant 1.000000e+02 : f32
    %953 = vector.broadcast %cst_168 : f32 to vector<4x8x128xf32>
    %954 = arith.mulf %952, %953 : vector<4x8x128xf32>
    %955 = math.log %954 : vector<4x8x128xf32>
    %cst_169 = arith.constant 4.60517025 : f32
    %956 = vector.broadcast %cst_169 : f32 to vector<4x8x128xf32>
    %957 = arith.subf %955, %956 : vector<4x8x128xf32>
    %cst_170 = arith.constant 1.000000e+00 : f32
    %958 = vector.broadcast %cst_170 : f32 to vector<4x8x128xf32>
    %959 = arith.subf %958, %952 : vector<4x8x128xf32>
    %cst_171 = arith.constant 1.000000e+02 : f32
    %960 = vector.broadcast %cst_171 : f32 to vector<4x8x128xf32>
    %961 = arith.mulf %959, %960 : vector<4x8x128xf32>
    %962 = math.log %961 : vector<4x8x128xf32>
    %cst_172 = arith.constant 4.60517025 : f32
    %963 = vector.broadcast %cst_172 : f32 to vector<4x8x128xf32>
    %964 = arith.subf %962, %963 : vector<4x8x128xf32>
    %965 = vector.extract_strided_slice %957 {offsets = [0, 0, 0], sizes = [4, 1, 128], strides = [1, 1, 1]} : vector<4x8x128xf32> to vector<4x1x128xf32>
    %966 = vector.shape_cast %965 : vector<4x1x128xf32> to vector<4x128xf32>
    %967 = vector.extract_strided_slice %964 {offsets = [0, 0, 0], sizes = [4, 1, 128], strides = [1, 1, 1]} : vector<4x8x128xf32> to vector<4x1x128xf32>
    %968 = vector.shape_cast %967 : vector<4x1x128xf32> to vector<4x128xf32>
    %969 = arith.subf %966, %968 : vector<4x128xf32>
    %c0_173 = arith.constant 0 : index
    %c0_174 = arith.constant 0 : index
    %970 = vector.load %arg6[%c0_173, %c0_174] : memref<4x128xf32, #tpu.memory_space<vmem>>, vector<4x128xf32>
    tpu.vector_store %arg6[%c0_173, %c0_174], %969 {strides = array<i32>} : memref<4x128xf32, #tpu.memory_space<vmem>>, vector<4x128xf32>,
    %971 = arith.mulf %945, %947 : vector<4x8x128xf32>
    %972 = math.log %971 : vector<4x8x128xf32>
    %973 = vector.shape_cast %419 : vector<8x128xf32> to vector<1x8x128xf32>
    %974 = vector.broadcast %973 : vector<1x8x128xf32> to vector<4x8x128xf32>
    %975 = arith.addf %972, %974 : vector<4x8x128xf32>
    %cst_175 = arith.constant -1.00000045E-6 : f32
    %976 = vector.broadcast %cst_175 : f32 to vector<4x8x128xf32>
    %977 = arith.addf %975, %976 : vector<4x8x128xf32>
    %978 = arith.addf %957, %964 : vector<4x8x128xf32>
    %979 = arith.subf %977, %978 : vector<4x8x128xf32>
    %980 = vector.shape_cast %5 : vector<1x128xf32> to vector<1x1x128xf32>
    %981 = vector.broadcast %980 : vector<1x1x128xf32> to vector<4x8x128xf32>
    %982 = arith.addf %979, %981 : vector<4x8x128xf32>
    %c0_176 = arith.constant 0 : index
    %c0_177 = arith.constant 0 : index
    %c0_178 = arith.constant 0 : index
    %983 = vector.load %arg7[%c0_176, %c0_177, %c0_178] : memref<4x8x128xf32, #tpu.memory_space<vmem>>, vector<4x8x128xf32>
    tpu.vector_store %arg7[%c0_176, %c0_177, %c0_178], %982 {strides = array<i32>} : memref<4x8x128xf32, #tpu.memory_space<vmem>>, vector<4x8x128xf32>,
    return
  }
  func.func @transform_0(%arg0: i32) -> (i32, i32, i32) {
    %c0_i32 = arith.constant 0 : i32
    %c0_i32_0 = arith.constant 0 : i32
    %c0_i32_1 = arith.constant 0 : i32
    return %c0_i32, %c0_i32_0, %arg0 : i32, i32, i32
  }
  func.func @transform_1(%arg0: i32) -> (i32, i32) {
    %c0_i32 = arith.constant 0 : i32
    %c0_i32_0 = arith.constant 0 : i32
    return %c0_i32, %arg0 : i32, i32
  }
  func.func @transform_2(%arg0: i32) -> (i32, i32) {
    %c0_i32 = arith.constant 0 : i32
    %c0_i32_0 = arith.constant 0 : i32
    return %c0_i32, %arg0 : i32, i32
  }
  func.func @transform_3(%arg0: i32) -> (i32, i32) {
    %c0_i32 = arith.constant 0 : i32
    %c0_i32_0 = arith.constant 0 : i32
    %c0_i32_1 = arith.constant 0 : i32
    return %c0_i32, %c0_i32_0 : i32, i32
  }
  func.func @transform_4(%arg0: i32) -> (i32, i32) {
    %c0_i32 = arith.constant 0 : i32
    %c0_i32_0 = arith.constant 0 : i32
    %c0_i32_1 = arith.constant 0 : i32
    return %c0_i32, %c0_i32_0 : i32, i32
  }
  func.func @transform_5(%arg0: i32) -> (i32, i32) {
    %c0_i32 = arith.constant 0 : i32
    %c0_i32_0 = arith.constant 0 : i32
    return %c0_i32, %arg0 : i32, i32
  }
  func.func @transform_6(%arg0: i32) -> (i32, i32, i32) {
    %c0_i32 = arith.constant 0 : i32
    %c0_i32_0 = arith.constant 0 : i32
    %c0_i32_1 = arith.constant 0 : i32
    return %c0_i32, %c0_i32_0, %arg0 : i32, i32, i32
  }
}

</mosaic_0001>

<bundles_post_ra>
// kernel: tpu_custom_call.1
= control target key start
LH: loop header
LB: loop body
LE: loop exit
PB: predicated region body
PF: predicated region fallthrough
CT: control target
= control target key end

     0   :  { %12 = vsyncpa [#allocation3], 0  ;;  %s2584_s0 = inlined_call_operand.hbm [shape: f32[28,8,128], index: 0, kind: input, shape index: {}]   ;;  %s2585_s1 = inlined_call_operand.vmem [shape: f32[4,128], index: 1, kind: input, shape index: {}]   ;;  %s2586_s2 = inlined_call_operand.vmem [shape: f32[1,128], index: 2, kind: input, shape index: {}]   ;;  %s2587_s3 = inlined_call_operand.vmem [shape: f32[4,8], index: 3, kind: input, shape index: {}]   ;;  %s2588_s4 = inlined_call_operand.vmem [shape: f32[8,4], index: 4, kind: input, shape index: {}]   ;;  %s2589_s5 = inlined_call_operand.hbm [shape: f32[4,128], index: 5, kind: output, shape index: {0}]   ;;  %s2590_s6 = inlined_call_operand.hbm [shape: f32[4,8,128], index: 6, kind: output, shape index: {1}]  }
   0x1   :  { %13 = vsyncpa [#allocation5], 0 }
   0x2   :  { %14 = vsyncpa [#allocation8], 0 }
   0x3   :  { %15 = vsyncpa [#allocation4], 0 }
   0x4   :  { %16 = vsyncpa [#allocation11], 0  ;;  %s1468_s21 = smov [#allocation2]   ;;  %s39_s25 = sshll.u32 %s2587_s3, 4  ;;  %s40_s25 = int_to_ptr.vmem [resolvable:$true] %s39_s25 }
   0x5   :  { %s22_s22 = sshll.u32 %s1468_s21, 4  ;;  %s1368_s28 = scalar_lea.hbm %s2584_s0, 3584  ;;  %s23_s22 = int_to_ptr.vmem [resolvable:$true] %s22_s22 }
   0x6   :  { %p1369_p0 = scmp.ne.s32.totalorder %s2584_s0, %s1368_s28  ;;  %p1372_p1 = scmp.lt.u32.totalorder %s1368_s28, %s2584_s0 }
   0x8   :  { %p1374_p2 = pnand %p1372_p1, %p1369_p0 }
   0xa   :  { %1377 = shalt.err (!%p1374_p2)
}
   0xb   :  { %s1378_s9 = scalar_lea.vmem %s23_s22, 3584  ;;  %p1383_p4 = scmp.lt.s32.totalorder %s23_s22, %s23_s22 }
   0xc   :  { %p1379_p3 = scmp.ne.s32.totalorder %s23_s22, %s1378_s9  ;;  %p1384_p5 = scmp.lt.s32.totalorder %s1378_s9, %s1378_s9 }
   0xe   :  { %p1385_p6 = por %p1384_p5, %p1383_p4 }
  0x10   :  { %p1386_p7 = pnand %p1385_p6, %p1379_p3 }
  0x12   :  { %1389 = shalt.err (!%p1386_p7)
}
  0x13   :  { %s1469_s3 = smov 128   ;;  %s1470_s10 = smov 8  }
  0x14   :  { %28 = dma.hbm_to_vmem [thread:$0]  %s2584_s0, 3584, %s23_s22, [#allocation3], %s1469_s3, %s1469_s3, %s1470_s10  }
  0x15   :  { %s1390_s13 = scalar_lea.vmem %s40_s25, 64  ;;  %p1395_p9 = scmp.lt.s32.totalorder %s40_s25, %s40_s25 }
  0x16   :  { %p1391_p8 = scmp.ne.s32.totalorder %s40_s25, %s1390_s13  ;;  %p1396_p10 = scmp.lt.s32.totalorder %s1390_s13, %s1390_s13 }
  0x18   :  { %p1397_p11 = por %p1396_p10, %p1395_p9 }
  0x1a   :  { %p1398_p12 = pnand %p1397_p11, %p1391_p8 }
  0x1c   :  { %1401 = shalt.err (!%p1398_p12)
}
  0x1d   :  { %s1471_s14 = smov [#allocation6]   ;;  %s49_s17 = sshll.u32 %s2588_s4, 4  ;;  %s50_s17 = int_to_ptr.vmem [resolvable:$true] %s49_s17 }
  0x1e   :  { %42 = dma.vmem_to_smem %s40_s25, 64, %s1471_s14, [#allocation5]  }
  0x1f   :  { %s1402_s18 = scalar_lea.vmem %s50_s17, 128  ;;  %p1407_p0 = scmp.lt.s32.totalorder %s50_s17, %s50_s17 }
  0x20   :  { %p1403_p13 = scmp.ne.s32.totalorder %s50_s17, %s1402_s18  ;;  %p1408_p1 = scmp.lt.s32.totalorder %s1402_s18, %s1402_s18 }
  0x22   :  { %p1409_p2 = por %p1408_p1, %p1407_p0 }
  0x24   :  { %p1410_p3 = pnand %p1409_p2, %p1403_p13 }
  0x26   :  { %1413 = shalt.err (!%p1410_p3)
}
  0x27   :  { %s1472_s0 = smov [#allocation7]  }
  0x28   :  { %52 = dma.vmem_to_smem %s50_s17, 128, %s1472_s0, [#allocation8]  }
  0x29   :  { %1458 = dma.done.wait [#allocation3], 3584  }
  0x2a   :  { %1459 = vsyncadd [#allocation3], 4294963712 }
  0x2b   :  { %1460 = dma.done.wait [#allocation5], 64  }
  0x2c   :  { %1461 = vsyncadd [#allocation5], 4294967232 }
  0x2d   :  { %1462 = dma.done.wait [#allocation8], 128  }
  0x2e   :  { %1463 = vsyncadd [#allocation8], 4294967168 }
  0x2f   :  { %62 = sfence }
  0x30   :  { %v63_v0 = vld [vmem:[#allocation2] sm:$0xff]  ;;  %v64_v1 = vld [vmem:[#allocation2 + $0x8] sm:$0xff]  ;;  %v65_v2 = vld [vmem:[#allocation2 + $0x10] sm:$0xff]  ;;  %v243_v11 = vlaneseq  ;;  %v1473_v15 = vmov 1966171168   ;;  %s1585_s20 = sld [smem:[#allocation6 + $0x80]] }
  0x31   :  { %v66_v3 = vld [vmem:[#allocation2 + $0x18] sm:$0xff]  ;;  %v67_v4 = vld [vmem:[#allocation2 + $0x20] sm:$0xff]  ;;  %v68_v5 = vld [vmem:[#allocation2 + $0x28] sm:$0xff]  ;;  %v1532_v7 = vadd.f32 0.54132324, %v63_v0  ;;  %v241_v16 = vunpack.c.l.s4 %v1473_v15  ;;  %s1587_s21 = sld [smem:[#allocation6 + $0x100]] }
  0x32   :  { %v69_v6 = vld [vmem:[#allocation2 + $0x30] sm:$0xff]  ;;  %v70_v8 = vld [vmem:[#allocation2 + $0x38] sm:$0xff]  ;;  %v1534_v9 = vadd.f32 0.54132324, %v64_v1  ;;  %v1536_v10 = vadd.f32 0.54132324, %v65_v2 }
  0x33   :  { %v1538_v12 = vadd.f32 0.54132324, %v66_v3  ;;  %v1540_v13 = vadd.f32 0.54132324, %v67_v4  ;;  %v1542_v14 = vadd.f32 0.54132324, %v68_v5  ;;  %v242_v30 = vunpack.c.0.s8 %v241_v16 }
  0x34   :  { %v90_v17 = vld [vmem:[#allocation2 + $0xc0] sm:$0xff]  ;;  %v91_v18 = vld [vmem:[#allocation2 + $0xc8] sm:$0xff]  ;;  %v1544_v19 = vld [vmem:[#allocation2 + $0xd0] sm:$0xff]  ;;  %v1546_v20 = vadd.f32 0.54132324, %v69_v6  ;;  %v244_v26 = vshrl.u32 %v243_v11, 7 }
  0x35   :  { %v1548_v21 = vld [vmem:[#allocation2 + $0xd8] sm:$0xff]  ;;  %v1550_v22 = vadd.f32 0.54132324, %v70_v8  ;;  %v216_v23 = vmax.f32 %v90_v17, %v91_v18  ;;  %v112_v24 = vand.u32 2147483647, %v1532_v7  ;;  %v104_v40 = vmax.f32 %v1532_v7, 0.0 }
  0x36   :  { %v217_v25 = vmax.f32 %v1544_v19, %v1548_v21  ;;  %v113_v27 = vand.u32 2147483647, %v1534_v9  ;;  %v114_v28 = vand.u32 2147483647, %v1536_v10  ;;  %v115_v29 = vand.u32 2147483647, %v1538_v12 }
  0x37   :  { %v116_v31 = vand.u32 2147483647, %v1540_v13  ;;  %v117_v32 = vand.u32 2147483647, %v1542_v14  ;;  %v118_v33 = vand.u32 2147483647, %v1546_v20  ;;  %v245_v47 = vsub.s32 %v242_v30, %v244_v26 }
  0x38   :  { %v1561_v34 = vmax.f32 %v216_v23, %v217_v25  ;;  %v1104_v35 = vld.sshfl [vmem:[%s2585_s1] sm:$0x33 pattern:$0x75316420]  ;;  %v119_v36 = vand.u32 2147483647, %v1550_v22 }
  0x39   :  { %v120_v37 = vsub.f32 0.0, %v112_v24  ;;  %v121_v38 = vsub.f32 0.0, %v113_v27  ;;  %v122_v39 = vsub.f32 0.0, %v114_v28  ;;  %v123_v41 = vsub.f32 0.0, %v115_v29  ;;  %s1572_s1 = sld [smem:[#allocation6]]  ;;  %v1579_v0 = vld [vmem:[#allocation2 + $0x80] sm:$0xff] }
  0x3a   :  { %v124_v42 = vsub.f32 0.0, %v116_v31  ;;  %v125_v43 = vsub.f32 0.0, %v117_v32  ;;  %v126_v44 = vsub.f32 0.0, %v118_v33  ;;  %v127_v48 = vsub.f32 0.0, %v119_v36  ;;  %v1581_v1 = vld [vmem:[#allocation2 + $0xa0] sm:$0xff]  ;;  %v1589_v4 = vld [vmem:[#allocation2 + $0x88] sm:$0xff] }
  0x3b   :  { %v128_v45 = vmul.f32 1.442695, %v120_v37  ;;  %v130_v46 = vmul.f32 1.442695, %v121_v38  ;;  %v132_v49 = vmul.f32 1.442695, %v122_v39  ;;  %v219_v51 = vsub.f32 %v90_v17, %v1561_v34 }
  0x3c   :  { %v134_v50 = vmul.f32 1.442695, %v123_v41  ;;  %v105_v52 = vmax.f32 %v1534_v9, 0.0  ;;  %v136_v53 = vmul.f32 1.442695, %v124_v42  ;;  %v220_v54 = vsub.f32 %v91_v18, %v1561_v34  ;;  %v1591_v5 = vld [vmem:[#allocation2 + $0x90] sm:$0xff] }
  0x3d   :  { %1184 = vpow2.f32 %v128_v45  ;;  %v106_v55 = vmax.f32 %v1536_v10, 0.0  ;;  %v138_v56 = vmul.f32 1.442695, %v125_v43  ;;  %v239_v57 = vcombine.high %v1104_v35, %v1104_v35  ;;  %v1593_v6 = vld [vmem:[#allocation2 + $0x98] sm:$0xff]  ;;  %s1600_s22 = sld [smem:[#allocation6 + $0x180]]  ;;  %s1602_s23 = sld [smem:[#allocation6 + $0x1]] }
  0x3e   :  { %1186 = vpow2.f32 %v130_v46  ;;  %v107_v58 = vmax.f32 %v1538_v12, 0.0  ;;  %v140_v59 = vmul.f32 1.442695, %v126_v44  ;;  %v1575_v60 = vrot.slane %v1104_v35, %v245_v47  ;;  %v1604_v16 = vld [vmem:[#allocation2 + $0xa8] sm:$0xff]  ;;  %v1606_v17 = vld [vmem:[#allocation2 + $0xb0] sm:$0xff]  ;;  %v1608_v18 = vld [vmem:[#allocation2 + $0xb8] sm:$0xff] }
  0x3f   :  { %1188 = vpow2.f32 %v132_v49  ;;  %v142_v61 = vmul.f32 1.442695, %v127_v48  ;;  %v221_v62 = vsub.f32 %v1544_v19, %v1561_v34  ;;  %v223_v63 = vmul.f32 1.442695, %v219_v51  ;;  %s1617_s24 = sld [smem:[#allocation6 + $0x81]]  ;;  %s1623_s27 = sld [smem:[#allocation6 + $0x2]] }
  0x40   :  { %1190 = vpow2.f32 %v134_v50  ;;  %v222_v2 = vsub.f32 %v1548_v21, %v1561_v34  ;;  %v225_v3 = vmul.f32 1.442695, %v220_v54  ;;  %v108_v8 = vmax.f32 %v1540_v13, 0.0  ;;  %s1619_s25 = sld [smem:[#allocation6 + $0x101]]  ;;  %s1628_s28 = sld [smem:[#allocation6 + $0x82]] }
  0x41   :  { %1192 = vpow2.f32 %v136_v53  ;;  %v1596_v11 = vrot.slane %v239_v57, %v245_v47  ;;  %v1598_v15 = vsub.s32 0, %v244_v26  ;;  %v109_v19 = vmax.f32 %v1542_v14, 0.0  ;;  %s1621_s26 = sld [smem:[#allocation6 + $0x181]]  ;;  %s1630_s29 = sld [smem:[#allocation6 + $0x102]] }
  0x42   :  { %1194 = vpow2.f32 %v138_v56  ;;  %v110_v21 = vmax.f32 %v1546_v20, 0.0  ;;  %v111_v23 = vmax.f32 %v1550_v22, 0.0  ;;  %v227_v24 = vmul.f32 1.442695, %v221_v62  ;;  %s1636_s30 = sld [smem:[#allocation6 + $0x182]]  ;;  %s1638_s7 = sld [smem:[#allocation6 + $0x3]] }
  0x43   :  { %1196 = vpow2.f32 %v140_v59  ;;  %v254_v25 = vcombine.high %v1575_v60, %v1575_v60  ;;  %v255_v26 = vcombine.high %v1596_v11, %v1596_v11  ;;  %v229_v27 = vmul.f32 1.442695, %v222_v2  ;;  %s1650_s8 = sld [smem:[#allocation6 + $0x83]]  ;;  %s1658_s12 = sld [smem:[#allocation6 + $0x4]] }
  0x44   :  { %1198 = vpow2.f32 %v142_v61  ;;  %v259_v28 = vrot.slane %v1575_v60, %v1598_v15  ;;  %v281_v29 = vstv %s1572_s1  ;;  %v655_v30 = vmax.f32 %v1579_v0, %v1581_v1  ;;  %s1652_s9 = sld [smem:[#allocation6 + $0x103]]  ;;  %s1662_s13 = sld [smem:[#allocation6 + $0x84]] }
  0x45   :  { %1200 = vpow2.f32 %v223_v63  ;;  %v263_v32 = vrot.slane %v1596_v11, %v1598_v15  ;;  %v656_v33 = vmax.f32 %v1589_v4, %v1604_v16  ;;  %v657_v34 = vmax.f32 %v1591_v5, %v1606_v17  ;;  %s1656_s11 = sld [smem:[#allocation6 + $0x183]]  ;;  %s1664_s14 = sld [smem:[#allocation6 + $0x104]] }
  0x46   :  { %1202 = vpow2.f32 %v225_v3  ;;  %v658_v35 = vmax.f32 %v1593_v6, %v1608_v18  ;;  %v267_v38 = vrot.slane %v254_v25, %v1598_v15  ;;  %v1648_v39 = vrot.slane %v255_v26, %v1598_v15  ;;  %s1666_s15 = sld [smem:[#allocation6 + $0x184]]  ;;  %s1668_s16 = sld [smem:[#allocation6 + $0x5]] }
  0x47   :  { %v1185_v31 = vpop.eup %1184  ;;  %1204 = vpow2.f32 %v227_v24  ;;  %v285_v43 = vstv %s1585_s20  ;;  %v291_v44 = vstv %s1587_s21  ;;  %v297_v47 = vstv %s1600_s22  ;;  %s1672_s17 = sld [smem:[#allocation6 + $0x85]]  ;;  %s1864_s4 = sld [smem:[#allocation6 + $0x6]] }
  0x48   :  { %v1187_v36 = vpop.eup %1186  ;;  %v144_v37 = vadd.f32 1.0, %v1185_v31  ;;  %1206 = vpow2.f32 %v229_v27  ;;  %v303_v48 = vstv %s1602_s23  ;;  %v659_v51 = vmax.f32 %v655_v30, %v656_v33  ;;  %s1674_s18 = sld [smem:[#allocation6 + $0x105]]  ;;  %s1874_s19 = sld [smem:[#allocation6 + $0x86]] }
  0x49   :  { %v1189_v41 = vpop.eup %1188  ;;  %v145_v42 = vadd.f32 1.0, %v1187_v36  ;;  %v660_v53 = vmax.f32 %v657_v34, %v658_v35  ;;  %v307_v57 = vstv %s1617_s24  ;;  %v313_v59 = vstv %s1619_s25  ;;  %s1862_s0 = sld [smem:[#allocation6 + $0x185]]  ;;  %s1882_s1 = sld [smem:[#allocation6 + $0x106]] }
  0x4a   :  { %v1191_v45 = vpop.eup %1190  ;;  %v146_v46 = vadd.f32 1.0, %v1189_v41  ;;  %1208 = vlog2.f32 %v144_v37  ;;  %v325_v2 = vstv %s1623_s27  ;;  %v329_v25 = vstv %s1628_s28  ;;  %s1892_s20 = sld [smem:[#allocation6 + $0x186]]  ;;  %s1899_s21 = sld [smem:[#allocation6 + $0x7]] }
  0x4b   :  { %v1193_v49 = vpop.eup %1192  ;;  %v147_v50 = vadd.f32 1.0, %v1191_v45  ;;  %1210 = vlog2.f32 %v145_v42  ;;  %v335_v26 = vstv %s1630_s29  ;;  %v1683_v33 = vmax.f32 %v659_v51, %v660_v53  ;;  %s1909_s22 = sld [smem:[#allocation6 + $0x87]]  ;;  %s1972_s25 = sld [smem:[#allocation7]] }
  0x4c   :  { %v1195_v54 = vpop.eup %1194  ;;  %v148_v56 = vadd.f32 1.0, %v1193_v49  ;;  %1212 = vlog2.f32 %v146_v46  ;;  %v347_v35 = vstv %s1638_s7  ;;  %v351_v36 = vstv %s1650_s8  ;;  %s1911_s23 = sld [smem:[#allocation6 + $0x107]]  ;;  %s1981_s27 = sld [smem:[#allocation7 + $0x100]] }
  0x4d   :  { %v1197_v61 = vpop.eup %1196  ;;  %v149_v62 = vadd.f32 1.0, %v1195_v54  ;;  %1214 = vlog2.f32 %v147_v50  ;;  %s1934_s24 = sld [smem:[#allocation6 + $0x187]]  ;;  %s1983_s28 = sld [smem:[#allocation7 + $0x180]]  ;;  %vm1011_vm0 = vcmask 1041409   ;;  %vm1014_vm1 = vcmask 1042434  }
  0x4e   :  { %v1199_v3 = vpop.eup %1198  ;;  %v150_v24 = vadd.f32 1.0, %v1197_v61  ;;  %1216 = vlog2.f32 %v148_v56  ;;  %s1994_s29 = sld [smem:[#allocation7 + $0x200]]  ;;  %vm1017_vm2 = vcmask 1043459  }
  0x4f   :  { %v1680_v27 = vpop.eup %1200  ;;  %v151_v30 = vadd.f32 1.0, %v1199_v3  ;;  %1218 = vlog2.f32 %v149_v62  ;;  %s2001_s7 = sld [smem:[#allocation7 + $0x300]] }
  0x50   :  { %v1685_v34 = vpop.eup %1202  ;;  %1220 = vlog2.f32 %v150_v24  ;;  %v1694_v41 = vmul.f32 %v1680_v27, %v259_v28  ;;  %v282_v50 = vmul.f32 %v1680_v27, %v281_v29  ;;  %s2003_s8 = sld [smem:[#allocation7 + $0x380]] }
  0x51   :  { %1222 = vlog2.f32 %v151_v30  ;;  %v1698_v46 = vpop.eup %1204  ;;  %v1704_v49 = vmul.f32 %v1685_v34, %v263_v32  ;;  %v286_v60 = vmul.f32 %v1685_v34, %v285_v43  ;;  %v304_v32 = vmul.f32 %v1680_v27, %v303_v48 }
  0x52   :  { %v1713_v51 = vpop.eup %1206  ;;  %v1716_v53 = vmul.f32 %v1698_v46, %v267_v38  ;;  %v308_v61 = vmul.f32 %v1685_v34, %v307_v57  ;;  %v283_v28 = vmul.f32 %v281_v29, %v1694_v41  ;;  %v292_v38 = vmul.f32 %v1698_v46, %v291_v44 }
  0x53   :  { %v305_v56 = vmul.f32 %v303_v48, %v1694_v41  ;;  %v1734_v45 = vmul.f32 %v1713_v51, %v1648_v39  ;;  %v287_v42 = vadd.f32 %v286_v60, %v282_v50  ;;  %v288_v3 = vmul.f32 %v285_v43, %v1704_v49 }
  0x54   :  { %v1209_v15 = vpop.eup %1208  ;;  %v294_v31 = vmul.f32 %v291_v44, %v1716_v53  ;;  %v1747_v48 = vmul.f32 %v1713_v51, %v297_v47  ;;  %v309_v60 = vadd.f32 %v308_v61, %v304_v32  ;;  %v310_v43 = vmul.f32 %v307_v57, %v1704_v49 }
  0x55   :  { %v1211_v24 = vpop.eup %1210  ;;  %v153_v30 = vmul.f32 0.6931472, %v1209_v15  ;;  %v314_v44 = vmul.f32 %v1698_v46, %v313_v59 }
  0x56   :  { %v1213_v11 = vpop.eup %1212  ;;  %v155_v54 = vmul.f32 0.6931472, %v1211_v24 }
  0x57   :  { %v1215_v15 = vpop.eup %1214  ;;  %v157_v62 = vmul.f32 0.6931472, %v1213_v11  ;;  %v168_v29 = vadd.f32 %v153_v30, %v104_v40 }
  0x58   :  { %v1217_v24 = vpop.eup %1216  ;;  %v159_v39 = vmul.f32 0.6931472, %v1215_v15  ;;  %v169_v50 = vadd.f32 %v155_v54, %v105_v52  ;;  %v289_v52 = vadd.f32 %v288_v3, %v283_v28 }
  0x59   :  { %v1219_v63 = vpop.eup %1218  ;;  %v161_v11 = vmul.f32 0.6931472, %v1217_v24  ;;  %v170_v7 = vadd.f32 %v157_v62, %v106_v55  ;;  %v1754_v40 = vadd.f32 1e-06, %v168_v29  ;;  %v300_v24 = vmul.f32 %v297_v47, %v1734_v45 }
  0x5a   :  { %v1221_v30 = vpop.eup %1220  ;;  %v163_v37 = vmul.f32 0.6931472, %v1219_v63  ;;  %v171_v15 = vadd.f32 %v159_v39, %v107_v58  ;;  %v1761_v9 = vadd.f32 1e-06, %v169_v50  ;;  %v330_v39 = vmul.f32 %v1685_v34, %v329_v25 }
  0x5b   :  { %v1223_v54 = vpop.eup %1222  ;;  %v165_v57 = vmul.f32 0.6931472, %v1221_v30  ;;  %v172_v32 = vadd.f32 %v161_v11, %v108_v8  ;;  %v1765_v10 = vadd.f32 1e-06, %v170_v7  ;;  %v184_v55 = vmul.f32 100.0, %v1754_v40 }
  0x5c   :  { %v167_v61 = vmul.f32 0.6931472, %v1223_v54  ;;  %v173_v62 = vadd.f32 %v163_v37, %v109_v19  ;;  %v1770_v63 = vadd.f32 1e-06, %v171_v15  ;;  %v185_v12 = vmul.f32 100.0, %v1761_v9 }
  0x5d   :  { %v174_v58 = vadd.f32 %v165_v57, %v110_v21  ;;  %v1775_v28 = vadd.f32 1e-06, %v172_v32  ;;  %v186_v13 = vmul.f32 100.0, %v1765_v10  ;;  %1224 = vlog2.f32 %v184_v55 }
  0x5e   :  { %v175_v8 = vadd.f32 %v167_v61, %v111_v23  ;;  %v1780_v14 = vadd.f32 1e-06, %v173_v62  ;;  %v187_v19 = vmul.f32 100.0, %v1770_v63  ;;  %1226 = vlog2.f32 %v185_v12 }
  0x5f   :  { %v1783_v20 = vadd.f32 1e-06, %v174_v58  ;;  %v188_v21 = vmul.f32 100.0, %v1775_v28  ;;  %1228 = vlog2.f32 %v186_v13  ;;  %v293_v37 = vadd.f32 %v292_v38, %v287_v42 }
  0x60   :  { %v1786_v3 = vadd.f32 1e-06, %v175_v8  ;;  %v189_v22 = vmul.f32 100.0, %v1780_v14  ;;  %1230 = vlog2.f32 %v187_v19  ;;  %v326_v23 = vmul.f32 %v1680_v27, %v325_v2 }
  0x61   :  { %2643 = vst [vmem:[#allocation17_spill] sm:$0xff] %v1783_v20  ;;  %v190_v29 = vmul.f32 100.0, %v1783_v20  ;;  %1232 = vlog2.f32 %v188_v21  ;;  %v327_v42 = vmul.f32 %v325_v2, %v1694_v41  ;;  %v332_v50 = vmul.f32 %v329_v25, %v1704_v49 }
  0x62   :  { %2644 = vst [vmem:[#allocation18_spill] sm:$0xff] %v1786_v3  ;;  %v191_v38 = vmul.f32 100.0, %v1786_v3  ;;  %1234 = vlog2.f32 %v189_v22  ;;  %v311_v11 = vadd.f32 %v310_v43, %v305_v56  ;;  %v316_v47 = vmul.f32 %v313_v59, %v1716_v53 }
  0x63   :  { %1236 = vlog2.f32 %v190_v29  ;;  %v336_v2 = vmul.f32 %v1698_v46, %v335_v26  ;;  %v331_v7 = vadd.f32 %v330_v39, %v326_v23  ;;  %v333_v30 = vadd.f32 %v332_v50, %v327_v42 }
  0x64   :  { %1238 = vlog2.f32 %v191_v38  ;;  %v338_v15 = vmul.f32 %v335_v26, %v1716_v53  ;;  %v348_v25 = vmul.f32 %v1680_v27, %v347_v35  ;;  %v349_v56 = vmul.f32 %v347_v35, %v1694_v41 }
  0x65   :  { %v352_v59 = vmul.f32 %v1685_v34, %v351_v36  ;;  %v354_v43 = vmul.f32 %v351_v36, %v1704_v49  ;;  %v295_v54 = vadd.f32 %v294_v31, %v289_v52  ;;  %v315_v57 = vadd.f32 %v314_v44, %v309_v60 }
  0x66   :  { %v2645_v32 = vstv %s1652_s9  ;;  %v1834_v35 = vadd.f32 %v1747_v48, %v293_v37  ;;  %v317_v12 = vadd.f32 %v316_v47, %v311_v11  ;;  %v2647_v19 = vstv %s1621_s26  ;;  %s1974_s26 = sld [smem:[#allocation7 + $0x80]]  ;;  %s2011_s9 = sld [smem:[#allocation7 + $0x1]] }
  0x67   :  { %v358_v26 = vmul.f32 %v1698_v46, %v2645_v32  ;;  %v2646_v55 = vmov %v2645_v32  ;;  %v1225_v62 = vpop.eup %1224  ;;  %v353_v58 = vadd.f32 %v352_v59, %v348_v25  ;;  %v355_v13 = vadd.f32 %v354_v43, %v349_v56 }
  0x68   :  { %v360_v61 = vmul.f32 %v2646_v55, %v1716_v53  ;;  %v1227_v8 = vpop.eup %1226  ;;  %v320_v31 = vmul.f32 %v1713_v51, %v2647_v19  ;;  %v2648_v36 = vmov %v2647_v19  ;;  %v2649_v44 = vstv %s1636_s30  ;;  %s1996_s30 = sld [smem:[#allocation7 + $0x280]] }
  0x69   :  { %v322_v60 = vmul.f32 %v2648_v36, %v1734_v45  ;;  %v342_v52 = vmul.f32 %v1713_v51, %v2649_v44  ;;  %v2650_v21 = vmov %v2649_v44  ;;  %v1229_v48 = vpop.eup %1228  ;;  %v337_v37 = vadd.f32 %v336_v2, %v331_v7 }
  0x6a   :  { %v344_v22 = vmul.f32 %v2650_v21, %v1734_v45  ;;  %v339_v23 = vadd.f32 %v338_v15, %v333_v30  ;;  %v2651_v29 = vstv %s1656_s11  ;;  %v1231_v50 = vpop.eup %1230  ;;  %v193_v11 = vmul.f32 0.6931472, %v1225_v62  ;;  %s2013_s11 = sld [smem:[#allocation7 + $0x81]] }
  0x6b   :  { %v364_v42 = vmul.f32 %v1713_v51, %v2651_v29  ;;  %v2652_v38 = vmov %v2651_v29  ;;  %v195_v47 = vmul.f32 0.6931472, %v1227_v8  ;;  %v359_v25 = vadd.f32 %v358_v26, %v353_v58  ;;  %v1233_v59 = vpop.eup %1232 }
  0x6c   :  { %v366_v39 = vmul.f32 %v2652_v38, %v1734_v45  ;;  %v361_v56 = vadd.f32 %v360_v61, %v355_v13  ;;  %v197_v43 = vmul.f32 0.6931472, %v1229_v48  ;;  %v1854_v32 = vadd.f32 %v300_v24, %v295_v54  ;;  %v1235_v15 = vpop.eup %1234 }
  0x6d   :  { %v2653_v55 = vstv %s1658_s12  ;;  %v2654_v7 = vstv %s1662_s13  ;;  %v199_v19 = vmul.f32 0.6931472, %v1231_v50  ;;  %v1866_v62 = vadd.f32 %v320_v31, %v315_v57  ;;  %v1237_v58 = vpop.eup %1236  ;;  %s2021_s12 = sld [smem:[#allocation7 + $0x101]] }
  0x6e   :  { %v370_v2 = vmul.f32 %v1680_v27, %v2653_v55  ;;  %v374_v30 = vmul.f32 %v1685_v34, %v2654_v7  ;;  %v2655_v26 = vmov %v2653_v55  ;;  %v2656_v24 = vmov %v2654_v7  ;;  %v1239_v57 = vpop.eup %1238  ;;  %s2025_s13 = sld [smem:[#allocation7 + $0x181]] }
  0x6f   :  { %v371_v61 = vmul.f32 %v2655_v26, %v1694_v41  ;;  %v376_v54 = vmul.f32 %v2656_v24, %v1704_v49  ;;  %v201_v13 = vmul.f32 0.6931472, %v1233_v59  ;;  %v1876_v8 = vadd.f32 %v322_v60, %v317_v12 }
  0x70   :  { %v1878_v36 = vadd.f32 %v342_v52, %v337_v37  ;;  %v1880_v44 = vadd.f32 %v344_v22, %v339_v23  ;;  %v1884_v31 = vadd.f32 -4.6051702, %v193_v11  ;;  %v1886_v21 = vadd.f32 -4.6051702, %v195_v47 }
  0x71   :  { %v1888_v48 = vadd.f32 %v364_v42, %v359_v25  ;;  %v1890_v29 = vadd.f32 %v366_v39, %v361_v56  ;;  %v203_v12 = vmul.f32 0.6931472, %v1235_v15  ;;  %v1894_v60 = vadd.f32 -4.6051702, %v197_v43 }
  0x72   :  { %2657 = vst [vmem:[#allocation19_spill] sm:$0xff] %v1884_v31  ;;  %2658 = vst [vmem:[#allocation20_spill] sm:$0xff] %v1886_v21  ;;  %v375_v52 = vadd.f32 %v374_v30, %v370_v2  ;;  %v2660_v22 = vstv %s1664_s14  ;;  %v1901_v23 = vadd.f32 -4.6051702, %v199_v19  ;;  %v377_v42 = vadd.f32 %v376_v54, %v371_v61  ;;  %s2027_s14 = sld [smem:[#allocation7 + $0x201]] }
  0x73   :  { %2659 = vst [vmem:[#allocation21_spill] sm:$0xff] %v1894_v60  ;;  %v380_v37 = vmul.f32 %v1698_v46, %v2660_v22  ;;  %v2662_v38 = vstv %s1668_s16  ;;  %v2663_v50 = vstv %s1672_s17  ;;  %v205_v47 = vmul.f32 0.6931472, %v1237_v58  ;;  %s2047_s16 = sld [smem:[#allocation7 + $0x301]] }
  0x74   :  { %2661 = vst [vmem:[#allocation22_spill] sm:$0xff] %v1901_v23  ;;  %v392_v39 = vmul.f32 %v1680_v27, %v2662_v38  ;;  %v396_v11 = vmul.f32 %v1685_v34, %v2663_v50  ;;  %v1913_v25 = vadd.f32 -4.6051702, %v201_v13  ;;  %v2665_v56 = vmov %v2660_v22  ;;  %s2058_s17 = sld [smem:[#allocation7 + $0x381]] }
  0x75   :  { %v382_v59 = vmul.f32 %v2665_v56, %v1716_v53  ;;  %v2666_v43 = vstv %s1666_s15  ;;  %v207_v2 = vmul.f32 0.6931472, %v1239_v57  ;;  %v2668_v15 = vmov %v2662_v38  ;;  %s2030_s15 = sld [smem:[#allocation7 + $0x281]] }
  0x76   :  { %2664 = vst [vmem:[#allocation23_spill] sm:$0xff] %v1913_v25  ;;  %v386_v55 = vmul.f32 %v1713_v51, %v2666_v43  ;;  %v2667_v7 = vmov %v2666_v43  ;;  %v393_v19 = vmul.f32 %v2668_v15, %v1694_v41  ;;  %v2669_v26 = vmov %v2663_v50 }
  0x77   :  { %v388_v30 = vmul.f32 %v2667_v7, %v1734_v45  ;;  %v398_v61 = vmul.f32 %v2669_v26, %v1704_v49  ;;  %v1930_v24 = vadd.f32 -4.6051702, %v203_v12  ;;  %v381_v54 = vadd.f32 %v380_v37, %v375_v52 }
  0x78   :  { %v407_v58 = vstv %s1862_s0  ;;  %v413_v13 = vstv %s1864_s4  ;;  %v397_v57 = vadd.f32 %v396_v11, %v392_v39  ;;  %v417_v50 = vstv %s1874_s19  ;;  %s2100_s0 = sld [smem:[#allocation7 + $0x82]] }
  0x79   :  { %2670 = vst [vmem:[#allocation24_spill] sm:$0xff] %v1930_v24  ;;  %v414_v22 = vmul.f32 %v1680_v27, %v413_v13  ;;  %v415_v38 = vmul.f32 %v413_v13, %v1694_v41  ;;  %v2671_v56 = vstv %s1674_s18  ;;  %v418_v12 = vmul.f32 %v1685_v34, %v417_v50  ;;  %s2075_s18 = sld [smem:[#allocation7 + $0x2]] }
  0x7a   :  { %v402_v43 = vmul.f32 %v1698_v46, %v2671_v56  ;;  %v420_v52 = vmul.f32 %v417_v50, %v1704_v49  ;;  %v423_v37 = vstv %s1882_s1  ;;  %v383_v7 = vadd.f32 %v382_v59, %v377_v42  ;;  %s2114_s4 = sld [smem:[#allocation7 + $0x102]] }
  0x7b   :  { %v399_v15 = vadd.f32 %v398_v61, %v393_v19  ;;  %v2672_v39 = vmov %v2671_v56  ;;  %v408_v26 = vmul.f32 %v1713_v51, %v407_v58  ;;  %v419_v24 = vadd.f32 %v418_v12, %v414_v22  ;;  %s2122_s19 = sld [smem:[#allocation7 + $0x182]] }
  0x7c   :  { %v404_v11 = vmul.f32 %v2672_v39, %v1716_v53  ;;  %v424_v13 = vmul.f32 %v1698_v46, %v423_v37  ;;  %v426_v25 = vmul.f32 %v423_v37, %v1716_v53  ;;  %v429_v23 = vstv %s1892_s20  ;;  %s2134_s1 = sld [smem:[#allocation7 + $0x202]] }
  0x7d   :  { %v421_v56 = vadd.f32 %v420_v52, %v415_v38  ;;  %v435_v60 = vstv %s1899_s21  ;;  %v439_v21 = vstv %s1909_s22  ;;  %v445_v31 = vstv %s1911_s23  ;;  %s2179_s20 = sld [smem:[#allocation7 + $0x282]]  ;;  %s2201_s22 = sld [smem:[#allocation7 + $0x3]] }
  0x7e   :  { %v403_v50 = vadd.f32 %v402_v43, %v397_v57  ;;  %v410_v42 = vmul.f32 %v407_v58, %v1734_v45  ;;  %v436_v59 = vmul.f32 %v1680_v27, %v435_v60  ;;  %v437_v19 = vmul.f32 %v435_v60, %v1694_v41  ;;  %s2193_s21 = sld [smem:[#allocation7 + $0x302]]  ;;  %s2231_s23 = sld [smem:[#allocation7 + $0x83]] }
  0x7f   :  { %v440_v61 = vmul.f32 %v1685_v34, %v439_v21  ;;  %v442_v22 = vmul.f32 %v439_v21, %v1704_v49  ;;  %v446_v12 = vmul.f32 %v1698_v46, %v445_v31  ;;  %v448_v37 = vmul.f32 %v445_v31, %v1716_v53 }
  0x80   :  { %v405_v39 = vadd.f32 %v404_v11, %v399_v15  ;;  %v425_v38 = vadd.f32 %v424_v13, %v419_v24  ;;  %v430_v52 = vmul.f32 %v1713_v51, %v429_v23  ;;  %v451_v3 = vstv %s1934_s24  ;;  %s2233_s24 = sld [smem:[#allocation7 + $0x103]] }
  0x81   :  { %v427_v57 = vadd.f32 %v426_v25, %v421_v56  ;;  %v432_v58 = vmul.f32 %v429_v23, %v1734_v45  ;;  %v441_v43 = vadd.f32 %v440_v61, %v436_v59  ;;  %v443_v27 = vadd.f32 %v442_v22, %v437_v19  ;;  %v73_v56 = vld [vmem:[#allocation2 + $0x48] sm:$0xff]  ;;  %v74_v22 = vld [vmem:[#allocation2 + $0x50] sm:$0xff] }
  0x82   :  { %v1965_v20 = vadd.f32 -4.6051702, %v205_v47  ;;  %v1967_v41 = vadd.f32 -4.6051702, %v207_v2  ;;  %v387_v34 = vadd.f32 %v386_v55, %v381_v54  ;;  %v389_v49 = vadd.f32 %v388_v30, %v383_v7  ;;  %v72_v54 = vld [vmem:[#allocation2 + $0x40] sm:$0xff] }
  0x83   :  { %v447_v21 = vadd.f32 %v446_v12, %v441_v43  ;;  %v449_v46 = vadd.f32 %v448_v37, %v443_v27  ;;  %v452_v53 = vmul.f32 %v1713_v51, %v451_v3  ;;  %v454_v31 = vmul.f32 %v451_v3, %v1734_v45 }
  0x84   :  { %v409_v60 = vadd.f32 %v408_v26, %v403_v50  ;;  %v411_v24 = vadd.f32 %v410_v42, %v405_v39  ;;  %v431_v15 = vadd.f32 %v430_v52, %v425_v38  ;;  %1240 = vrcp.f32 %v1834_v35  ;;  %v75_v52 = vld [vmem:[#allocation2 + $0x58] sm:$0xff] }
  0x85   :  { %v433_v23 = vadd.f32 %v432_v58, %v427_v57  ;;  %v456_v47 = vmul.f32 %v1854_v32, %v1754_v40  ;;  %v457_v25 = vmul.f32 %v1876_v8, %v1761_v9  ;;  %1242 = vrcp.f32 %v1866_v62 }
  0x86   :  { %v1987_v45 = vmul.f32 %v1880_v44, %v1765_v10  ;;  %1244 = vrcp.f32 %v1878_v36  ;;  %v662_v51 = vsub.f32 %v1579_v0, %v1683_v33  ;;  %v663_v40 = vsub.f32 %v1589_v4, %v1683_v33 }
  0x87   :  { %v453_v9 = vadd.f32 %v452_v53, %v447_v21  ;;  %v455_v3 = vadd.f32 %v454_v31, %v449_v46  ;;  %1246 = vrcp.f32 %v1888_v48  ;;  %v664_v10 = vsub.f32 %v1591_v5, %v1683_v33 }
  0x88   :  { %1248 = vrcp.f32 %v387_v34  ;;  %v665_v0 = vsub.f32 %v1593_v6, %v1683_v33  ;;  %v666_v4 = vsub.f32 %v1581_v1, %v1683_v33  ;;  %v667_v35 = vsub.f32 %v1604_v16, %v1683_v33  ;;  %v76_v34 = vld [vmem:[#allocation2 + $0x60] sm:$0xff] }
  0x89   :  { %v459_v5 = vmul.f32 %v1890_v29, %v1770_v63  ;;  %1250 = vrcp.f32 %v409_v60  ;;  %v668_v32 = vsub.f32 %v1606_v17, %v1683_v33  ;;  %v669_v6 = vsub.f32 %v1608_v18, %v1683_v33  ;;  %v2673_v63 = vld [vmem:[#allocation17_spill] sm:$0xff]  ;;  %v2674_v33 = vld [vmem:[#allocation18_spill] sm:$0xff] }
  0x8a   :  { %v460_v1 = vmul.f32 %v389_v49, %v1775_v28  ;;  %v461_v16 = vmul.f32 %v411_v24, %v1780_v14  ;;  %1252 = vrcp.f32 %v431_v15  ;;  %v670_v62 = vmul.f32 1.442695, %v662_v51  ;;  %v77_v60 = vld [vmem:[#allocation2 + $0x68] sm:$0xff] }
  0x8b   :  { %v462_v8 = vmul.f32 %v433_v23, %v2673_v63  ;;  %1254 = vrcp.f32 %v453_v9  ;;  %v672_v17 = vmul.f32 1.442695, %v663_v40  ;;  %v674_v18 = vmul.f32 1.442695, %v664_v10  ;;  %v79_v10 = vld [vmem:[#allocation2 + $0x78] sm:$0xff] }
  0x8c   :  { %v463_v28 = vmul.f32 %v455_v3, %v2674_v33  ;;  %v676_v14 = vmul.f32 1.442695, %v665_v0  ;;  %v2033_v36 = vmul.f32 1.442695, %v666_v4  ;;  %v2035_v44 = vmul.f32 1.442695, %v667_v35 }
  0x8d   :  { %v2037_v48 = vmul.f32 1.442695, %v668_v32  ;;  %v2039_v29 = vmul.f32 1.442695, %v669_v6  ;;  %v2042_v55 = vstv %s1972_s25  ;;  %v2045_v2 = vstv %s1974_s26  ;;  %s2240_s25 = sld [smem:[#allocation7 + $0x382]]  ;;  %s2251_s26 = sld [smem:[#allocation7 + $0x183]] }
  0x8e   :  { %v1241_v30 = vpop.eup %1240  ;;  %1256 = vpow2.f32 %v670_v62  ;;  %v2050_v7 = vstv %s1981_s27  ;;  %v2053_v11 = vstv %s1983_s28  ;;  %v2056_v26 = vstv %s1994_s29  ;;  %s2258_s27 = sld [smem:[#allocation7 + $0x203]] }
  0x8f   :  { %v1243_v13 = vpop.eup %1242  ;;  %v465_v50 = vmul.f32 %v1241_v30, %v456_v47  ;;  %v2061_v42 = vstv %s1996_s30  ;;  %v2064_v59 = vstv %s2001_s7  ;;  %v2067_v19 = vstv %s2003_s8  ;;  %s2260_s28 = sld [smem:[#allocation7 + $0x283]] }
  0x90   :  { %2675 = vst [vmem:[#allocation17_spill] sm:$0xff] %v2067_v19  ;;  %v1245_v61 = vpop.eup %1244  ;;  %v467_v12 = vmul.f32 %v1243_v13, %v457_v25  ;;  %1258 = vpow2.f32 %v672_v17  ;;  %v2070_v37 = vstv %s2011_s9  ;;  %v2073_v39 = vstv %s2013_s11  ;;  %s2264_s29 = sld [smem:[#allocation7 + $0x303]]  ;;  %s1475_s11 = smov [#allocation10]  }
  0x91   :  { %v1247_v38 = vpop.eup %1246  ;;  %v469_v57 = vmul.f32 %v1245_v61, %v1987_v45  ;;  %v2078_v58 = vadd.f32 %v465_v50, %v72_v54  ;;  %1260 = vpow2.f32 %v674_v18  ;;  %v2081_v43 = vstv %s2021_s12  ;;  %v78_v45 = vld [vmem:[#allocation2 + $0x70] sm:$0xff]  ;;  %s2277_s30 = sld [smem:[#allocation7 + $0x383]]  ;;  %s1078_s12 = sshll.u32 %s1475_s11, 4  ;;  %s2550_s12 = int_to_ptr.vmem [resolvable:$true] %s1078_s12 }
  0x92   :  { %v1249_v27 = vpop.eup %1248  ;;  %v471_v49 = vmul.f32 %v1247_v38, %v459_v5  ;;  %v2083_v21 = vadd.f32 %v467_v12, %v73_v56  ;;  %v2086_v46 = vstv %s2025_s13  ;;  %v2089_v53 = vstv %s2027_s14 }
  0x93   :  { %2676 = vst [vmem:[#allocation18_spill] sm:$0xff] %v2089_v53  ;;  %v1251_v31 = vpop.eup %1250  ;;  %v473_v24 = vmul.f32 %v1249_v27, %v460_v1  ;;  %v2091_v15 = vadd.f32 %v469_v57, %v74_v22  ;;  %v488_v23 = vsub.f32 0.0, %v2078_v58  ;;  %v2095_v47 = vstv %s2030_s15 }
  0x94   :  { %2677 = vst [vmem:[#allocation25_spill] sm:$0xff] %v2095_v47  ;;  %v1253_v25 = vpop.eup %1252  ;;  %v475_v51 = vmul.f32 %v1251_v31, %v461_v16  ;;  %v2097_v40 = vadd.f32 %v471_v49, %v75_v52  ;;  %v489_v9 = vsub.f32 0.0, %v2083_v21  ;;  %1262 = vpow2.f32 %v676_v14 }
  0x95   :  { %v1255_v3 = vpop.eup %1254  ;;  %v477_v0 = vmul.f32 %v1253_v25, %v462_v8  ;;  %v2102_v4 = vadd.f32 %v473_v24, %v76_v34  ;;  %v490_v35 = vsub.f32 0.0, %v2091_v15  ;;  %v2106_v5 = vstv %s2047_s16 }
  0x96   :  { %2678 = vst [vmem:[#allocation26_spill] sm:$0xff] %v2106_v5  ;;  %v479_v32 = vmul.f32 %v1255_v3, %v463_v28  ;;  %v2108_v6 = vadd.f32 %v475_v51, %v77_v60  ;;  %v2597_v1 = vsub.f32 0.0, %v2097_v40  ;;  %v2112_v16 = vstv %s2058_s17 }
  0x97   :  { %2679 = vst [vmem:[#allocation27_spill] sm:$0xff] %v2112_v16  ;;  %v2116_v62 = vadd.f32 %v477_v0, %v78_v45  ;;  %v2596_v63 = vsub.f32 0.0, %v2102_v4  ;;  %v504_v8 = vand.u32 2147483647, %v488_v23  ;;  %1264 = vpow2.f32 %v2033_v36 }
  0x98   :  { %v2124_v17 = vpop.eup %1256  ;;  %v2126_v18 = vadd.f32 %v479_v32, %v79_v10  ;;  %v2595_v33 = vsub.f32 0.0, %v2108_v6  ;;  %v505_v28 = vand.u32 2147483647, %v489_v9  ;;  %v2132_v14 = vstv %s2075_s18 }
  0x99   :  { %2680 = vst [vmem:[#allocation28_spill] sm:$0xff] %v2132_v14  ;;  %v2594_v30 = vsub.f32 0.0, %v2116_v62  ;;  %v506_v36 = vand.u32 2147483647, %v490_v35  ;;  %v507_v54 = vand.u32 2147483647, %v2597_v1  ;;  %1266 = vpow2.f32 %v2035_v44 }
  0x9a   :  { %v2142_v13 = vpop.eup %1258  ;;  %v2593_v56 = vsub.f32 0.0, %v2126_v18  ;;  %v508_v50 = vand.u32 2147483647, %v2596_v63  ;;  %v509_v61 = vand.u32 2147483647, %v2595_v33  ;;  %1268 = vpow2.f32 %v2037_v48 }
  0x9b   :  { %v2150_v22 = vpop.eup %1260  ;;  %v510_v12 = vand.u32 2147483647, %v2594_v30  ;;  %v512_v38 = vsub.f32 0.0, %v504_v8  ;;  %v513_v52 = vsub.f32 0.0, %v505_v28  ;;  %1270 = vpow2.f32 %v2039_v29 }
  0x9c   :  { %v511_v44 = vand.u32 2147483647, %v2593_v56  ;;  %v514_v57 = vsub.f32 0.0, %v506_v36  ;;  %v515_v27 = vsub.f32 0.0, %v507_v54  ;;  %v2158_v34 = vstv %s2100_s0 }
  0x9d   :  { %2681 = vst [vmem:[#allocation29_spill] sm:$0xff] %v2158_v34  ;;  %v516_v49 = vsub.f32 0.0, %v508_v50  ;;  %v517_v48 = vsub.f32 0.0, %v509_v61  ;;  %v518_v31 = vsub.f32 0.0, %v510_v12  ;;  %v520_v60 = vmul.f32 1.442695, %v512_v38 }
  0x9e   :  { %v2160_v24 = vpop.eup %1262  ;;  %v519_v25 = vsub.f32 0.0, %v511_v44  ;;  %v522_v45 = vmul.f32 1.442695, %v513_v52  ;;  %v524_v51 = vmul.f32 1.442695, %v514_v57  ;;  %v704_v29 = vmul.f32 %v2124_v17, %v2042_v55 }
  0x9f   :  { %1272 = vpow2.f32 %v520_v60  ;;  %v526_v3 = vmul.f32 1.442695, %v515_v27  ;;  %v528_v10 = vmul.f32 1.442695, %v516_v49  ;;  %v2165_v0 = vstv %s2114_s4 }
  0xa0   :  { %2682 = vst [vmem:[#allocation30_spill] sm:$0xff] %v2165_v0  ;;  %1274 = vpow2.f32 %v522_v45  ;;  %v530_v32 = vmul.f32 1.442695, %v517_v48  ;;  %v709_v8 = vmul.f32 %v2142_v13, %v2045_v2  ;;  %v2170_v28 = vstv %s2122_s19 }
  0xa1   :  { %2683 = vst [vmem:[#allocation31_spill] sm:$0xff] %v2170_v28  ;;  %v2172_v36 = vpop.eup %1264  ;;  %1276 = vpow2.f32 %v524_v51  ;;  %v532_v54 = vmul.f32 1.442695, %v518_v31  ;;  %v717_v50 = vmul.f32 %v2150_v22, %v2050_v7  ;;  %v2177_v61 = vstv %s2134_s1 }
  0xa2   :  { %2684 = vst [vmem:[#allocation32_spill] sm:$0xff] %v2177_v61  ;;  %1278 = vpow2.f32 %v526_v3  ;;  %v534_v12 = vmul.f32 1.442695, %v519_v25  ;;  %v710_v38 = vadd.f32 %v709_v8, %v704_v29  ;;  %v725_v52 = vmul.f32 %v2160_v24, %v2053_v11 }
  0xa3   :  { %v2183_v44 = vpop.eup %1266  ;;  %v2187_v57 = vmax.f32 %v488_v23, 0.0  ;;  %1280 = vpow2.f32 %v528_v10  ;;  %v765_v27 = vmul.f32 %v2124_v17, %v2070_v37  ;;  %v770_v49 = vmul.f32 %v2142_v13, %v2073_v39 }
  0xa4   :  { %v2195_v48 = vpop.eup %1268  ;;  %1282 = vpow2.f32 %v530_v32  ;;  %v718_v31 = vadd.f32 %v717_v50, %v710_v38  ;;  %v733_v60 = vmul.f32 %v2172_v36, %v2056_v26  ;;  %v778_v23 = vmul.f32 %v2150_v22, %v2081_v43 }
  0xa5   :  { %v2203_v25 = vpop.eup %1270  ;;  %v2207_v45 = vmax.f32 %v489_v9, 0.0  ;;  %1284 = vpow2.f32 %v532_v54  ;;  %v771_v51 = vadd.f32 %v770_v49, %v765_v27  ;;  %v786_v29 = vmul.f32 %v2160_v24, %v2086_v46 }
  0xa6   :  { %v2213_v3 = vmax.f32 %v490_v35, 0.0  ;;  %1286 = vpow2.f32 %v534_v12  ;;  %v726_v10 = vadd.f32 %v725_v52, %v718_v31  ;;  %v794_v32 = vmul.f32 %v2172_v36, %v2089_v53 }
  0xa7   :  { %v779_v8 = vadd.f32 %v778_v23, %v771_v51  ;;  %v826_v9 = vmul.f32 %v2124_v17, %v2132_v14  ;;  %v831_v54 = vmul.f32 %v2142_v13, %v2158_v34  ;;  %v839_v50 = vmul.f32 %v2150_v22, %v2165_v0 }
  0xa8   :  { %v734_v38 = vadd.f32 %v733_v60, %v726_v10  ;;  %v741_v35 = vmul.f32 %v2183_v44, %v2061_v42  ;;  %v749_v12 = vmul.f32 %v2195_v48, %v2064_v59  ;;  %v2229_v52 = vmul.f32 %v2203_v25, %v2067_v19 }
  0xa9   :  { %v1273_v27 = vpop.eup %1272  ;;  %v787_v49 = vadd.f32 %v786_v29, %v779_v8  ;;  %v832_v31 = vadd.f32 %v831_v54, %v826_v9  ;;  %v847_v60 = vmul.f32 %v2160_v24, %v2170_v28  ;;  %v2238_v23 = vstv %s2179_s20 }
  0xaa   :  { %2685 = vst [vmem:[#allocation33_spill] sm:$0xff] %v2238_v23  ;;  %v1275_v51 = vpop.eup %1274  ;;  %v536_v10 = vadd.f32 1.0, %v1273_v27  ;;  %v802_v56 = vmul.f32 %v2183_v44, %v2095_v47  ;;  %v810_v30 = vmul.f32 %v2195_v48, %v2106_v5  ;;  %v855_v29 = vmul.f32 %v2172_v36, %v2177_v61 }
  0xab   :  { %v1277_v8 = vpop.eup %1276  ;;  %v537_v9 = vadd.f32 1.0, %v1275_v51  ;;  %v795_v54 = vadd.f32 %v794_v32, %v787_v49  ;;  %v840_v33 = vadd.f32 %v839_v50, %v832_v31  ;;  %v2249_v63 = vstv %s2193_s21 }
  0xac   :  { %2686 = vst [vmem:[#allocation34_spill] sm:$0xff] %v2249_v63  ;;  %v1279_v1 = vpop.eup %1278  ;;  %v538_v28 = vadd.f32 1.0, %v1277_v8  ;;  %1288 = vlog2.f32 %v536_v10  ;;  %v863_v27 = vmul.f32 %v2183_v44, %v2238_v23  ;;  %v2256_v19 = vstv %s2201_s22 }
  0xad   :  { %2687 = vst [vmem:[#allocation35_spill] sm:$0xff] %v2256_v19  ;;  %v1281_v5 = vpop.eup %1280  ;;  %v539_v0 = vadd.f32 1.0, %v1279_v1  ;;  %1290 = vlog2.f32 %v537_v9  ;;  %v742_v61 = vadd.f32 %v741_v35, %v734_v38  ;;  %v848_v34 = vadd.f32 %v847_v60, %v840_v33 }
  0xae   :  { %v1283_v32 = vpop.eup %1282  ;;  %v540_v50 = vadd.f32 1.0, %v1281_v5  ;;  %1292 = vlog2.f32 %v538_v28  ;;  %v803_v49 = vadd.f32 %v802_v56, %v795_v54  ;;  %v871_v31 = vmul.f32 %v2195_v48, %v2249_v63 }
  0xaf   :  { %v1285_v1 = vpop.eup %1284  ;;  %v541_v51 = vadd.f32 1.0, %v1283_v32  ;;  %1294 = vlog2.f32 %v539_v0  ;;  %v856_v33 = vadd.f32 %v855_v29, %v848_v34  ;;  %v887_v38 = vmul.f32 %v2124_v17, %v2256_v19 }
  0xb0   :  { %v1287_v35 = vpop.eup %1286  ;;  %v542_v60 = vadd.f32 1.0, %v1285_v1  ;;  %1296 = vlog2.f32 %v540_v50  ;;  %v2269_v5 = vstv %s2231_s23  ;;  %v2272_v56 = vstv %s2233_s24 }
  0xb1   :  { %2688 = vst [vmem:[#allocation36_spill] sm:$0xff] %v2269_v5  ;;  %2689 = vst [vmem:[#allocation37_spill] sm:$0xff] %v2272_v56  ;;  %v543_v28 = vadd.f32 1.0, %v1287_v35  ;;  %1298 = vlog2.f32 %v541_v51  ;;  %v864_v10 = vadd.f32 %v863_v27, %v856_v33  ;;  %v2275_v8 = vstv %s2240_s25 }
  0xb2   :  { %2690 = vst [vmem:[#allocation38_spill] sm:$0xff] %v2275_v8  ;;  %1300 = vlog2.f32 %v542_v60  ;;  %v750_v34 = vadd.f32 %v749_v12, %v742_v61  ;;  %v892_v0 = vmul.f32 %v2142_v13, %v2269_v5  ;;  %v900_v29 = vmul.f32 %v2150_v22, %v2272_v56 }
  0xb3   :  { %1302 = vlog2.f32 %v543_v28  ;;  %v811_v9 = vadd.f32 %v810_v30, %v803_v49  ;;  %v818_v54 = vmul.f32 %v2203_v25, %v2112_v16  ;;  %v2286_v27 = vstv %s2251_s26 }
  0xb4   :  { %2691 = vst [vmem:[#allocation39_spill] sm:$0xff] %v2286_v27  ;;  %v2692_v32 = vsub.f32 0.0, %v2097_v40  ;;  %v872_v1 = vadd.f32 %v871_v31, %v864_v10  ;;  %v879_v61 = vmul.f32 %v2203_v25, %v2275_v8  ;;  %v893_v12 = vadd.f32 %v892_v0, %v887_v38 }
  0xb5   :  { %v2693_v51 = vsub.f32 0.0, %v2102_v4  ;;  %v2694_v35 = vsub.f32 0.0, %v2108_v6  ;;  %v2297_v30 = vstv %s2258_s27  ;;  %v2300_v49 = vstv %s2260_s28 }
  0xb6   :  { %v499_v50 = vmax.f32 %v2692_v32, 0.0  ;;  %2695 = vst [vmem:[#allocation40_spill] sm:$0xff] %v2297_v30  ;;  %2696 = vst [vmem:[#allocation41_spill] sm:$0xff] %v2300_v49  ;;  %v1289_v28 = vpop.eup %1288  ;;  %v758_v56 = vadd.f32 %v2229_v52, %v750_v34  ;;  %v901_v5 = vadd.f32 %v900_v29, %v893_v12  ;;  %v908_v31 = vmul.f32 %v2160_v24, %v2286_v27 }
  0xb7   :  { %v500_v33 = vmax.f32 %v2693_v51, 0.0  ;;  %v501_v60 = vmax.f32 %v2694_v35, 0.0  ;;  %v2306_v10 = vstv %s2264_s29  ;;  %v1291_v38 = vpop.eup %1290  ;;  %v2698_v0 = vsub.f32 0.0, %v2116_v62 }
  0xb8   :  { %2697 = vst [vmem:[#allocation42_spill] sm:$0xff] %v2306_v10  ;;  %v2699_v51 = vsub.f32 0.0, %v2126_v18  ;;  %v545_v8 = vmul.f32 0.6931472, %v1289_v28  ;;  %v2312_v63 = vadd.f32 %v818_v54, %v811_v9  ;;  %v1293_v23 = vpop.eup %1292  ;;  %v547_v19 = vmul.f32 0.6931472, %v1291_v38 }
  0xb9   :  { %v502_v32 = vmax.f32 %v2698_v0, 0.0  ;;  %v2314_v52 = vadd.f32 %v879_v61, %v872_v1  ;;  %v2318_v34 = vmul.f32 %v2172_v36, %v2297_v30  ;;  %v2322_v29 = vmul.f32 %v2183_v44, %v2300_v49  ;;  %v1295_v12 = vpop.eup %1294 }
  0xba   :  { %v503_v35 = vmax.f32 %v2699_v51, 0.0  ;;  %v549_v0 = vmul.f32 0.6931472, %v1293_v23  ;;  %v560_v27 = vadd.f32 %v545_v8, %v2187_v57  ;;  %v2327_v9 = vmul.f32 %v2195_v48, %v2306_v10  ;;  %v1297_v1 = vpop.eup %1296 }
  0xbb   :  { %2700 = vst [vmem:[#allocation43_spill] sm:$0xff] %v2322_v29  ;;  %v2330_v54 = vstv %s2277_s30  ;;  %v551_v61 = vmul.f32 0.6931472, %v1295_v12  ;;  %v561_v28 = vadd.f32 %v547_v19, %v2207_v45  ;;  %v2333_v38 = vadd.f32 %v908_v31, %v901_v5  ;;  %v1299_v51 = vpop.eup %1298 }
  0xbc   :  { %2701 = vst [vmem:[#allocation44_spill] sm:$0xff] %v2327_v9  ;;  %2702 = vst [vmem:[#allocation45_spill] sm:$0xff] %v2330_v54  ;;  %1304 = vrcp.f32 %v758_v56  ;;  %v553_v49 = vmul.f32 0.6931472, %v1297_v1  ;;  %v562_v30 = vadd.f32 %v549_v0, %v2213_v3  ;;  %v568_v23 = vsub.f32 0.0, %v560_v27  ;;  %v1301_v57 = vpop.eup %1300 }
  0xbd   :  { %v592_v29 = vmul.f32 2.0, %v560_v27  ;;  %v555_v8 = vmul.f32 0.6931472, %v1299_v51  ;;  %v563_v16 = vadd.f32 %v551_v61, %v499_v50  ;;  %v569_v10 = vsub.f32 0.0, %v561_v28  ;;  %v1303_v14 = vpop.eup %1302 }
  0xbe   :  { %v593_v9 = vmul.f32 2.0, %v561_v28  ;;  %v557_v54 = vmul.f32 0.6931472, %v1301_v57  ;;  %v564_v47 = vadd.f32 %v553_v49, %v500_v33  ;;  %v570_v12 = vsub.f32 0.0, %v562_v30 }
  0xbf   :  { %v576_v53 = vmul.f32 1.442695, %v568_v23  ;;  %v559_v19 = vmul.f32 0.6931472, %v1303_v14  ;;  %v565_v45 = vadd.f32 %v555_v8, %v501_v60  ;;  %v571_v5 = vsub.f32 0.0, %v563_v16 }
  0xc0   :  { %v578_v56 = vmul.f32 1.442695, %v569_v10  ;;  %v566_v31 = vadd.f32 %v557_v54, %v502_v32  ;;  %v572_v1 = vsub.f32 0.0, %v564_v47  ;;  %v580_v3 = vmul.f32 1.442695, %v570_v12 }
  0xc1   :  { %1306 = vpow2.f32 %v576_v53  ;;  %v567_v0 = vadd.f32 %v559_v19, %v503_v35  ;;  %v573_v27 = vsub.f32 0.0, %v565_v45  ;;  %v582_v51 = vmul.f32 1.442695, %v571_v5  ;;  %v2703_v5 = vld [vmem:[#allocation19_spill] sm:$0xff] }
  0xc2   :  { %1308 = vpow2.f32 %v578_v56  ;;  %v574_v50 = vsub.f32 0.0, %v566_v31  ;;  %v584_v61 = vmul.f32 1.442695, %v572_v1  ;;  %v594_v28 = vmul.f32 2.0, %v562_v30 }
  0xc3   :  { %1310 = vpow2.f32 %v580_v3  ;;  %v575_v57 = vsub.f32 0.0, %v567_v0  ;;  %v586_v33 = vmul.f32 1.442695, %v573_v27  ;;  %v595_v49 = vmul.f32 2.0, %v563_v16 }
  0xc4   :  { %1312 = vpow2.f32 %v582_v51  ;;  %v588_v14 = vmul.f32 1.442695, %v574_v50  ;;  %v596_v60 = vmul.f32 2.0, %v564_v47  ;;  %v597_v10 = vmul.f32 2.0, %v565_v45 }
  0xc5   :  { %1314 = vpow2.f32 %v584_v61  ;;  %v590_v53 = vmul.f32 1.442695, %v575_v57  ;;  %v598_v35 = vmul.f32 2.0, %v566_v31  ;;  %v599_v54 = vmul.f32 2.0, %v567_v0  ;;  %v2704_v31 = vld [vmem:[#allocation20_spill] sm:$0xff] }
  0xc6   :  { %v2336_v32 = vpop.eup %1304  ;;  %1316 = vpow2.f32 %v586_v33  ;;  %v600_v23 = vadd.f32 %v592_v29, %v2078_v58  ;;  %v601_v8 = vadd.f32 %v593_v9, %v2083_v21  ;;  %v602_v30 = vadd.f32 %v594_v28, %v2091_v15  ;;  %v2705_v58 = vld [vmem:[#allocation21_spill] sm:$0xff]  ;;  %v2706_v21 = vld [vmem:[#allocation22_spill] sm:$0xff]  ;;  %v2707_v15 = vld [vmem:[#allocation23_spill] sm:$0xff] }
  0xc7   :  { %1318 = vpow2.f32 %v588_v14  ;;  %v603_v16 = vadd.f32 %v595_v49, %v2097_v40  ;;  %v604_v12 = vadd.f32 %v596_v60, %v2102_v4  ;;  %v605_v47 = vadd.f32 %v597_v10, %v2108_v6  ;;  %v2708_v0 = vld [vmem:[#allocation24_spill] sm:$0xff] }
  0xc8   :  { %1320 = vpow2.f32 %v590_v53  ;;  %v606_v19 = vadd.f32 %v598_v35, %v2116_v62  ;;  %v607_v45 = vadd.f32 %v599_v54, %v2126_v18  ;;  %v608_v56 = vsub.f32 %v2703_v5, %v600_v23 }
  0xc9   :  { %v609_v1 = vsub.f32 %v2704_v31, %v601_v8  ;;  %v610_v29 = vsub.f32 %v2705_v58, %v602_v30  ;;  %v611_v9 = vsub.f32 %v2706_v21, %v603_v16  ;;  %v612_v3 = vsub.f32 %v2707_v15, %v604_v12 }
  0xca   :  { %v613_v40 = vsub.f32 %v2708_v0, %v605_v47  ;;  %v614_v4 = vsub.f32 %v1965_v20, %v606_v19  ;;  %v615_v6 = vsub.f32 %v1967_v41, %v607_v45  ;;  %v616_v62 = vadd.f32 2e-06, %v608_v56 }
  0xcb   :  { %v1307_v27 = vpop.eup %1306  ;;  %v617_v51 = vadd.f32 2e-06, %v609_v1  ;;  %v618_v50 = vadd.f32 2e-06, %v610_v29  ;;  %v619_v61 = vadd.f32 2e-06, %v611_v9  ;;  %1322 = vrcp.f32 %v2312_v63 }
  0xcc   :  { %v1309_v18 = vpop.eup %1308  ;;  %v620_v28 = vadd.f32 2e-06, %v612_v3  ;;  %v2355_v57 = vmul.f32 %v1307_v27, %v2124_v17  ;;  %v621_v49 = vadd.f32 2e-06, %v613_v40  ;;  %v622_v14 = vadd.f32 2e-06, %v614_v4 }
  0xcd   :  { %v1311_v33 = vpop.eup %1310  ;;  %v623_v60 = vadd.f32 2e-06, %v615_v6  ;;  %v2358_v10 = vmul.f32 %v1309_v18, %v2142_v13  ;;  %v2387_v3 = vadd.f32 %v2318_v34, %v2333_v38  ;;  %1324 = vrcp.f32 %v2314_v52 }
  0xce   :  { %v1313_v53 = vpop.eup %1312  ;;  %v624_v20 = vmax.f32 %v616_v62, %v620_v28  ;;  %v2361_v41 = vmul.f32 %v1311_v33, %v2150_v22  ;;  %v705_v35 = vmul.f32 %v2042_v55, %v2355_v57  ;;  %v766_v54 = vmul.f32 %v2070_v37, %v2355_v57 }
  0xcf   :  { %v1315_v23 = vpop.eup %1314  ;;  %v625_v8 = vmax.f32 %v617_v51, %v621_v49  ;;  %v626_v30 = vmax.f32 %v618_v50, %v622_v14  ;;  %v627_v16 = vmax.f32 %v619_v61, %v623_v60  ;;  %v2368_v12 = vmul.f32 %v1313_v53, %v2160_v24 }
  0xd0   :  { %v1317_v47 = vpop.eup %1316  ;;  %v2371_v19 = vmul.f32 %v1315_v23, %v2172_v36  ;;  %v711_v45 = vmul.f32 %v2045_v2, %v2358_v10  ;;  %v719_v5 = vmul.f32 %v2050_v7, %v2361_v41  ;;  %v772_v56 = vmul.f32 %v2073_v39, %v2358_v10 }
  0xd1   :  { %v1319_v31 = vpop.eup %1318  ;;  %v628_v1 = vmax.f32 %v624_v20, %v625_v8  ;;  %v629_v58 = vmax.f32 %v626_v30, %v627_v16  ;;  %v2380_v29 = vmul.f32 %v1317_v47, %v2183_v44  ;;  %v727_v15 = vmul.f32 %v2053_v11, %v2368_v12 }
  0xd2   :  { %v1321_v21 = vpop.eup %1320  ;;  %v712_v9 = vadd.f32 %v711_v45, %v705_v35  ;;  %v2393_v40 = vmul.f32 %v1319_v31, %v2195_v48  ;;  %v735_v27 = vmul.f32 %v2056_v26, %v2371_v19  ;;  %v773_v63 = vadd.f32 %v772_v56, %v766_v54 }
  0xd3   :  { %v2390_v0 = vmax.f32 %v628_v1, %v629_v58  ;;  %v2398_v4 = vmul.f32 %v1321_v21, %v2203_v25  ;;  %v743_v18 = vmul.f32 %v2061_v42, %v2380_v29  ;;  %v780_v34 = vmul.f32 %v2081_v43, %v2361_v41  ;;  %v2712_v58 = vld [vmem:[#allocation25_spill] sm:$0xff] }
  0xd4   :  { %v720_v6 = vadd.f32 %v719_v5, %v712_v9  ;;  %v804_v21 = vmul.f32 %v2712_v58, %v2380_v29  ;;  %v2713_v9 = vld [vmem:[#allocation28_spill] sm:$0xff] }
  0xd5   :  { %2709 = vst [vmem:[#allocation19_spill] sm:$0xff] %v2390_v0  ;;  %v631_v52 = vsub.f32 %v616_v62, %v2390_v0  ;;  %v632_v38 = vsub.f32 %v617_v51, %v2390_v0  ;;  %v633_v33 = vsub.f32 %v618_v50, %v2390_v0  ;;  %v634_v53 = vsub.f32 %v619_v61, %v2390_v0  ;;  %v2710_v50 = vld [vmem:[#allocation18_spill] sm:$0xff]  ;;  %v2418_v31 = vpop.eup %1322 }
  0xd6   :  { %v635_v20 = vsub.f32 %v620_v28, %v2390_v0  ;;  %v636_v35 = vsub.f32 %v621_v49, %v2390_v0  ;;  %v637_v54 = vsub.f32 %v622_v14, %v2390_v0  ;;  %v638_v23 = vsub.f32 %v623_v60, %v2390_v0  ;;  %2711 = vst [vmem:[#allocation20_spill] sm:$0xff] %v2418_v31  ;;  %v2727_v0 = vld [vmem:[#allocation36_spill] sm:$0xff] }
  0xd7   :  { %v639_v8 = vmul.f32 1.442695, %v631_v52  ;;  %v641_v30 = vmul.f32 1.442695, %v632_v38  ;;  %v643_v16 = vmul.f32 1.442695, %v633_v33  ;;  %v728_v47 = vadd.f32 %v727_v15, %v720_v6  ;;  %v2424_v6 = vpop.eup %1324 }
  0xd8   :  { %v645_v45 = vmul.f32 1.442695, %v634_v53  ;;  %v751_v62 = vmul.f32 %v2064_v59, %v2393_v40  ;;  %v788_v51 = vmul.f32 %v2086_v46, %v2368_v12  ;;  %v796_v61 = vmul.f32 %v2710_v50, %v2371_v19  ;;  %2714 = vst [vmem:[#allocation21_spill] sm:$0xff] %v2424_v6  ;;  %v2716_v33 = vld [vmem:[#allocation30_spill] sm:$0xff] }
  0xd9   :  { %1326 = vpow2.f32 %v639_v8  ;;  %v647_v28 = vmul.f32 1.442695, %v635_v20  ;;  %v649_v49 = vmul.f32 1.442695, %v636_v35  ;;  %v736_v14 = vadd.f32 %v735_v27, %v728_v47  ;;  %v2715_v27 = vld [vmem:[#allocation29_spill] sm:$0xff]  ;;  %v2718_v20 = vld [vmem:[#allocation26_spill] sm:$0xff] }
  0xda   :  { %1328 = vpow2.f32 %v641_v30  ;;  %v651_v60 = vmul.f32 1.442695, %v637_v54  ;;  %v653_v5 = vmul.f32 1.442695, %v638_v23  ;;  %v781_v56 = vadd.f32 %v780_v34, %v773_v63  ;;  %v2719_v8 = vld [vmem:[#allocation31_spill] sm:$0xff] }
  0xdb   :  { %1330 = vpow2.f32 %v643_v16  ;;  %v744_v1 = vadd.f32 %v743_v18, %v736_v14  ;;  %v827_v15 = vmul.f32 %v2713_v9, %v2355_v57  ;;  %v833_v38 = vmul.f32 %v2715_v27, %v2358_v10  ;;  %v2717_v18 = vld [vmem:[#allocation17_spill] sm:$0xff]  ;;  %v2720_v16 = vld [vmem:[#allocation27_spill] sm:$0xff] }
  0xdc   :  { %1332 = vpow2.f32 %v645_v45  ;;  %v789_v52 = vadd.f32 %v788_v51, %v781_v56  ;;  %v841_v63 = vmul.f32 %v2716_v33, %v2361_v41  ;;  %v759_v53 = vmul.f32 %v2717_v18, %v2398_v4  ;;  %v2721_v45 = vld [vmem:[#allocation32_spill] sm:$0xff] }
  0xdd   :  { %1334 = vpow2.f32 %v647_v28  ;;  %v752_v34 = vadd.f32 %v751_v62, %v744_v1  ;;  %v812_v35 = vmul.f32 %v2718_v20, %v2393_v40  ;;  %v834_v23 = vadd.f32 %v833_v38, %v827_v15  ;;  %v2722_v62 = vld [vmem:[#allocation45_spill] sm:$0xff] }
  0xde   :  { %1336 = vpow2.f32 %v649_v49  ;;  %v797_v54 = vadd.f32 %v796_v61, %v789_v52  ;;  %v849_v30 = vmul.f32 %v2719_v8, %v2368_v12  ;;  %v820_v47 = vmul.f32 %v2720_v16, %v2398_v4  ;;  %v2724_v61 = vld [vmem:[#allocation35_spill] sm:$0xff]  ;;  %v2725_v15 = vld [vmem:[#allocation33_spill] sm:$0xff]  ;;  %v2726_v52 = vld [vmem:[#allocation34_spill] sm:$0xff] }
  0xdf   :  { %1338 = vpow2.f32 %v651_v60  ;;  %v857_v51 = vmul.f32 %v2721_v45, %v2371_v19  ;;  %v2442_v28 = vmul.f32 %v2203_v25, %v2722_v62  ;;  %v842_v56 = vadd.f32 %v841_v63, %v834_v23  ;;  %v2729_v63 = vld [vmem:[#allocation43_spill] sm:$0xff] }
  0xe0   :  { %1340 = vpow2.f32 %v653_v5  ;;  %v805_v14 = vadd.f32 %v804_v21, %v797_v54  ;;  %v888_v49 = vmul.f32 %v2724_v61, %v2355_v57  ;;  %v760_v1 = vadd.f32 %v759_v53, %v752_v34  ;;  %v2728_v5 = vld [vmem:[#allocation38_spill] sm:$0xff]  ;;  %v2730_v53 = vld [vmem:[#allocation37_spill] sm:$0xff]  ;;  %v2731_v23 = vld [vmem:[#allocation39_spill] sm:$0xff] }
  0xe1   :  { %2723 = vst [vmem:[#allocation22_spill] sm:$0xff] %v2442_v28  ;;  %v865_v60 = vmul.f32 %v2725_v15, %v2380_v29  ;;  %v2450_v38 = vmul.f32 %v2726_v52, %v2393_v40  ;;  %v894_v6 = vmul.f32 %v2727_v0, %v2358_v10  ;;  %v850_v16 = vadd.f32 %v849_v30, %v842_v56  ;;  %v2732_v52 = vld [vmem:[#allocation40_spill] sm:$0xff] }
  0xe2   :  { %v813_v31 = vadd.f32 %v812_v35, %v805_v14  ;;  %v2456_v21 = vmul.f32 %v2728_v5, %v2398_v4  ;;  %v925_v57 = vadd.f32 %v2729_v63, %v2387_v3  ;;  %v902_v54 = vmul.f32 %v2730_v53, %v2361_v41  ;;  %v2734_v35 = vld [vmem:[#allocation41_spill] sm:$0xff]  ;;  %v2735_v63 = vld [vmem:[#allocation42_spill] sm:$0xff] }
  0xe3   :  { %v1327_v34 = vpop.eup %1326  ;;  %v2464_v28 = vmul.f32 %v2731_v23, %v2368_v12  ;;  %v2468_v10 = vmul.f32 %v2732_v52, %v2371_v19  ;;  %v2472_v30 = vmul.f32 %v2734_v35, %v2380_v29  ;;  %v895_v3 = vadd.f32 %v894_v6, %v888_v49  ;;  %v2737_v49 = vld [vmem:[#allocation44_spill] sm:$0xff] }
  0xe4   :  { %v1329_v14 = vpop.eup %1328  ;;  %v694_v56 = vmul.f32 %v1327_v34, %v2124_v17  ;;  %v2477_v5 = vmul.f32 %v2735_v63, %v2393_v40  ;;  %v2481_v41 = vmul.f32 %v2722_v62, %v2398_v4  ;;  %v2484_v52 = vadd.f32 %v820_v47, %v813_v31 }
  0xe5   :  { %2733 = vst [vmem:[#allocation23_spill] sm:$0xff] %v2468_v10  ;;  %v1331_v12 = vpop.eup %1330  ;;  %v695_v19 = vmul.f32 %v1329_v14, %v2142_v13  ;;  %v858_v10 = vadd.f32 %v857_v51, %v850_v16  ;;  %v954_v29 = vmul.f32 %v2336_v32, %v760_v1  ;;  %v2491_v34 = vadd.f32 %v2737_v49, %v925_v57 }
  0xe6   :  { %2736 = vst [vmem:[#allocation24_spill] sm:$0xff] %v2481_v41  ;;  %v1333_v35 = vpop.eup %1332  ;;  %v696_v17 = vmul.f32 %v1331_v12, %v2150_v22  ;;  %v706_v6 = vmul.f32 %v2042_v55, %v694_v56  ;;  %v767_v40 = vmul.f32 %v2070_v37, %v694_v56  ;;  %v828_v16 = vmul.f32 %v2713_v9, %v694_v56 }
  0xe7   :  { %v1335_v4 = vpop.eup %1334  ;;  %v697_v41 = vmul.f32 %v1333_v35, %v2160_v24  ;;  %v713_v13 = vmul.f32 %v2045_v2, %v695_v19  ;;  %v774_v31 = vmul.f32 %v2073_v39, %v695_v19  ;;  %v835_v37 = vmul.f32 %v2715_v27, %v695_v19 }
  0xe8   :  { %v1337_v47 = vpop.eup %1336  ;;  %v698_v51 = vmul.f32 %v1335_v4, %v2172_v36  ;;  %v721_v22 = vmul.f32 %v2050_v7, %v696_v17  ;;  %v782_v55 = vmul.f32 %v2081_v43, %v696_v17  ;;  %v843_v7 = vmul.f32 %v2716_v33, %v696_v17 }
  0xe9   :  { %v1339_v1 = vpop.eup %1338  ;;  %v699_v57 = vmul.f32 %v1337_v47, %v2183_v44  ;;  %v714_v14 = vadd.f32 %v713_v13, %v706_v6  ;;  %v729_v24 = vmul.f32 %v2053_v11, %v697_v41  ;;  %v775_v2 = vadd.f32 %v774_v31, %v767_v40 }
  0xea   :  { %v1341_v35 = vpop.eup %1340  ;;  %v700_v39 = vmul.f32 %v1339_v1, %v2195_v48  ;;  %v737_v9 = vmul.f32 %v2056_v26, %v698_v51  ;;  %v790_v36 = vmul.f32 %v2086_v46, %v697_v41  ;;  %v798_v49 = vmul.f32 %v2710_v50, %v698_v51 }
  0xeb   :  { %v701_v43 = vmul.f32 %v1341_v35, %v2203_v25  ;;  %v722_v12 = vadd.f32 %v721_v22, %v714_v14  ;;  %v783_v27 = vadd.f32 %v782_v55, %v775_v2  ;;  %v745_v44 = vmul.f32 %v2061_v42, %v699_v57  ;;  %v2742_v35 = vld [vmem:[#allocation40_spill] sm:$0xff] }
  0xec   :  { %v836_v6 = vadd.f32 %v835_v37, %v828_v16  ;;  %v903_v11 = vadd.f32 %v902_v54, %v895_v3  ;;  %v958_v40 = vmul.f32 0.999999, %v954_v29  ;;  %v753_v48 = vmul.f32 %v2064_v59, %v700_v39 }
  0xed   :  { %v730_v4 = vadd.f32 %v729_v24, %v722_v12  ;;  %v791_v13 = vadd.f32 %v790_v36, %v783_v27  ;;  %v806_v26 = vmul.f32 %v2712_v58, %v699_v57  ;;  %v851_v33 = vmul.f32 %v2719_v8, %v697_v41  ;;  %v2740_v24 = vld [vmem:[#allocation38_spill] sm:$0xff] }
  0xee   :  { %v844_v46 = vadd.f32 %v843_v7, %v836_v6  ;;  %v859_v25 = vmul.f32 %v2721_v45, %v698_v51  ;;  %v866_v31 = vadd.f32 %v865_v60, %v858_v10  ;;  %v761_v50 = vmul.f32 %v2717_v18, %v701_v43  ;;  %v2738_v60 = vld [vmem:[#allocation27_spill] sm:$0xff]  ;;  %v2739_v18 = vld [vmem:[#allocation34_spill] sm:$0xff] }
  0xef   :  { %v738_v47 = vadd.f32 %v737_v9, %v730_v4  ;;  %v799_v22 = vadd.f32 %v798_v49, %v791_v13  ;;  %v814_v42 = vmul.f32 %v2718_v20, %v700_v39  ;;  %v867_v3 = vmul.f32 %v2725_v15, %v699_v57  ;;  %v2743_v36 = vld [vmem:[#allocation22_spill] sm:$0xff] }
  0xf0   :  { %v852_v54 = vadd.f32 %v851_v33, %v844_v46  ;;  %v874_v59 = vadd.f32 %v2450_v38, %v866_v31  ;;  %v889_v29 = vmul.f32 %v2724_v61, %v694_v56  ;;  %v896_v8 = vmul.f32 %v2727_v0, %v695_v19  ;;  %v2741_v0 = vld [vmem:[#allocation23_spill] sm:$0xff] }
  0xf1   :  { %v746_v58 = vadd.f32 %v745_v44, %v738_v47  ;;  %v807_v16 = vadd.f32 %v806_v26, %v799_v22  ;;  %v904_v45 = vmul.f32 %v2730_v53, %v696_v17  ;;  %v822_v10 = vmul.f32 %v2738_v60, %v701_v43  ;;  %v2746_v44 = vld [vmem:[#allocation21_spill] sm:$0xff] }
  0xf2   :  { %v860_v55 = vadd.f32 %v859_v25, %v852_v54  ;;  %v875_v37 = vmul.f32 %v2739_v18, %v700_v39  ;;  %v911_v20 = vadd.f32 %v2464_v28, %v903_v11  ;;  %v882_v15 = vadd.f32 %v2456_v21, %v874_v59  ;;  %v2744_v21 = vld [vmem:[#allocation41_spill] sm:$0xff] }
  0xf3   :  { %v754_v1 = vadd.f32 %v753_v48, %v746_v58  ;;  %v897_v14 = vadd.f32 %v896_v8, %v889_v29  ;;  %v912_v38 = vmul.f32 %v2731_v23, %v697_v41  ;;  %v815_v61 = vadd.f32 %v814_v42, %v807_v16  ;;  %v2745_v23 = vld [vmem:[#allocation20_spill] sm:$0xff] }
  0xf4   :  { %v868_v56 = vadd.f32 %v867_v3, %v860_v55  ;;  %v883_v2 = vmul.f32 %v2740_v24, %v701_v43  ;;  %v919_v19 = vadd.f32 %v2741_v0, %v911_v20  ;;  %v920_v9 = vmul.f32 %v2742_v35, %v698_v51  ;;  %v2747_v42 = vld [vmem:[#allocation24_spill] sm:$0xff]  ;;  %v2748_v24 = vld [vmem:[#allocation19_spill] sm:$0xff] }
  0xf5   :  { %v762_v53 = vadd.f32 %v761_v50, %v754_v1  ;;  %v905_v17 = vadd.f32 %v904_v45, %v897_v14  ;;  %v941_v7 = vadd.f32 %v2743_v36, %v2491_v34  ;;  %v928_v27 = vmul.f32 %v2744_v21, %v699_v57 }
  0xf6   :  { %v876_v28 = vadd.f32 %v875_v37, %v868_v56  ;;  %v927_v12 = vadd.f32 %v2472_v30, %v919_v19  ;;  %v955_v41 = vmul.f32 %v2745_v23, %v2484_v52  ;;  %v956_v6 = vmul.f32 %v2746_v44, %v882_v15 }
  0xf7   :  { %v913_v49 = vadd.f32 %v912_v38, %v905_v17  ;;  %1342 = vrcp.f32 %v941_v7  ;;  %v962_v11 = vadd.f32 5e-07, %v958_v40  ;;  %v823_v4 = vadd.f32 %v822_v10, %v815_v61 }
  0xf8   :  { %v936_v48 = vmul.f32 %v2735_v63, %v700_v39  ;;  %v959_v51 = vmul.f32 0.999999, %v955_v41  ;;  %v1021_v13 = vmul.f32 %v2336_v32, %v762_v53  ;;  %v960_v26 = vmul.f32 0.999999, %v956_v6 }
  0xf9   :  { %v921_v34 = vadd.f32 %v920_v9, %v913_v49  ;;  %v966_v46 = vmul.f32 100.0, %v962_v11  ;;  %v982_v30 = vsub.f32 1.0, %v962_v11  ;;  %v884_v33 = vadd.f32 %v883_v2, %v876_v28 }
  0xfa   :  { %v935_v57 = vadd.f32 %v2477_v5, %v927_v12  ;;  %v944_v52 = vmul.f32 %v2722_v62, %v701_v43  ;;  %v963_v25 = vadd.f32 5e-07, %v959_v51  ;;  %v964_v47 = vadd.f32 5e-07, %v960_v26 }
  0xfb   :  { %v929_v31 = vadd.f32 %v928_v27, %v921_v34  ;;  %1344 = vlog2.f32 %v966_v46  ;;  %v986_v40 = vmul.f32 100.0, %v982_v30  ;;  %v1022_v5 = vmul.f32 %v2745_v23, %v823_v4  ;;  %v1175_v4 = vld [vmem:[%s2586_s2] ss:$0 sm:$0xff]  ;;  %s1474_s2 = smov [#allocation9]  }
  0xfc   :  { %v967_v50 = vmul.f32 100.0, %v963_v25  ;;  %v983_v22 = vsub.f32 1.0, %v963_v25  ;;  %1346 = vlog2.f32 %v1021_v13  ;;  %v968_v39 = vmul.f32 100.0, %v964_v47  ;;  %s1069_s9 = sshll.u32 %s1474_s2, 4  ;;  %s1070_s9 = int_to_ptr.vmem [resolvable:$true] %s1069_s9 }
  0xfd   :  { %v937_v63 = vadd.f32 %v936_v48, %v929_v31  ;;  %v984_v32 = vsub.f32 1.0, %v964_v47  ;;  %1348 = vlog2.f32 %v986_v40  ;;  %v943_v54 = vadd.f32 %v2747_v42, %v935_v57  ;;  %s1414_s13 = scalar_lea.vmem %s1070_s9, 64  ;;  %p1419_p5 = scmp.lt.s32.totalorder %s1070_s9, %s1070_s9 }
  0xfe   :  { %1350 = vlog2.f32 %v967_v50  ;;  %v987_v3 = vmul.f32 100.0, %v983_v22  ;;  %v1023_v43 = vmul.f32 %v2746_v44, %v884_v33  ;;  %p1415_p4 = scmp.ne.s32.totalorder %s1070_s9, %s1414_s13  ;;  %p1420_p6 = scmp.lt.s32.totalorder %s1414_s13, %s1414_s13 }
  0xff   :  { %v945_v59 = vadd.f32 %v944_v52, %v937_v63  ;;  %1352 = vlog2.f32 %v968_v39  ;;  %v988_v62 = vmul.f32 100.0, %v984_v32 }
 0x100   :  { %1354 = vlog2.f32 %v987_v3  ;;  %p1421_p7 = por %p1420_p6, %p1419_p5 }
 0x101   :  { %v1343_v29 = vpop.eup %1342  ;;  %1356 = vlog2.f32 %v988_v62 }
 0x102   :  { %v957_v58 = vmul.f32 %v1343_v29, %v943_v54  ;;  %v1024_v16 = vmul.f32 %v1343_v29, %v945_v59  ;;  %1358 = vlog2.f32 %v1022_v5  ;;  %p1422_p8 = pnand %p1421_p7, %p1415_p4 }
 0x103   :  { %1360 = vlog2.f32 %v1023_v43 }
 0x104   :  { %v961_v8 = vmul.f32 0.999999, %v957_v58  ;;  %1362 = vlog2.f32 %v1024_v16 }
 0x105   :  { %v1345_v45 = vpop.eup %1344 }
 0x106   :  { %v1347_v60 = vpop.eup %1346  ;;  %v965_v10 = vadd.f32 5e-07, %v961_v8  ;;  %v971_v55 = vmul.f32 0.6931472, %v1345_v45 }
 0x107   :  { %v1349_v18 = vpop.eup %1348  ;;  %v1026_v37 = vmul.f32 0.6931472, %v1347_v60 }
 0x108   :  { %v1351_v20 = vpop.eup %1350  ;;  %v969_v1 = vmul.f32 100.0, %v965_v10  ;;  %v985_v15 = vsub.f32 1.0, %v965_v10  ;;  %v991_v14 = vmul.f32 0.6931472, %v1349_v18  ;;  %v1167_v56 = vadd.f32 -4.6051702, %v971_v55 }
 0x109   :  { %v1353_v38 = vpop.eup %1352  ;;  %v973_v61 = vmul.f32 0.6931472, %v1351_v20  ;;  %v1033_v2 = vadd.f32 %v1026_v37, %v2748_v24 }
 0x10a   :  { %v1355_v0 = vpop.eup %1354  ;;  %v975_v19 = vmul.f32 0.6931472, %v1353_v38  ;;  %1364 = vlog2.f32 %v969_v1  ;;  %v989_v53 = vmul.f32 100.0, %v985_v15  ;;  %v1171_v17 = vadd.f32 -4.6051702, %v991_v14 }
 0x10b   :  { %v1357_v35 = vpop.eup %1356  ;;  %v1168_v9 = vadd.f32 -4.6051702, %v973_v61  ;;  %v993_v36 = vmul.f32 0.6931472, %v1355_v0  ;;  %v1037_v21 = vadd.f32 -1.0000005e-06, %v1033_v2 }
 0x10c   :  { %v1359_v7 = vpop.eup %1358  ;;  %v1169_v28 = vadd.f32 -4.6051702, %v975_v19  ;;  %v995_v12 = vmul.f32 0.6931472, %v1357_v35  ;;  %1366 = vlog2.f32 %v989_v53  ;;  %v1041_v49 = vadd.f32 %v1171_v17, %v1167_v56 }
 0x10d   :  { %v1361_v27 = vpop.eup %1360  ;;  %v1172_v23 = vadd.f32 -4.6051702, %v993_v36  ;;  %v1028_v41 = vmul.f32 0.6931472, %v1359_v7  ;;  %v1002_v47 = vsub.f32 %v1167_v56, %v1171_v17 }
 0x10e   :  { %v1363_v44 = vpop.eup %1362  ;;  %v1173_v6 = vadd.f32 -4.6051702, %v995_v12  ;;  %v1030_v11 = vmul.f32 0.6931472, %v1361_v27  ;;  %v1045_v26 = vsub.f32 %v1037_v21, %v1041_v49 }
 0x10f   :  { %v1034_v48 = vadd.f32 %v1028_v41, %v2748_v24  ;;  %v1042_v51 = vadd.f32 %v1172_v23, %v1168_v9  ;;  %v1003_v46 = vsub.f32 %v1168_v9, %v1172_v23  ;;  %v1032_v30 = vmul.f32 0.6931472, %v1363_v44 }
 0x110   :  { %v1035_v13 = vadd.f32 %v1030_v11, %v2748_v24  ;;  %v1043_v34 = vadd.f32 %v1173_v6, %v1169_v28  ;;  %v1055_v52 = vadd.f32 %v1175_v4, %v1045_v26  ;;  %v1004_v40 = vsub.f32 %v1169_v28, %v1173_v6 }
 0x111   :  { %v1038_v33 = vadd.f32 -1.0000005e-06, %v1034_v48  ;;  %v1010_v63 = vrot.slane %v1003_v46, 7  ;;  %v1036_v39 = vadd.f32 %v1032_v30, %v2748_v24 }
 0x112   :  { %v1039_v57 = vadd.f32 -1.0000005e-06, %v1035_v13  ;;  %1059 = vst [vmem:[#allocation10] sm:$0xff] %v1055_v52  ;;  %v1013_v59 = vrot.slane %v1004_v40, 6 }
 0x113   :  { %v1046_v25 = vsub.f32 %v1038_v33, %v1042_v51  ;;  %v1012_v43 = vsel %vm1011_vm0, %v1010_v63, %v1002_v47  ;;  %v1040_v29 = vadd.f32 -1.0000005e-06, %v1036_v39 }
 0x114   :  { %v1365_v31 = vpop.eup %1364  ;;  %v1047_v50 = vsub.f32 %v1039_v57, %v1043_v34  ;;  %v1015_v8 = vsel %vm1014_vm1, %v1013_v59, %v1012_v43 }
 0x115   :  { %v977_v22 = vmul.f32 0.6931472, %v1365_v31  ;;  %v1056_v32 = vadd.f32 %v1175_v4, %v1046_v25 }
 0x116   :  { %v1367_v42 = vpop.eup %1366  ;;  %v1057_v54 = vadd.f32 %v1175_v4, %v1047_v50 }
 0x117   :  { %v1170_v3 = vadd.f32 -4.6051702, %v977_v22  ;;  %v997_v5 = vmul.f32 0.6931472, %v1367_v42  ;;  %1060 = vst [vmem:[#allocation10 + $0x8] sm:$0xff] %v1056_v32 }
 0x118   :  { %1061 = vst [vmem:[#allocation10 + $0x10] sm:$0xff] %v1057_v54 }
 0x119   :  { %v1174_v62 = vadd.f32 -4.6051702, %v997_v5 }
 0x11b   :  { %v1005_v58 = vsub.f32 %v1170_v3, %v1174_v62  ;;  %v1044_v16 = vadd.f32 %v1174_v62, %v1170_v3 }
 0x11d   :  { %v1016_v45 = vrot.slane %v1005_v58, 5  ;;  %v1048_v60 = vsub.f32 %v1040_v29, %v1044_v16 }
 0x11f   :  { %v1018_v10 = vsel %vm1017_vm2, %v1016_v45, %v1015_v8  ;;  %v1058_v55 = vadd.f32 %v1175_v4, %v1048_v60 }
 0x120   :  { %1020 = vst [vmem:[#allocation9] sm:$0xf] %v1018_v10 }
 0x121   :  { %1062 = vst [vmem:[#allocation10 + $0x18] sm:$0xff] %v1058_v55 }
 0x122   :  { %1425 = shalt.err (!%p1422_p8)
}
 0x123   :  { %s1426_s16 = scalar_lea.hbm %s2589_s5, 64 }
 0x124   :  { %p1427_p9 = scmp.ne.s32.totalorder %s2589_s5, %s1426_s16  ;;  %p1430_p10 = scmp.lt.u32.totalorder %s1426_s16, %s2589_s5 }
 0x126   :  { %p1432_p11 = pnand %p1430_p10, %p1427_p9 }
 0x128   :  { %1435 = shalt.err (!%p1432_p11)
}
 0x129   :  { %1072 = dma.vmem_to_hbm [thread:$0]  %s1070_s9, 64, %s2589_s5, [#allocation4]  }
 0x12a   :  { %s1436_s20 = scalar_lea.vmem %s2550_s12, 512  ;;  %p1441_p13 = scmp.lt.s32.totalorder %s2550_s12, %s2550_s12 }
 0x12b   :  { %p1437_p12 = scmp.ne.s32.totalorder %s2550_s12, %s1436_s20  ;;  %p1442_p0 = scmp.lt.s32.totalorder %s1436_s20, %s1436_s20 }
 0x12d   :  { %p1443_p1 = por %p1442_p0, %p1441_p13 }
 0x12f   :  { %p1444_p2 = pnand %p1443_p1, %p1437_p12 }
 0x131   :  { %1447 = shalt.err (!%p1444_p2)
}
 0x132   :  { %s1448_s23 = scalar_lea.hbm %s2590_s6, 512 }
 0x133   :  { %p1449_p3 = scmp.ne.s32.totalorder %s2590_s6, %s1448_s23  ;;  %p1452_p4 = scmp.lt.u32.totalorder %s1448_s23, %s2590_s6 }
 0x135   :  { %p1454_p5 = pnand %p1452_p4, %p1449_p3 }
 0x137   :  { %1457 = shalt.err (!%p1454_p5)
}
 0x138   :  { %1084 = dma.vmem_to_hbm [thread:$0]  %s2550_s12, 512, %s2590_s6, [#allocation11], %s1469_s3, %s1469_s3, %s1470_s10  }
 0x139   :  { %1464 = dma.done.wait [#allocation4], 64  }
 0x13a   :  { %1465 = vsyncadd [#allocation4], 4294967232 }
 0x13b   :  { %1466 = dma.done.wait [#allocation11], 512  }
 0x13c   :  { %1467 = vsyncadd [#allocation11], 4294966784 }
 0x13d   :  { %1091 = vsyncpa [#allocation3], 1 }
 0x13e   :  { %1092 = vsyncpa [#allocation4], 1 }
 0x13f   :  { %1093 = vsyncpa [#allocation11], 1 }
 0x140   :  { %1094 = vsyncpa [#allocation5], 1 }
 0x141   :  { %1095 = vsyncpa [#allocation8], 1 }

</bundles_post_ra>
